<compile_context>
chip_gen: v5e
topology: v5e:2x2
jax: 0.10.0
libtpu: 0.0.40
codegen_flags: <defaults>
</compile_context>

<pallas_src>
import functools

import jax
import jax.numpy as jnp
from jax.experimental import pallas as pl
from jax.experimental.pallas import tpu as pltpu

ACT_DTYPE = jnp.bfloat16          # storage dtype for activations / MXU operands
TILE_M_TARGET = 512               # >= 512 rows per grid step (amortizes ~0.35us/step)

PARALLEL_1D = pltpu.CompilerParams(dimension_semantics=("parallel",))


# ---------------------------------------------------------------------------
# small helpers
# ---------------------------------------------------------------------------
def _round_up(x, m):
    return (x + m - 1) // m * m


def _pick_tile(m, target=TILE_M_TARGET):
    return min(target, _round_up(m, 8))


def _pad_rows(a, axis, mult):
    pad = _round_up(a.shape[axis], mult) - a.shape[axis]
    if pad == 0:
        return a
    widths = [(0, 0)] * a.ndim
    widths[axis] = (0, pad)
    return jnp.pad(a, widths)


# ---------------------------------------------------------------------------
# Pallas kernels
# ---------------------------------------------------------------------------
def _matmul_bn_kernel(x_ref, w_ref, s_ref, b_ref, o_ref, *, relu):
    # x: [tm, K] bf16, w: [K, Cout] bf16, s/b: [1, Cout] f32
    x = x_ref[...].astype(jnp.bfloat16)
    acc = jnp.dot(x, w_ref[...], preferred_element_type=jnp.float32)
    acc = acc * s_ref[...] + b_ref[...]
    if relu:
        acc = jnp.maximum(acc, 0.0)
    o_ref[...] = acc.astype(o_ref.dtype)


def _dw_pw_bn_kernel(t_ref, dw_ref, ds_ref, db_ref, pw_ref, ps_ref, pb_ref, o_ref):
    # Fused 3x3 depthwise (pre-shifted taps) + BN  ->  1x1 conv + BN + ReLU.
    # t: [9, tm, C] bf16, dw: [9, 1, C] f32, pw: [C, Cout] bf16.
    acc = t_ref[0].astype(jnp.float32) * dw_ref[0]
    for k in range(1, 9):
        acc = acc + t_ref[k].astype(jnp.float32) * dw_ref[k]
    acc = acc * ds_ref[...] + db_ref[...]                 # dw BN (no ReLU)
    y = jnp.dot(acc.astype(jnp.bfloat16), pw_ref[...],
                preferred_element_type=jnp.float32)
    y = jnp.maximum(y * ps_ref[...] + pb_ref[...], 0.0)   # pw BN + ReLU
    o_ref[...] = y.astype(o_ref.dtype)


def _maxpool_kernel(t_ref, o_ref):
    # t: [9, tm, C] (taps padded with -inf)
    acc = t_ref[0].astype(jnp.float32)
    for k in range(1, 9):
        acc = jnp.maximum(acc, t_ref[k].astype(jnp.float32))
    o_ref[...] = acc.astype(o_ref.dtype)


def _branch2_s1_kernel(x_ref, m_ref, w1_ref, s1_ref, b1_ref,
                       dw_ref, ds_ref, db_ref,
                       w2_ref, s2_ref, b2_ref, o_ref, *, H, W):
    # Fully fused stride-1 branch2 for one image:
    #   1x1 conv + BN + ReLU  ->  3x3 depthwise + BN  ->  1x1 conv + BN + ReLU
    # Input is the spatially zero-padded image flattened to [Lp, Cb]
    # (Lp = (H+3)*(W+2)); the 9 depthwise taps become static shifted slices
    # of the (masked) pw1 output, so nothing intermediate touches HBM.
    Wp = W + 2
    Lout = H * Wp
    x = x_ref[...]                                              # (Lp, Cb) bf16
    y = jnp.dot(x, w1_ref[...], preferred_element_type=jnp.float32)
    y = jnp.maximum(y * s1_ref[...] + b1_ref[...], 0.0)
    y = y * m_ref[...]            # zero out padding pixels (dw expects 0-pad)
    acc = y[0:Lout, :] * dw_ref[0]
    for k in range(1, 9):
        off = (k // 3) * Wp + (k % 3)
        acc = acc + y[off:off + Lout, :] * dw_ref[k]
    acc = acc * ds_ref[...] + db_ref[...]                       # dw BN (no ReLU)
    z = jnp.dot(acc.astype(jnp.bfloat16), w2_ref[...],
                preferred_element_type=jnp.float32)
    z = jnp.maximum(z * s2_ref[...] + b2_ref[...], 0.0)
    o_ref[...] = z.astype(o_ref.dtype)


# ---------------------------------------------------------------------------
# Pallas wrappers (tiled grids)
# ---------------------------------------------------------------------------
def matmul_bn(x2d, w, scale, bias, relu, out_dtype=ACT_DTYPE):
    m, k = x2d.shape
    cout = w.shape[1]
    tm = _pick_tile(m)
    xp = _pad_rows(x2d, 0, tm)
    mp = xp.shape[0]
    out = pl.pallas_call(
        functools.partial(_matmul_bn_kernel, relu=relu),
        out_shape=jax.ShapeDtypeStruct((mp, cout), out_dtype),
        grid=(mp // tm,),
        in_specs=[
            pl.BlockSpec((tm, k), lambda i: (i, 0)),
            pl.BlockSpec((k, cout), lambda i: (0, 0)),
            pl.BlockSpec((1, cout), lambda i: (0, 0)),
            pl.BlockSpec((1, cout), lambda i: (0, 0)),
        ],
        out_specs=pl.BlockSpec((tm, cout), lambda i: (i, 0)),
        compiler_params=PARALLEL_1D,
        cost_estimate=pl.CostEstimate(
            flops=int(2 * mp * k * cout),
            transcendentals=0,
            bytes_accessed=int(mp * k * 2 + k * cout * 2 + mp * cout * 2)),
    )(xp, w, scale, bias)
    return out[:m]


def dw_pw_bn(taps, dw_w, dw_bn, pw_w, pw_bn, out_dtype=ACT_DTYPE):
    _, m, c = taps.shape
    cout = pw_w.shape[1]
    tm = _pick_tile(m)
    tp = _pad_rows(taps, 1, tm)
    mp = tp.shape[1]
    out = pl.pallas_call(
        _dw_pw_bn_kernel,
        out_shape=jax.ShapeDtypeStruct((mp, cout), out_dtype),
        grid=(mp // tm,),
        in_specs=[
            pl.BlockSpec((9, tm, c), lambda i: (0, i, 0)),
            pl.BlockSpec((9, 1, c), lambda i: (0, 0, 0)),
            pl.BlockSpec((1, c), lambda i: (0, 0)),
            pl.BlockSpec((1, c), lambda i: (0, 0)),
            pl.BlockSpec((c, cout), lambda i: (0, 0)),
            pl.BlockSpec((1, cout), lambda i: (0, 0)),
            pl.BlockSpec((1, cout), lambda i: (0, 0)),
        ],
        out_specs=pl.BlockSpec((tm, cout), lambda i: (i, 0)),
        compiler_params=PARALLEL_1D,
        cost_estimate=pl.CostEstimate(
            flops=int(mp * c * (18 + 2 * cout)),
            transcendentals=0,
            bytes_accessed=int(9 * mp * c * 2 + c * cout * 2 + mp * cout * 2)),
    )(tp, dw_w, dw_bn[0], dw_bn[1], pw_w, pw_bn[0], pw_bn[1])
    return out[:m]


def maxpool_taps(taps):
    _, m, c = taps.shape
    tm = _pick_tile(m)
    tp = _pad_rows(taps, 1, tm)
    mp = tp.shape[1]
    out = pl.pallas_call(
        _maxpool_kernel,
        out_shape=jax.ShapeDtypeStruct((mp, c), ACT_DTYPE),
        grid=(mp // tm,),
        in_specs=[pl.BlockSpec((9, tm, c), lambda i: (0, i, 0))],
        out_specs=pl.BlockSpec((tm, c), lambda i: (i, 0)),
        compiler_params=PARALLEL_1D,
    )(tp)
    return out[:m]


def branch2_stride1(x2, p):
    # x2: (N, H, W, Cb) bf16 -> fused pw1 -> dw -> pw2, one kernel per image.
    n, h, w, cb = x2.shape
    hp, wp = h + 3, w + 2
    lp, lout = hp * wp, h * wp
    bf = p["pw1_w"].shape[1]
    oup = p["pw2_w"].shape[1]
    xpad = jnp.pad(x2, ((0, 0), (1, 2), (1, 1), (0, 0))).reshape(n, lp, cb)
    rr = jnp.arange(hp)
    cc = jnp.arange(wp)
    m2d = ((rr >= 1) & (rr <= h))[:, None] & ((cc >= 1) & (cc <= w))[None, :]
    mask = m2d.reshape(lp, 1).astype(jnp.float32)
    out = pl.pallas_call(
        functools.partial(_branch2_s1_kernel, H=h, W=w),
        out_shape=jax.ShapeDtypeStruct((n, lout, oup), ACT_DTYPE),
        grid=(n,),
        in_specs=[
            pl.BlockSpec((None, lp, cb), lambda b: (b, 0, 0)),
            pl.BlockSpec((lp, 1), lambda b: (0, 0)),
            pl.BlockSpec((cb, bf), lambda b: (0, 0)),
            pl.BlockSpec((1, bf), lambda b: (0, 0)),
            pl.BlockSpec((1, bf), lambda b: (0, 0)),
            pl.BlockSpec((9, 1, bf), lambda b: (0, 0, 0)),
            pl.BlockSpec((1, bf), lambda b: (0, 0)),
            pl.BlockSpec((1, bf), lambda b: (0, 0)),
            pl.BlockSpec((bf, oup), lambda b: (0, 0)),
            pl.BlockSpec((1, oup), lambda b: (0, 0)),
            pl.BlockSpec((1, oup), lambda b: (0, 0)),
        ],
        out_specs=pl.BlockSpec((None, lout, oup), lambda b: (b, 0, 0)),
        compiler_params=PARALLEL_1D,
        cost_estimate=pl.CostEstimate(
            flops=int(n * (2 * lp * cb * bf + 18 * lout * bf + 2 * lout * bf * oup)),
            transcendentals=0,
            bytes_accessed=int(n * (lp * cb * 2 + lout * oup * 2))),
    )(xpad, mask, p["pw1_w"], p["pw1_bn"][0], p["pw1_bn"][1],
      p["dw_w"], p["dw_bn"][0], p["dw_bn"][1],
      p["pw2_w"], p["pw2_bn"][0], p["pw2_bn"][1])
    return out.reshape(n, h, wp, oup)[:, :, :w, :]


# ---------------------------------------------------------------------------
# JAX glue: tap extraction (stride-2 / maxpool / conv1), layers, network
# ---------------------------------------------------------------------------
def extract_taps(x_nhwc, stride, pad_value):
    """3x3 window, padding=1 -> stacked taps [9, N*Ho*Wo, C] (wrapper-side)."""
    n, h, w, c = x_nhwc.shape
    ho = (h + 2 - 3) // stride + 1
    wo = (w + 2 - 3) // stride + 1
    xp = jnp.pad(x_nhwc, ((0, 0), (1, 1), (1, 1), (0, 0)),
                 constant_values=pad_value)
    taps = []
    for kh in range(3):
        for kw in range(3):
            v = jax.lax.slice(
                xp,
                (0, kh, kw, 0),
                (n, kh + (ho - 1) * stride + 1, kw + (wo - 1) * stride + 1, c),
                (1, stride, stride, 1),
            )
            taps.append(v.reshape(n * ho * wo, c))
    return jnp.stack(taps, axis=0), (n, ho, wo, c)


def pointwise_conv_bn(x, w, bn, relu):
    n, h, wd, c = x.shape
    out = matmul_bn(x.reshape(n * h * wd, c), w, bn[0], bn[1], relu)
    return out.reshape(n, h, wd, -1)


def conv3x3_bn_relu(x, w, bn, stride):
    taps, (n, ho, wo, cin) = extract_taps(x, stride, 0.0)
    patches = jnp.transpose(taps, (1, 0, 2)).reshape(n * ho * wo, 9 * cin)
    out = matmul_bn(patches, w, bn[0], bn[1], relu=True)
    return out.reshape(n, ho, wo, -1)


def maxpool2d(x):
    taps, (n, ho, wo, c) = extract_taps(x, 2, -jnp.inf)
    return maxpool_taps(taps).reshape(n, ho, wo, c)


def channel_shuffle(x, groups):
    # TODO(synk): fold this fixed permutation (and the stride-1 split) into the
    # adjacent pointwise-conv weights / index_maps to drop this HBM pass.
    n, h, w, c = x.shape
    x = x.reshape(n, h, w, groups, c // groups)
    x = jnp.swapaxes(x, -1, -2)
    return x.reshape(n, h, w, c)


def block_stride2(x, blk):
    # branch1: dw(s2)+BN -> pw+BN+ReLU       (fused dw->pw kernel)
    p1 = blk["branch1"]
    taps1, (n, ho, wo, _) = extract_taps(x, 2, 0.0)
    b1 = dw_pw_bn(taps1, p1["dw_w"], p1["dw_bn"], p1["pw_w"], p1["pw_bn"])
    # branch2: pw1+BN+ReLU -> dw(s2)+BN -> pw2+BN+ReLU
    p2 = blk["branch2"]
    y = pointwise_conv_bn(x, p2["pw1_w"], p2["pw1_bn"], relu=True)
    taps2, _ = extract_taps(y, 2, 0.0)
    b2 = dw_pw_bn(taps2, p2["dw_w"], p2["dw_bn"], p2["pw2_w"], p2["pw2_bn"])
    out = jnp.concatenate([b1.reshape(n, ho, wo, -1),
                           b2.reshape(n, ho, wo, -1)], axis=-1)
    return channel_shuffle(out, 2)


def block_stride1(x, blk):
    c = x.shape[-1] // 2
    x1, x2 = x[..., :c], x[..., c:]
    b2 = branch2_stride1(x2, blk["branch2"])
    out = jnp.concatenate([x1, b2], axis=-1)
    return channel_shuffle(out, 2)


def shufflenet_v2_forward(x_nchw, params):
    x = jnp.transpose(x_nchw, (0, 2, 3, 1)).astype(ACT_DTYPE)    # NCHW -> NHWC
    x = conv3x3_bn_relu(x, params["conv1"]["w"], params["conv1"]["bn"], 2)
    x = maxpool2d(x)
    for stage in ("stage2", "stage3", "stage4"):
        for blk in params[stage]:
            x = block_stride2(x, blk) if blk["stride"] == 2 else block_stride1(x, blk)
    x = pointwise_conv_bn(x, params["conv5"]["w"], params["conv5"]["bn"], True)
    return jnp.transpose(x, (0, 3, 1, 2)).astype(jnp.float32)     # NHWC -> NCHW


# ---------------------------------------------------------------------------
# Deterministic synthetic parameter initialization (eval-mode BN folded)
# ---------------------------------------------------------------------------
class KeyGen:
    def __init__(self, key):
        self.key = key

    def __call__(self):
        self.key, sub = jax.random.split(self.key)
        return sub


def conv_w(kg, shape, fan_in, dtype=jnp.bfloat16):
    w = jax.random.normal(kg(), shape, jnp.float32) * (1.0 / float(fan_in) ** 0.5)
    return w.astype(dtype)


def init_bn(key, c):
    kg, kb, km, kv = jax.random.split(key, 4)
    gamma = jax.random.uniform(kg, (c,), jnp.float32, 0.5, 1.5)
    beta = jax.random.normal(kb, (c,), jnp.float32) * 0.1
    mean = jax.random.normal(km, (c,), jnp.float32) * 0.1
    var = jax.random.uniform(kv, (c,), jnp.float32, 0.5, 1.5)
    scale = gamma / jnp.sqrt(var + 1e-5)
    bias = beta - mean * scale
    return scale.reshape(1, c), bias.reshape(1, c)


def init_inverted_residual(kg, inp, oup, stride):
    bf = oup // 2
    blk = {"stride": stride}
    if stride > 1:
        blk["branch1"] = {
            "dw_w": conv_w(kg, (3, 3, inp), 9, jnp.float32).reshape(9, 1, inp),
            "dw_bn": init_bn(kg(), inp),
            "pw_w": conv_w(kg, (inp, bf), inp),
            "pw_bn": init_bn(kg(), bf),
        }
    b2_in = inp if stride > 1 else bf
    blk["branch2"] = {
        "pw1_w": conv_w(kg, (b2_in, bf), b2_in),
        "pw1_bn": init_bn(kg(), bf),
        "dw_w": conv_w(kg, (3, 3, bf), 9, jnp.float32).reshape(9, 1, bf),
        "dw_bn": init_bn(kg(), bf),
        "pw2_w": conv_w(kg, (bf, bf), bf),
        "pw2_bn": init_bn(kg(), bf),
    }
    return blk


def init_params(kg, stages_repeats, stages_out_channels):
    assert len(stages_repeats) == 3 and len(stages_out_channels) == 5
    p = {}
    in_ch = 3
    out_ch = stages_out_channels[0]
    p["conv1"] = {"w": conv_w(kg, (3, 3, in_ch, out_ch), 9 * in_ch).reshape(9 * in_ch, out_ch),
                  "bn": init_bn(kg(), out_ch)}
    in_ch = out_ch
    for name, repeats, out_ch in zip(("stage2", "stage3", "stage4"),
                                     stages_repeats, stages_out_channels[1:4]):
        blocks = [init_inverted_residual(kg, in_ch, out_ch, 2)]
        for _ in range(repeats - 1):
            blocks.append(init_inverted_residual(kg, out_ch, out_ch, 1))
        p[name] = blocks
        in_ch = out_ch
    out_ch = stages_out_channels[-1]
    p["conv5"] = {"w": conv_w(kg, (in_ch, out_ch), in_ch),
                  "bn": init_bn(kg(), out_ch)}
    return p


# ---------------------------------------------------------------------------
if __name__ == "__main__":
    key = jax.random.PRNGKey(0)
    kx, kp = jax.random.split(key)

    # Small config: stages_repeats=[2,2,2], stages_out_channels=[16,32,64,128,256]
    stages_repeats = [2, 2, 2]
    stages_out_channels = [16, 32, 64, 128, 256]
    params = init_params(KeyGen(kp), stages_repeats, stages_out_channels)

    x = jax.random.normal(kx, (2, 3, 32, 32), jnp.float32)   # NCHW like PyTorch

    fwd = jax.jit(lambda inp: shufflenet_v2_forward(inp, params))
    out = jax.block_until_ready(fwd(x))

    assert out.shape == (2, 256, 1, 1), out.shape
    assert bool(jnp.all(jnp.isfinite(out)))
    print("KERNEL_OK")
</pallas_src>

<mosaic_0001>
module attributes {stable_mosaic.version = 11 : i64} {
  func.func @_matmul_bn_kernel(%arg0: i32, %arg1: memref<512x27xbf16, #tpu.memory_space<vmem>>, %arg2: memref<27x16xbf16, #tpu.memory_space<vmem>>, %arg3: memref<1x16xf32, #tpu.memory_space<vmem>>, %arg4: memref<1x16xf32, #tpu.memory_space<vmem>>, %arg5: memref<512x16xbf16, #tpu.memory_space<vmem>>) attributes {dimension_semantics = [#tpu.dimension_semantics<parallel>], iteration_bounds = array<i64: 1>, scalar_prefetch = 0 : i64, scratch_operands = 0 : i64, tpu.core_type = #tpu.core_type<tc>, window_params = [{transform_indices = @transform_0, window_bounds = array<i64: 512, 27>}, {pipeline_mode = #tpu.pipeline_mode<synchronous>, transform_indices = @transform_1, window_bounds = array<i64: 27, 16>}, {pipeline_mode = #tpu.pipeline_mode<synchronous>, transform_indices = @transform_2, window_bounds = array<i64: 1, 16>}, {pipeline_mode = #tpu.pipeline_mode<synchronous>, transform_indices = @transform_3, window_bounds = array<i64: 1, 16>}, {transform_indices = @transform_4, window_bounds = array<i64: 512, 16>}]} {
    %c0 = arith.constant 0 : index
    %c0_0 = arith.constant 0 : index
    %0 = vector.load %arg1[%c0, %c0_0] : memref<512x27xbf16, #tpu.memory_space<vmem>>, vector<512x27xbf16>
    %c0_1 = arith.constant 0 : index
    %c0_2 = arith.constant 0 : index
    %1 = vector.load %arg2[%c0_1, %c0_2] : memref<27x16xbf16, #tpu.memory_space<vmem>>, vector<27x16xbf16>
    %cst = arith.constant dense<0.000000e+00> : vector<512x16xf32>
    %2 = tpu.matmul %0, %1, %cst {dimension_numbers = #tpu.dot_dimension_numbers<[1], [0], [0], [1], [0, 0, 1, 1], [], []>} : vector<512x27xbf16>, vector<27x16xbf16>, vector<512x16xf32> -> vector<512x16xf32>
    %c0_3 = arith.constant 0 : index
    %c0_4 = arith.constant 0 : index
    %3 = vector.load %arg3[%c0_3, %c0_4] : memref<1x16xf32, #tpu.memory_space<vmem>>, vector<1x16xf32>
    %4 = vector.broadcast %3 : vector<1x16xf32> to vector<512x16xf32>
    %5 = arith.mulf %2, %4 : vector<512x16xf32>
    %c0_5 = arith.constant 0 : index
    %c0_6 = arith.constant 0 : index
    %6 = vector.load %arg4[%c0_5, %c0_6] : memref<1x16xf32, #tpu.memory_space<vmem>>, vector<1x16xf32>
    %7 = vector.broadcast %6 : vector<1x16xf32> to vector<512x16xf32>
    %8 = arith.addf %5, %7 : vector<512x16xf32>
    %cst_7 = arith.constant 0.000000e+00 : f32
    %9 = vector.broadcast %cst_7 : f32 to vector<512x16xf32>
    %10 = arith.maximumf %8, %9 : vector<512x16xf32>
    %11 = arith.truncf %10 : vector<512x16xf32> to vector<512x16xbf16>
    %c0_8 = arith.constant 0 : index
    %c0_9 = arith.constant 0 : index
    %12 = vector.load %arg5[%c0_8, %c0_9] : memref<512x16xbf16, #tpu.memory_space<vmem>>, vector<512x16xbf16>
    tpu.vector_store %arg5[%c0_8, %c0_9], %11 {strides = array<i32>} : memref<512x16xbf16, #tpu.memory_space<vmem>>, vector<512x16xbf16>,
    return
  }
  func.func @transform_0(%arg0: i32) -> (i32, i32) {
    %c0_i32 = arith.constant 0 : i32
    %c0_i32_0 = arith.constant 0 : i32
    return %arg0, %c0_i32 : i32, i32
  }
  func.func @transform_1(%arg0: i32) -> (i32, i32) {
    %c0_i32 = arith.constant 0 : i32
    %c0_i32_0 = arith.constant 0 : i32
    %c0_i32_1 = arith.constant 0 : i32
    return %c0_i32, %c0_i32_0 : i32, i32
  }
  func.func @transform_2(%arg0: i32) -> (i32, i32) {
    %c0_i32 = arith.constant 0 : i32
    %c0_i32_0 = arith.constant 0 : i32
    %c0_i32_1 = arith.constant 0 : i32
    return %c0_i32, %c0_i32_0 : i32, i32
  }
  func.func @transform_3(%arg0: i32) -> (i32, i32) {
    %c0_i32 = arith.constant 0 : i32
    %c0_i32_0 = arith.constant 0 : i32
    %c0_i32_1 = arith.constant 0 : i32
    return %c0_i32, %c0_i32_0 : i32, i32
  }
  func.func @transform_4(%arg0: i32) -> (i32, i32) {
    %c0_i32 = arith.constant 0 : i32
    %c0_i32_0 = arith.constant 0 : i32
    return %arg0, %c0_i32 : i32, i32
  }
}

module attributes {stable_mosaic.version = 11 : i64} {
  func.func @_maxpool_kernel(%arg0: i32, %arg1: memref<9x128x16xbf16, #tpu.memory_space<vmem>>, %arg2: memref<128x16xbf16, #tpu.memory_space<vmem>>) attributes {dimension_semantics = [#tpu.dimension_semantics<parallel>], iteration_bounds = array<i64: 1>, scalar_prefetch = 0 : i64, scratch_operands = 0 : i64, tpu.core_type = #tpu.core_type<tc>, window_params = [{transform_indices = @transform_0, window_bounds = array<i64: 9, 128, 16>}, {transform_indices = @transform_1, window_bounds = array<i64: 128, 16>}]} {
    %c0 = arith.constant 0 : index
    %c0_0 = arith.constant 0 : index
    %c0_1 = arith.constant 0 : index
    %0 = vector.load %arg1[%c0, %c0_0, %c0_1] : memref<9x128x16xbf16, #tpu.memory_space<vmem>>, vector<1x128x16xbf16>
    %1 = vector.shape_cast %0 : vector<1x128x16xbf16> to vector<128x16xbf16>
    %2 = arith.extf %1 : vector<128x16xbf16> to vector<128x16xf32>
    %c1 = arith.constant 1 : index
    %c0_2 = arith.constant 0 : index
    %c0_3 = arith.constant 0 : index
    %3 = vector.load %arg1[%c1, %c0_2, %c0_3] : memref<9x128x16xbf16, #tpu.memory_space<vmem>>, vector<1x128x16xbf16>
    %4 = vector.shape_cast %3 : vector<1x128x16xbf16> to vector<128x16xbf16>
    %5 = arith.extf %4 : vector<128x16xbf16> to vector<128x16xf32>
    %6 = arith.maximumf %2, %5 : vector<128x16xf32>
    %c2 = arith.constant 2 : index
    %c0_4 = arith.constant 0 : index
    %c0_5 = arith.constant 0 : index
    %7 = vector.load %arg1[%c2, %c0_4, %c0_5] : memref<9x128x16xbf16, #tpu.memory_space<vmem>>, vector<1x128x16xbf16>
    %8 = vector.shape_cast %7 : vector<1x128x16xbf16> to vector<128x16xbf16>
    %9 = arith.extf %8 : vector<128x16xbf16> to vector<128x16xf32>
    %10 = arith.maximumf %6, %9 : vector<128x16xf32>
    %c3 = arith.constant 3 : index
    %c0_6 = arith.constant 0 : index
    %c0_7 = arith.constant 0 : index
    %11 = vector.load %arg1[%c3, %c0_6, %c0_7] : memref<9x128x16xbf16, #tpu.memory_space<vmem>>, vector<1x128x16xbf16>
    %12 = vector.shape_cast %11 : vector<1x128x16xbf16> to vector<128x16xbf16>
    %13 = arith.extf %12 : vector<128x16xbf16> to vector<128x16xf32>
    %14 = arith.maximumf %10, %13 : vector<128x16xf32>
    %c4 = arith.constant 4 : index
    %c0_8 = arith.constant 0 : index
    %c0_9 = arith.constant 0 : index
    %15 = vector.load %arg1[%c4, %c0_8, %c0_9] : memref<9x128x16xbf16, #tpu.memory_space<vmem>>, vector<1x128x16xbf16>
    %16 = vector.shape_cast %15 : vector<1x128x16xbf16> to vector<128x16xbf16>
    %17 = arith.extf %16 : vector<128x16xbf16> to vector<128x16xf32>
    %18 = arith.maximumf %14, %17 : vector<128x16xf32>
    %c5 = arith.constant 5 : index
    %c0_10 = arith.constant 0 : index
    %c0_11 = arith.constant 0 : index
    %19 = vector.load %arg1[%c5, %c0_10, %c0_11] : memref<9x128x16xbf16, #tpu.memory_space<vmem>>, vector<1x128x16xbf16>
    %20 = vector.shape_cast %19 : vector<1x128x16xbf16> to vector<128x16xbf16>
    %21 = arith.extf %20 : vector<128x16xbf16> to vector<128x16xf32>
    %22 = arith.maximumf %18, %21 : vector<128x16xf32>
    %c6 = arith.constant 6 : index
    %c0_12 = arith.constant 0 : index
    %c0_13 = arith.constant 0 : index
    %23 = vector.load %arg1[%c6, %c0_12, %c0_13] : memref<9x128x16xbf16, #tpu.memory_space<vmem>>, vector<1x128x16xbf16>
    %24 = vector.shape_cast %23 : vector<1x128x16xbf16> to vector<128x16xbf16>
    %25 = arith.extf %24 : vector<128x16xbf16> to vector<128x16xf32>
    %26 = arith.maximumf %22, %25 : vector<128x16xf32>
    %c7 = arith.constant 7 : index
    %c0_14 = arith.constant 0 : index
    %c0_15 = arith.constant 0 : index
    %27 = vector.load %arg1[%c7, %c0_14, %c0_15] : memref<9x128x16xbf16, #tpu.memory_space<vmem>>, vector<1x128x16xbf16>
    %28 = vector.shape_cast %27 : vector<1x128x16xbf16> to vector<128x16xbf16>
    %29 = arith.extf %28 : vector<128x16xbf16> to vector<128x16xf32>
    %30 = arith.maximumf %26, %29 : vector<128x16xf32>
    %c8 = arith.constant 8 : index
    %c0_16 = arith.constant 0 : index
    %c0_17 = arith.constant 0 : index
    %31 = vector.load %arg1[%c8, %c0_16, %c0_17] : memref<9x128x16xbf16, #tpu.memory_space<vmem>>, vector<1x128x16xbf16>
    %32 = vector.shape_cast %31 : vector<1x128x16xbf16> to vector<128x16xbf16>
    %33 = arith.extf %32 : vector<128x16xbf16> to vector<128x16xf32>
    %34 = arith.maximumf %30, %33 : vector<128x16xf32>
    %35 = arith.truncf %34 : vector<128x16xf32> to vector<128x16xbf16>
    %c0_18 = arith.constant 0 : index
    %c0_19 = arith.constant 0 : index
    %36 = vector.load %arg2[%c0_18, %c0_19] : memref<128x16xbf16, #tpu.memory_space<vmem>>, vector<128x16xbf16>
    tpu.vector_store %arg2[%c0_18, %c0_19], %35 {strides = array<i32>} : memref<128x16xbf16, #tpu.memory_space<vmem>>, vector<128x16xbf16>,
    return
  }
  func.func @transform_0(%arg0: i32) -> (i32, i32, i32) {
    %c0_i32 = arith.constant 0 : i32
    %c0_i32_0 = arith.constant 0 : i32
    %c0_i32_1 = arith.constant 0 : i32
    return %c0_i32, %arg0, %c0_i32_0 : i32, i32, i32
  }
  func.func @transform_1(%arg0: i32) -> (i32, i32) {
    %c0_i32 = arith.constant 0 : i32
    %c0_i32_0 = arith.constant 0 : i32
    return %arg0, %c0_i32 : i32, i32
  }
}

module attributes {stable_mosaic.version = 11 : i64} {
  func.func @_matmul_bn_kernel(%arg0: i32, %arg1: memref<128x16xbf16, #tpu.memory_space<vmem>>, %arg2: memref<16x16xbf16, #tpu.memory_space<vmem>>, %arg3: memref<1x16xf32, #tpu.memory_space<vmem>>, %arg4: memref<1x16xf32, #tpu.memory_space<vmem>>, %arg5: memref<128x16xbf16, #tpu.memory_space<vmem>>) attributes {dimension_semantics = [#tpu.dimension_semantics<parallel>], iteration_bounds = array<i64: 1>, scalar_prefetch = 0 : i64, scratch_operands = 0 : i64, tpu.core_type = #tpu.core_type<tc>, window_params = [{transform_indices = @transform_0, window_bounds = array<i64: 128, 16>}, {pipeline_mode = #tpu.pipeline_mode<synchronous>, transform_indices = @transform_1, window_bounds = array<i64: 16, 16>}, {pipeline_mode = #tpu.pipeline_mode<synchronous>, transform_indices = @transform_2, window_bounds = array<i64: 1, 16>}, {pipeline_mode = #tpu.pipeline_mode<synchronous>, transform_indices = @transform_3, window_bounds = array<i64: 1, 16>}, {transform_indices = @transform_4, window_bounds = array<i64: 128, 16>}]} {
    %c0 = arith.constant 0 : index
    %c0_0 = arith.constant 0 : index
    %0 = vector.load %arg1[%c0, %c0_0] : memref<128x16xbf16, #tpu.memory_space<vmem>>, vector<128x16xbf16>
    %c0_1 = arith.constant 0 : index
    %c0_2 = arith.constant 0 : index
    %1 = vector.load %arg2[%c0_1, %c0_2] : memref<16x16xbf16, #tpu.memory_space<vmem>>, vector<16x16xbf16>
    %cst = arith.constant dense<0.000000e+00> : vector<128x16xf32>
    %2 = tpu.matmul %0, %1, %cst {dimension_numbers = #tpu.dot_dimension_numbers<[1], [0], [0], [1], [0, 0, 1, 1], [], []>} : vector<128x16xbf16>, vector<16x16xbf16>, vector<128x16xf32> -> vector<128x16xf32>
    %c0_3 = arith.constant 0 : index
    %c0_4 = arith.constant 0 : index
    %3 = vector.load %arg3[%c0_3, %c0_4] : memref<1x16xf32, #tpu.memory_space<vmem>>, vector<1x16xf32>
    %4 = vector.broadcast %3 : vector<1x16xf32> to vector<128x16xf32>
    %5 = arith.mulf %2, %4 : vector<128x16xf32>
    %c0_5 = arith.constant 0 : index
    %c0_6 = arith.constant 0 : index
    %6 = vector.load %arg4[%c0_5, %c0_6] : memref<1x16xf32, #tpu.memory_space<vmem>>, vector<1x16xf32>
    %7 = vector.broadcast %6 : vector<1x16xf32> to vector<128x16xf32>
    %8 = arith.addf %5, %7 : vector<128x16xf32>
    %cst_7 = arith.constant 0.000000e+00 : f32
    %9 = vector.broadcast %cst_7 : f32 to vector<128x16xf32>
    %10 = arith.maximumf %8, %9 : vector<128x16xf32>
    %11 = arith.truncf %10 : vector<128x16xf32> to vector<128x16xbf16>
    %c0_8 = arith.constant 0 : index
    %c0_9 = arith.constant 0 : index
    %12 = vector.load %arg5[%c0_8, %c0_9] : memref<128x16xbf16, #tpu.memory_space<vmem>>, vector<128x16xbf16>
    tpu.vector_store %arg5[%c0_8, %c0_9], %11 {strides = array<i32>} : memref<128x16xbf16, #tpu.memory_space<vmem>>, vector<128x16xbf16>,
    return
  }
  func.func @transform_0(%arg0: i32) -> (i32, i32) {
    %c0_i32 = arith.constant 0 : i32
    %c0_i32_0 = arith.constant 0 : i32
    return %arg0, %c0_i32 : i32, i32
  }
  func.func @transform_1(%arg0: i32) -> (i32, i32) {
    %c0_i32 = arith.constant 0 : i32
    %c0_i32_0 = arith.constant 0 : i32
    %c0_i32_1 = arith.constant 0 : i32
    return %c0_i32, %c0_i32_0 : i32, i32
  }
  func.func @transform_2(%arg0: i32) -> (i32, i32) {
    %c0_i32 = arith.constant 0 : i32
    %c0_i32_0 = arith.constant 0 : i32
    %c0_i32_1 = arith.constant 0 : i32
    return %c0_i32, %c0_i32_0 : i32, i32
  }
  func.func @transform_3(%arg0: i32) -> (i32, i32) {
    %c0_i32 = arith.constant 0 : i32
    %c0_i32_0 = arith.constant 0 : i32
    %c0_i32_1 = arith.constant 0 : i32
    return %c0_i32, %c0_i32_0 : i32, i32
  }
  func.func @transform_4(%arg0: i32) -> (i32, i32) {
    %c0_i32 = arith.constant 0 : i32
    %c0_i32_0 = arith.constant 0 : i32
    return %arg0, %c0_i32 : i32, i32
  }
}

module attributes {stable_mosaic.version = 11 : i64} {
  func.func @_dw_pw_bn_kernel(%arg0: i32, %arg1: memref<9x32x16xbf16, #tpu.memory_space<vmem>>, %arg2: memref<9x1x16xf32, #tpu.memory_space<vmem>>, %arg3: memref<1x16xf32, #tpu.memory_space<vmem>>, %arg4: memref<1x16xf32, #tpu.memory_space<vmem>>, %arg5: memref<16x16xbf16, #tpu.memory_space<vmem>>, %arg6: memref<1x16xf32, #tpu.memory_space<vmem>>, %arg7: memref<1x16xf32, #tpu.memory_space<vmem>>, %arg8: memref<32x16xbf16, #tpu.memory_space<vmem>>) attributes {dimension_semantics = [#tpu.dimension_semantics<parallel>], iteration_bounds = array<i64: 1>, scalar_prefetch = 0 : i64, scratch_operands = 0 : i64, tpu.core_type = #tpu.core_type<tc>, window_params = [{transform_indices = @transform_0, window_bounds = array<i64: 9, 32, 16>}, {pipeline_mode = #tpu.pipeline_mode<synchronous>, transform_indices = @transform_1, window_bounds = array<i64: 9, 1, 16>}, {pipeline_mode = #tpu.pipeline_mode<synchronous>, transform_indices = @transform_2, window_bounds = array<i64: 1, 16>}, {pipeline_mode = #tpu.pipeline_mode<synchronous>, transform_indices = @transform_3, window_bounds = array<i64: 1, 16>}, {pipeline_mode = #tpu.pipeline_mode<synchronous>, transform_indices = @transform_4, window_bounds = array<i64: 16, 16>}, {pipeline_mode = #tpu.pipeline_mode<synchronous>, transform_indices = @transform_5, window_bounds = array<i64: 1, 16>}, {pipeline_mode = #tpu.pipeline_mode<synchronous>, transform_indices = @transform_6, window_bounds = array<i64: 1, 16>}, {transform_indices = @transform_7, window_bounds = array<i64: 32, 16>}]} {
    %c0 = arith.constant 0 : index
    %c0_0 = arith.constant 0 : index
    %c0_1 = arith.constant 0 : index
    %0 = vector.load %arg1[%c0, %c0_0, %c0_1] : memref<9x32x16xbf16, #tpu.memory_space<vmem>>, vector<1x32x16xbf16>
    %1 = vector.shape_cast %0 : vector<1x32x16xbf16> to vector<32x16xbf16>
    %2 = arith.extf %1 : vector<32x16xbf16> to vector<32x16xf32>
    %c0_2 = arith.constant 0 : index
    %c0_3 = arith.constant 0 : index
    %c0_4 = arith.constant 0 : index
    %3 = vector.load %arg2[%c0_2, %c0_3, %c0_4] : memref<9x1x16xf32, #tpu.memory_space<vmem>>, vector<1x1x16xf32>
    %4 = vector.shape_cast %3 : vector<1x1x16xf32> to vector<1x16xf32>
    %5 = vector.broadcast %4 : vector<1x16xf32> to vector<32x16xf32>
    %6 = arith.mulf %2, %5 : vector<32x16xf32>
    %c1 = arith.constant 1 : index
    %c0_5 = arith.constant 0 : index
    %c0_6 = arith.constant 0 : index
    %7 = vector.load %arg1[%c1, %c0_5, %c0_6] : memref<9x32x16xbf16, #tpu.memory_space<vmem>>, vector<1x32x16xbf16>
    %8 = vector.shape_cast %7 : vector<1x32x16xbf16> to vector<32x16xbf16>
    %9 = arith.extf %8 : vector<32x16xbf16> to vector<32x16xf32>
    %c1_7 = arith.constant 1 : index
    %c0_8 = arith.constant 0 : index
    %c0_9 = arith.constant 0 : index
    %10 = vector.load %arg2[%c1_7, %c0_8, %c0_9] : memref<9x1x16xf32, #tpu.memory_space<vmem>>, vector<1x1x16xf32>
    %11 = vector.shape_cast %10 : vector<1x1x16xf32> to vector<1x16xf32>
    %12 = vector.broadcast %11 : vector<1x16xf32> to vector<32x16xf32>
    %13 = arith.mulf %9, %12 : vector<32x16xf32>
    %14 = arith.addf %6, %13 : vector<32x16xf32>
    %c2 = arith.constant 2 : index
    %c0_10 = arith.constant 0 : index
    %c0_11 = arith.constant 0 : index
    %15 = vector.load %arg1[%c2, %c0_10, %c0_11] : memref<9x32x16xbf16, #tpu.memory_space<vmem>>, vector<1x32x16xbf16>
    %16 = vector.shape_cast %15 : vector<1x32x16xbf16> to vector<32x16xbf16>
    %17 = arith.extf %16 : vector<32x16xbf16> to vector<32x16xf32>
    %c2_12 = arith.constant 2 : index
    %c0_13 = arith.constant 0 : index
    %c0_14 = arith.constant 0 : index
    %18 = vector.load %arg2[%c2_12, %c0_13, %c0_14] : memref<9x1x16xf32, #tpu.memory_space<vmem>>, vector<1x1x16xf32>
    %19 = vector.shape_cast %18 : vector<1x1x16xf32> to vector<1x16xf32>
    %20 = vector.broadcast %19 : vector<1x16xf32> to vector<32x16xf32>
    %21 = arith.mulf %17, %20 : vector<32x16xf32>
    %22 = arith.addf %14, %21 : vector<32x16xf32>
    %c3 = arith.constant 3 : index
    %c0_15 = arith.constant 0 : index
    %c0_16 = arith.constant 0 : index
    %23 = vector.load %arg1[%c3, %c0_15, %c0_16] : memref<9x32x16xbf16, #tpu.memory_space<vmem>>, vector<1x32x16xbf16>
    %24 = vector.shape_cast %23 : vector<1x32x16xbf16> to vector<32x16xbf16>
    %25 = arith.extf %24 : vector<32x16xbf16> to vector<32x16xf32>
    %c3_17 = arith.constant 3 : index
    %c0_18 = arith.constant 0 : index
    %c0_19 = arith.constant 0 : index
    %26 = vector.load %arg2[%c3_17, %c0_18, %c0_19] : memref<9x1x16xf32, #tpu.memory_space<vmem>>, vector<1x1x16xf32>
    %27 = vector.shape_cast %26 : vector<1x1x16xf32> to vector<1x16xf32>
    %28 = vector.broadcast %27 : vector<1x16xf32> to vector<32x16xf32>
    %29 = arith.mulf %25, %28 : vector<32x16xf32>
    %30 = arith.addf %22, %29 : vector<32x16xf32>
    %c4 = arith.constant 4 : index
    %c0_20 = arith.constant 0 : index
    %c0_21 = arith.constant 0 : index
    %31 = vector.load %arg1[%c4, %c0_20, %c0_21] : memref<9x32x16xbf16, #tpu.memory_space<vmem>>, vector<1x32x16xbf16>
    %32 = vector.shape_cast %31 : vector<1x32x16xbf16> to vector<32x16xbf16>
    %33 = arith.extf %32 : vector<32x16xbf16> to vector<32x16xf32>
    %c4_22 = arith.constant 4 : index
    %c0_23 = arith.constant 0 : index
    %c0_24 = arith.constant 0 : index
    %34 = vector.load %arg2[%c4_22, %c0_23, %c0_24] : memref<9x1x16xf32, #tpu.memory_space<vmem>>, vector<1x1x16xf32>
    %35 = vector.shape_cast %34 : vector<1x1x16xf32> to vector<1x16xf32>
    %36 = vector.broadcast %35 : vector<1x16xf32> to vector<32x16xf32>
    %37 = arith.mulf %33, %36 : vector<32x16xf32>
    %38 = arith.addf %30, %37 : vector<32x16xf32>
    %c5 = arith.constant 5 : index
    %c0_25 = arith.constant 0 : index
    %c0_26 = arith.constant 0 : index
    %39 = vector.load %arg1[%c5, %c0_25, %c0_26] : memref<9x32x16xbf16, #tpu.memory_space<vmem>>, vector<1x32x16xbf16>
    %40 = vector.shape_cast %39 : vector<1x32x16xbf16> to vector<32x16xbf16>
    %41 = arith.extf %40 : vector<32x16xbf16> to vector<32x16xf32>
    %c5_27 = arith.constant 5 : index
    %c0_28 = arith.constant 0 : index
    %c0_29 = arith.constant 0 : index
    %42 = vector.load %arg2[%c5_27, %c0_28, %c0_29] : memref<9x1x16xf32, #tpu.memory_space<vmem>>, vector<1x1x16xf32>
    %43 = vector.shape_cast %42 : vector<1x1x16xf32> to vector<1x16xf32>
    %44 = vector.broadcast %43 : vector<1x16xf32> to vector<32x16xf32>
    %45 = arith.mulf %41, %44 : vector<32x16xf32>
    %46 = arith.addf %38, %45 : vector<32x16xf32>
    %c6 = arith.constant 6 : index
    %c0_30 = arith.constant 0 : index
    %c0_31 = arith.constant 0 : index
    %47 = vector.load %arg1[%c6, %c0_30, %c0_31] : memref<9x32x16xbf16, #tpu.memory_space<vmem>>, vector<1x32x16xbf16>
    %48 = vector.shape_cast %47 : vector<1x32x16xbf16> to vector<32x16xbf16>
    %49 = arith.extf %48 : vector<32x16xbf16> to vector<32x16xf32>
    %c6_32 = arith.constant 6 : index
    %c0_33 = arith.constant 0 : index
    %c0_34 = arith.constant 0 : index
    %50 = vector.load %arg2[%c6_32, %c0_33, %c0_34] : memref<9x1x16xf32, #tpu.memory_space<vmem>>, vector<1x1x16xf32>
    %51 = vector.shape_cast %50 : vector<1x1x16xf32> to vector<1x16xf32>
    %52 = vector.broadcast %51 : vector<1x16xf32> to vector<32x16xf32>
    %53 = arith.mulf %49, %52 : vector<32x16xf32>
    %54 = arith.addf %46, %53 : vector<32x16xf32>
    %c7 = arith.constant 7 : index
    %c0_35 = arith.constant 0 : index
    %c0_36 = arith.constant 0 : index
    %55 = vector.load %arg1[%c7, %c0_35, %c0_36] : memref<9x32x16xbf16, #tpu.memory_space<vmem>>, vector<1x32x16xbf16>
    %56 = vector.shape_cast %55 : vector<1x32x16xbf16> to vector<32x16xbf16>
    %57 = arith.extf %56 : vector<32x16xbf16> to vector<32x16xf32>
    %c7_37 = arith.constant 7 : index
    %c0_38 = arith.constant 0 : index
    %c0_39 = arith.constant 0 : index
    %58 = vector.load %arg2[%c7_37, %c0_38, %c0_39] : memref<9x1x16xf32, #tpu.memory_space<vmem>>, vector<1x1x16xf32>
    %59 = vector.shape_cast %58 : vector<1x1x16xf32> to vector<1x16xf32>
    %60 = vector.broadcast %59 : vector<1x16xf32> to vector<32x16xf32>
    %61 = arith.mulf %57, %60 : vector<32x16xf32>
    %62 = arith.addf %54, %61 : vector<32x16xf32>
    %c8 = arith.constant 8 : index
    %c0_40 = arith.constant 0 : index
    %c0_41 = arith.constant 0 : index
    %63 = vector.load %arg1[%c8, %c0_40, %c0_41] : memref<9x32x16xbf16, #tpu.memory_space<vmem>>, vector<1x32x16xbf16>
    %64 = vector.shape_cast %63 : vector<1x32x16xbf16> to vector<32x16xbf16>
    %65 = arith.extf %64 : vector<32x16xbf16> to vector<32x16xf32>
    %c8_42 = arith.constant 8 : index
    %c0_43 = arith.constant 0 : index
    %c0_44 = arith.constant 0 : index
    %66 = vector.load %arg2[%c8_42, %c0_43, %c0_44] : memref<9x1x16xf32, #tpu.memory_space<vmem>>, vector<1x1x16xf32>
    %67 = vector.shape_cast %66 : vector<1x1x16xf32> to vector<1x16xf32>
    %68 = vector.broadcast %67 : vector<1x16xf32> to vector<32x16xf32>
    %69 = arith.mulf %65, %68 : vector<32x16xf32>
    %70 = arith.addf %62, %69 : vector<32x16xf32>
    %c0_45 = arith.constant 0 : index
    %c0_46 = arith.constant 0 : index
    %71 = vector.load %arg3[%c0_45, %c0_46] : memref<1x16xf32, #tpu.memory_space<vmem>>, vector<1x16xf32>
    %72 = vector.broadcast %71 : vector<1x16xf32> to vector<32x16xf32>
    %73 = arith.mulf %70, %72 : vector<32x16xf32>
    %c0_47 = arith.constant 0 : index
    %c0_48 = arith.constant 0 : index
    %74 = vector.load %arg4[%c0_47, %c0_48] : memref<1x16xf32, #tpu.memory_space<vmem>>, vector<1x16xf32>
    %75 = vector.broadcast %74 : vector<1x16xf32> to vector<32x16xf32>
    %76 = arith.addf %73, %75 : vector<32x16xf32>
    %77 = arith.truncf %76 : vector<32x16xf32> to vector<32x16xbf16>
    %c0_49 = arith.constant 0 : index
    %c0_50 = arith.constant 0 : index
    %78 = vector.load %arg5[%c0_49, %c0_50] : memref<16x16xbf16, #tpu.memory_space<vmem>>, vector<16x16xbf16>
    %cst = arith.constant dense<0.000000e+00> : vector<32x16xf32>
    %79 = tpu.matmul %77, %78, %cst {dimension_numbers = #tpu.dot_dimension_numbers<[1], [0], [0], [1], [0, 0, 1, 1], [], []>} : vector<32x16xbf16>, vector<16x16xbf16>, vector<32x16xf32> -> vector<32x16xf32>
    %c0_51 = arith.constant 0 : index
    %c0_52 = arith.constant 0 : index
    %80 = vector.load %arg6[%c0_51, %c0_52] : memref<1x16xf32, #tpu.memory_space<vmem>>, vector<1x16xf32>
    %81 = vector.broadcast %80 : vector<1x16xf32> to vector<32x16xf32>
    %82 = arith.mulf %79, %81 : vector<32x16xf32>
    %c0_53 = arith.constant 0 : index
    %c0_54 = arith.constant 0 : index
    %83 = vector.load %arg7[%c0_53, %c0_54] : memref<1x16xf32, #tpu.memory_space<vmem>>, vector<1x16xf32>
    %84 = vector.broadcast %83 : vector<1x16xf32> to vector<32x16xf32>
    %85 = arith.addf %82, %84 : vector<32x16xf32>
    %cst_55 = arith.constant 0.000000e+00 : f32
    %86 = vector.broadcast %cst_55 : f32 to vector<32x16xf32>
    %87 = arith.maximumf %85, %86 : vector<32x16xf32>
    %88 = arith.truncf %87 : vector<32x16xf32> to vector<32x16xbf16>
    %c0_56 = arith.constant 0 : index
    %c0_57 = arith.constant 0 : index
    %89 = vector.load %arg8[%c0_56, %c0_57] : memref<32x16xbf16, #tpu.memory_space<vmem>>, vector<32x16xbf16>
    tpu.vector_store %arg8[%c0_56, %c0_57], %88 {strides = array<i32>} : memref<32x16xbf16, #tpu.memory_space<vmem>>, vector<32x16xbf16>,
    return
  }
  func.func @transform_0(%arg0: i32) -> (i32, i32, i32) {
    %c0_i32 = arith.constant 0 : i32
    %c0_i32_0 = arith.constant 0 : i32
    %c0_i32_1 = arith.constant 0 : i32
    return %c0_i32, %arg0, %c0_i32_0 : i32, i32, i32
  }
  func.func @transform_1(%arg0: i32) -> (i32, i32, i32) {
    %c0_i32 = arith.constant 0 : i32
    %c0_i32_0 = arith.constant 0 : i32
    %c0_i32_1 = arith.constant 0 : i32
    %c0_i32_2 = arith.constant 0 : i32
    return %c0_i32, %c0_i32_0, %c0_i32_1 : i32, i32, i32
  }
  func.func @transform_2(%arg0: i32) -> (i32, i32) {
    %c0_i32 = arith.constant 0 : i32
    %c0_i32_0 = arith.constant 0 : i32
    %c0_i32_1 = arith.constant 0 : i32
    return %c0_i32, %c0_i32_0 : i32, i32
  }
  func.func @transform_3(%arg0: i32) -> (i32, i32) {
    %c0_i32 = arith.constant 0 : i32
    %c0_i32_0 = arith.constant 0 : i32
    %c0_i32_1 = arith.constant 0 : i32
    return %c0_i32, %c0_i32_0 : i32, i32
  }
  func.func @transform_4(%arg0: i32) -> (i32, i32) {
    %c0_i32 = arith.constant 0 : i32
    %c0_i32_0 = arith.constant 0 : i32
    %c0_i32_1 = arith.constant 0 : i32
    return %c0_i32, %c0_i32_0 : i32, i32
  }
  func.func @transform_5(%arg0: i32) -> (i32, i32) {
    %c0_i32 = arith.constant 0 : i32
    %c0_i32_0 = arith.constant 0 : i32
    %c0_i32_1 = arith.constant 0 : i32
    return %c0_i32, %c0_i32_0 : i32, i32
  }
  func.func @transform_6(%arg0: i32) -> (i32, i32) {
    %c0_i32 = arith.constant 0 : i32
    %c0_i32_0 = arith.constant 0 : i32
    %c0_i32_1 = arith.constant 0 : i32
    return %c0_i32, %c0_i32_0 : i32, i32
  }
  func.func @transform_7(%arg0: i32) -> (i32, i32) {
    %c0_i32 = arith.constant 0 : i32
    %c0_i32_0 = arith.constant 0 : i32
    return %arg0, %c0_i32 : i32, i32
  }
}

module attributes {stable_mosaic.version = 11 : i64} {
  func.func @_branch2_s1_kernel(%arg0: i32, %arg1: memref<1x42x16xbf16, #tpu.memory_space<vmem>>, %arg2: memref<42x1xf32, #tpu.memory_space<vmem>>, %arg3: memref<16x16xbf16, #tpu.memory_space<vmem>>, %arg4: memref<1x16xf32, #tpu.memory_space<vmem>>, %arg5: memref<1x16xf32, #tpu.memory_space<vmem>>, %arg6: memref<9x1x16xf32, #tpu.memory_space<vmem>>, %arg7: memref<1x16xf32, #tpu.memory_space<vmem>>, %arg8: memref<1x16xf32, #tpu.memory_space<vmem>>, %arg9: memref<16x16xbf16, #tpu.memory_space<vmem>>, %arg10: memref<1x16xf32, #tpu.memory_space<vmem>>, %arg11: memref<1x16xf32, #tpu.memory_space<vmem>>, %arg12: memref<1x24x16xbf16, #tpu.memory_space<vmem>>) attributes {dimension_semantics = [#tpu.dimension_semantics<parallel>], iteration_bounds = array<i64: 2>, scalar_prefetch = 0 : i64, scratch_operands = 0 : i64, tpu.core_type = #tpu.core_type<tc>, window_params = [{transform_indices = @transform_0, window_bounds = array<i64: 1, 42, 16>}, {pipeline_mode = #tpu.pipeline_mode<synchronous>, transform_indices = @transform_1, window_bounds = array<i64: 42, 1>}, {pipeline_mode = #tpu.pipeline_mode<synchronous>, transform_indices = @transform_2, window_bounds = array<i64: 16, 16>}, {pipeline_mode = #tpu.pipeline_mode<synchronous>, transform_indices = @transform_3, window_bounds = array<i64: 1, 16>}, {pipeline_mode = #tpu.pipeline_mode<synchronous>, transform_indices = @transform_4, window_bounds = array<i64: 1, 16>}, {pipeline_mode = #tpu.pipeline_mode<synchronous>, transform_indices = @transform_5, window_bounds = array<i64: 9, 1, 16>}, {pipeline_mode = #tpu.pipeline_mode<synchronous>, transform_indices = @transform_6, window_bounds = array<i64: 1, 16>}, {pipeline_mode = #tpu.pipeline_mode<synchronous>, transform_indices = @transform_7, window_bounds = array<i64: 1, 16>}, {pipeline_mode = #tpu.pipeline_mode<synchronous>, transform_indices = @transform_8, window_bounds = array<i64: 16, 16>}, {pipeline_mode = #tpu.pipeline_mode<synchronous>, transform_indices = @transform_9, window_bounds = array<i64: 1, 16>}, {pipeline_mode = #tpu.pipeline_mode<synchronous>, transform_indices = @transform_10, window_bounds = array<i64: 1, 16>}, {transform_indices = @transform_11, window_bounds = array<i64: 1, 24, 16>}]} {
    %c0 = arith.constant 0 : index
    %c0_0 = arith.constant 0 : index
    %c0_1 = arith.constant 0 : index
    %0 = vector.load %arg1[%c0, %c0_0, %c0_1] : memref<1x42x16xbf16, #tpu.memory_space<vmem>>, vector<1x42x16xbf16>
    %1 = vector.shape_cast %0 : vector<1x42x16xbf16> to vector<42x16xbf16>
    %c0_2 = arith.constant 0 : index
    %c0_3 = arith.constant 0 : index
    %2 = vector.load %arg3[%c0_2, %c0_3] : memref<16x16xbf16, #tpu.memory_space<vmem>>, vector<16x16xbf16>
    %cst = arith.constant dense<0.000000e+00> : vector<42x16xf32>
    %3 = tpu.matmul %1, %2, %cst {dimension_numbers = #tpu.dot_dimension_numbers<[1], [0], [0], [1], [0, 0, 1, 1], [], []>} : vector<42x16xbf16>, vector<16x16xbf16>, vector<42x16xf32> -> vector<42x16xf32>
    %c0_4 = arith.constant 0 : index
    %c0_5 = arith.constant 0 : index
    %4 = vector.load %arg4[%c0_4, %c0_5] : memref<1x16xf32, #tpu.memory_space<vmem>>, vector<1x16xf32>
    %5 = vector.broadcast %4 : vector<1x16xf32> to vector<42x16xf32>
    %6 = arith.mulf %3, %5 : vector<42x16xf32>
    %c0_6 = arith.constant 0 : index
    %c0_7 = arith.constant 0 : index
    %7 = vector.load %arg5[%c0_6, %c0_7] : memref<1x16xf32, #tpu.memory_space<vmem>>, vector<1x16xf32>
    %8 = vector.broadcast %7 : vector<1x16xf32> to vector<42x16xf32>
    %9 = arith.addf %6, %8 : vector<42x16xf32>
    %cst_8 = arith.constant 0.000000e+00 : f32
    %10 = vector.broadcast %cst_8 : f32 to vector<42x16xf32>
    %11 = arith.maximumf %9, %10 : vector<42x16xf32>
    %c0_9 = arith.constant 0 : index
    %c0_10 = arith.constant 0 : index
    %12 = vector.load %arg2[%c0_9, %c0_10] : memref<42x1xf32, #tpu.memory_space<vmem>>, vector<42x1xf32>
    %13 = vector.broadcast %12 : vector<42x1xf32> to vector<42x16xf32>
    %14 = arith.mulf %11, %13 : vector<42x16xf32>
    %15 = vector.extract_strided_slice %14 {offsets = [0, 0], sizes = [24, 16], strides = [1, 1]} : vector<42x16xf32> to vector<24x16xf32>
    %c0_11 = arith.constant 0 : index
    %c0_12 = arith.constant 0 : index
    %c0_13 = arith.constant 0 : index
    %16 = vector.load %arg6[%c0_11, %c0_12, %c0_13] : memref<9x1x16xf32, #tpu.memory_space<vmem>>, vector<1x1x16xf32>
    %17 = vector.shape_cast %16 : vector<1x1x16xf32> to vector<1x16xf32>
    %18 = vector.broadcast %17 : vector<1x16xf32> to vector<24x16xf32>
    %19 = arith.mulf %15, %18 : vector<24x16xf32>
    %20 = vector.extract_strided_slice %14 {offsets = [1, 0], sizes = [24, 16], strides = [1, 1]} : vector<42x16xf32> to vector<24x16xf32>
    %c1 = arith.constant 1 : index
    %c0_14 = arith.constant 0 : index
    %c0_15 = arith.constant 0 : index
    %21 = vector.load %arg6[%c1, %c0_14, %c0_15] : memref<9x1x16xf32, #tpu.memory_space<vmem>>, vector<1x1x16xf32>
    %22 = vector.shape_cast %21 : vector<1x1x16xf32> to vector<1x16xf32>
    %23 = vector.broadcast %22 : vector<1x16xf32> to vector<24x16xf32>
    %24 = arith.mulf %20, %23 : vector<24x16xf32>
    %25 = arith.addf %19, %24 : vector<24x16xf32>
    %26 = vector.extract_strided_slice %14 {offsets = [2, 0], sizes = [24, 16], strides = [1, 1]} : vector<42x16xf32> to vector<24x16xf32>
    %c2 = arith.constant 2 : index
    %c0_16 = arith.constant 0 : index
    %c0_17 = arith.constant 0 : index
    %27 = vector.load %arg6[%c2, %c0_16, %c0_17] : memref<9x1x16xf32, #tpu.memory_space<vmem>>, vector<1x1x16xf32>
    %28 = vector.shape_cast %27 : vector<1x1x16xf32> to vector<1x16xf32>
    %29 = vector.broadcast %28 : vector<1x16xf32> to vector<24x16xf32>
    %30 = arith.mulf %26, %29 : vector<24x16xf32>
    %31 = arith.addf %25, %30 : vector<24x16xf32>
    %32 = vector.extract_strided_slice %14 {offsets = [6, 0], sizes = [24, 16], strides = [1, 1]} : vector<42x16xf32> to vector<24x16xf32>
    %c3 = arith.constant 3 : index
    %c0_18 = arith.constant 0 : index
    %c0_19 = arith.constant 0 : index
    %33 = vector.load %arg6[%c3, %c0_18, %c0_19] : memref<9x1x16xf32, #tpu.memory_space<vmem>>, vector<1x1x16xf32>
    %34 = vector.shape_cast %33 : vector<1x1x16xf32> to vector<1x16xf32>
    %35 = vector.broadcast %34 : vector<1x16xf32> to vector<24x16xf32>
    %36 = arith.mulf %32, %35 : vector<24x16xf32>
    %37 = arith.addf %31, %36 : vector<24x16xf32>
    %38 = vector.extract_strided_slice %14 {offsets = [7, 0], sizes = [24, 16], strides = [1, 1]} : vector<42x16xf32> to vector<24x16xf32>
    %c4 = arith.constant 4 : index
    %c0_20 = arith.constant 0 : index
    %c0_21 = arith.constant 0 : index
    %39 = vector.load %arg6[%c4, %c0_20, %c0_21] : memref<9x1x16xf32, #tpu.memory_space<vmem>>, vector<1x1x16xf32>
    %40 = vector.shape_cast %39 : vector<1x1x16xf32> to vector<1x16xf32>
    %41 = vector.broadcast %40 : vector<1x16xf32> to vector<24x16xf32>
    %42 = arith.mulf %38, %41 : vector<24x16xf32>
    %43 = arith.addf %37, %42 : vector<24x16xf32>
    %44 = vector.extract_strided_slice %14 {offsets = [8, 0], sizes = [24, 16], strides = [1, 1]} : vector<42x16xf32> to vector<24x16xf32>
    %c5 = arith.constant 5 : index
    %c0_22 = arith.constant 0 : index
    %c0_23 = arith.constant 0 : index
    %45 = vector.load %arg6[%c5, %c0_22, %c0_23] : memref<9x1x16xf32, #tpu.memory_space<vmem>>, vector<1x1x16xf32>
    %46 = vector.shape_cast %45 : vector<1x1x16xf32> to vector<1x16xf32>
    %47 = vector.broadcast %46 : vector<1x16xf32> to vector<24x16xf32>
    %48 = arith.mulf %44, %47 : vector<24x16xf32>
    %49 = arith.addf %43, %48 : vector<24x16xf32>
    %50 = vector.extract_strided_slice %14 {offsets = [12, 0], sizes = [24, 16], strides = [1, 1]} : vector<42x16xf32> to vector<24x16xf32>
    %c6 = arith.constant 6 : index
    %c0_24 = arith.constant 0 : index
    %c0_25 = arith.constant 0 : index
    %51 = vector.load %arg6[%c6, %c0_24, %c0_25] : memref<9x1x16xf32, #tpu.memory_space<vmem>>, vector<1x1x16xf32>
    %52 = vector.shape_cast %51 : vector<1x1x16xf32> to vector<1x16xf32>
    %53 = vector.broadcast %52 : vector<1x16xf32> to vector<24x16xf32>
    %54 = arith.mulf %50, %53 : vector<24x16xf32>
    %55 = arith.addf %49, %54 : vector<24x16xf32>
    %56 = vector.extract_strided_slice %14 {offsets = [13, 0], sizes = [24, 16], strides = [1, 1]} : vector<42x16xf32> to vector<24x16xf32>
    %c7 = arith.constant 7 : index
    %c0_26 = arith.constant 0 : index
    %c0_27 = arith.constant 0 : index
    %57 = vector.load %arg6[%c7, %c0_26, %c0_27] : memref<9x1x16xf32, #tpu.memory_space<vmem>>, vector<1x1x16xf32>
    %58 = vector.shape_cast %57 : vector<1x1x16xf32> to vector<1x16xf32>
    %59 = vector.broadcast %58 : vector<1x16xf32> to vector<24x16xf32>
    %60 = arith.mulf %56, %59 : vector<24x16xf32>
    %61 = arith.addf %55, %60 : vector<24x16xf32>
    %62 = vector.extract_strided_slice %14 {offsets = [14, 0], sizes = [24, 16], strides = [1, 1]} : vector<42x16xf32> to vector<24x16xf32>
    %c8 = arith.constant 8 : index
    %c0_28 = arith.constant 0 : index
    %c0_29 = arith.constant 0 : index
    %63 = vector.load %arg6[%c8, %c0_28, %c0_29] : memref<9x1x16xf32, #tpu.memory_space<vmem>>, vector<1x1x16xf32>
    %64 = vector.shape_cast %63 : vector<1x1x16xf32> to vector<1x16xf32>
    %65 = vector.broadcast %64 : vector<1x16xf32> to vector<24x16xf32>
    %66 = arith.mulf %62, %65 : vector<24x16xf32>
    %67 = arith.addf %61, %66 : vector<24x16xf32>
    %c0_30 = arith.constant 0 : index
    %c0_31 = arith.constant 0 : index
    %68 = vector.load %arg7[%c0_30, %c0_31] : memref<1x16xf32, #tpu.memory_space<vmem>>, vector<1x16xf32>
    %69 = vector.broadcast %68 : vector<1x16xf32> to vector<24x16xf32>
    %70 = arith.mulf %67, %69 : vector<24x16xf32>
    %c0_32 = arith.constant 0 : index
    %c0_33 = arith.constant 0 : index
    %71 = vector.load %arg8[%c0_32, %c0_33] : memref<1x16xf32, #tpu.memory_space<vmem>>, vector<1x16xf32>
    %72 = vector.broadcast %71 : vector<1x16xf32> to vector<24x16xf32>
    %73 = arith.addf %70, %72 : vector<24x16xf32>
    %74 = arith.truncf %73 : vector<24x16xf32> to vector<24x16xbf16>
    %c0_34 = arith.constant 0 : index
    %c0_35 = arith.constant 0 : index
    %75 = vector.load %arg9[%c0_34, %c0_35] : memref<16x16xbf16, #tpu.memory_space<vmem>>, vector<16x16xbf16>
    %cst_36 = arith.constant dense<0.000000e+00> : vector<24x16xf32>
    %76 = tpu.matmul %74, %75, %cst_36 {dimension_numbers = #tpu.dot_dimension_numbers<[1], [0], [0], [1], [0, 0, 1, 1], [], []>} : vector<24x16xbf16>, vector<16x16xbf16>, vector<24x16xf32> -> vector<24x16xf32>
    %c0_37 = arith.constant 0 : index
    %c0_38 = arith.constant 0 : index
    %77 = vector.load %arg10[%c0_37, %c0_38] : memref<1x16xf32, #tpu.memory_space<vmem>>, vector<1x16xf32>
    %78 = vector.broadcast %77 : vector<1x16xf32> to vector<24x16xf32>
    %79 = arith.mulf %76, %78 : vector<24x16xf32>
    %c0_39 = arith.constant 0 : index
    %c0_40 = arith.constant 0 : index
    %80 = vector.load %arg11[%c0_39, %c0_40] : memref<1x16xf32, #tpu.memory_space<vmem>>, vector<1x16xf32>
    %81 = vector.broadcast %80 : vector<1x16xf32> to vector<24x16xf32>
    %82 = arith.addf %79, %81 : vector<24x16xf32>
    %cst_41 = arith.constant 0.000000e+00 : f32
    %83 = vector.broadcast %cst_41 : f32 to vector<24x16xf32>
    %84 = arith.maximumf %82, %83 : vector<24x16xf32>
    %85 = arith.truncf %84 : vector<24x16xf32> to vector<24x16xbf16>
    %c0_42 = arith.constant 0 : index
    %c0_43 = arith.constant 0 : index
    %c0_44 = arith.constant 0 : index
    %86 = vector.load %arg12[%c0_42, %c0_43, %c0_44] : memref<1x24x16xbf16, #tpu.memory_space<vmem>>, vector<1x24x16xbf16>
    %87 = vector.shape_cast %86 : vector<1x24x16xbf16> to vector<24x16xbf16>
    %88 = vector.shape_cast %85 : vector<24x16xbf16> to vector<1x24x16xbf16>
    tpu.vector_store %arg12[%c0_42, %c0_43, %c0_44], %88 {strides = array<i32>} : memref<1x24x16xbf16, #tpu.memory_space<vmem>>, vector<1x24x16xbf16>,
    return
  }
  func.func @transform_0(%arg0: i32) -> (i32, i32, i32) {
    %c0_i32 = arith.constant 0 : i32
    %c0_i32_0 = arith.constant 0 : i32
    %c0_i32_1 = arith.constant 0 : i32
    return %arg0, %c0_i32, %c0_i32_0 : i32, i32, i32
  }
  func.func @transform_1(%arg0: i32) -> (i32, i32) {
    %c0_i32 = arith.constant 0 : i32
    %c0_i32_0 = arith.constant 0 : i32
    %c0_i32_1 = arith.constant 0 : i32
    return %c0_i32, %c0_i32_0 : i32, i32
  }
  func.func @transform_2(%arg0: i32) -> (i32, i32) {
    %c0_i32 = arith.constant 0 : i32
    %c0_i32_0 = arith.constant 0 : i32
    %c0_i32_1 = arith.constant 0 : i32
    return %c0_i32, %c0_i32_0 : i32, i32
  }
  func.func @transform_3(%arg0: i32) -> (i32, i32) {
    %c0_i32 = arith.constant 0 : i32
    %c0_i32_0 = arith.constant 0 : i32
    %c0_i32_1 = arith.constant 0 : i32
    return %c0_i32, %c0_i32_0 : i32, i32
  }
  func.func @transform_4(%arg0: i32) -> (i32, i32) {
    %c0_i32 = arith.constant 0 : i32
    %c0_i32_0 = arith.constant 0 : i32
    %c0_i32_1 = arith.constant 0 : i32
    return %c0_i32, %c0_i32_0 : i32, i32
  }
  func.func @transform_5(%arg0: i32) -> (i32, i32, i32) {
    %c0_i32 = arith.constant 0 : i32
    %c0_i32_0 = arith.constant 0 : i32
    %c0_i32_1 = arith.constant 0 : i32
    %c0_i32_2 = arith.constant 0 : i32
    return %c0_i32, %c0_i32_0, %c0_i32_1 : i32, i32, i32
  }
  func.func @transform_6(%arg0: i32) -> (i32, i32) {
    %c0_i32 = arith.constant 0 : i32
    %c0_i32_0 = arith.constant 0 : i32
    %c0_i32_1 = arith.constant 0 : i32
    return %c0_i32, %c0_i32_0 : i32, i32
  }
  func.func @transform_7(%arg0: i32) -> (i32, i32) {
    %c0_i32 = arith.constant 0 : i32
    %c0_i32_0 = arith.constant 0 : i32
    %c0_i32_1 = arith.constant 0 : i32
    return %c0_i32, %c0_i32_0 : i32, i32
  }
  func.func @transform_8(%arg0: i32) -> (i32, i32) {
    %c0_i32 = arith.constant 0 : i32
    %c0_i32_0 = arith.constant 0 : i32
    %c0_i32_1 = arith.constant 0 : i32
    return %c0_i32, %c0_i32_0 : i32, i32
  }
  func.func @transform_9(%arg0: i32) -> (i32, i32) {
    %c0_i32 = arith.constant 0 : i32
    %c0_i32_0 = arith.constant 0 : i32
    %c0_i32_1 = arith.constant 0 : i32
    return %c0_i32, %c0_i32_0 : i32, i32
  }
  func.func @transform_10(%arg0: i32) -> (i32, i32) {
    %c0_i32 = arith.constant 0 : i32
    %c0_i32_0 = arith.constant 0 : i32
    %c0_i32_1 = arith.constant 0 : i32
    return %c0_i32, %c0_i32_0 : i32, i32
  }
  func.func @transform_11(%arg0: i32) -> (i32, i32, i32) {
    %c0_i32 = arith.constant 0 : i32
    %c0_i32_0 = arith.constant 0 : i32
    %c0_i32_1 = arith.constant 0 : i32
    return %arg0, %c0_i32, %c0_i32_0 : i32, i32, i32
  }
}

module attributes {stable_mosaic.version = 11 : i64} {
  func.func @_dw_pw_bn_kernel(%arg0: i32, %arg1: memref<9x8x32xbf16, #tpu.memory_space<vmem>>, %arg2: memref<9x1x32xf32, #tpu.memory_space<vmem>>, %arg3: memref<1x32xf32, #tpu.memory_space<vmem>>, %arg4: memref<1x32xf32, #tpu.memory_space<vmem>>, %arg5: memref<32x32xbf16, #tpu.memory_space<vmem>>, %arg6: memref<1x32xf32, #tpu.memory_space<vmem>>, %arg7: memref<1x32xf32, #tpu.memory_space<vmem>>, %arg8: memref<8x32xbf16, #tpu.memory_space<vmem>>) attributes {dimension_semantics = [#tpu.dimension_semantics<parallel>], iteration_bounds = array<i64: 1>, scalar_prefetch = 0 : i64, scratch_operands = 0 : i64, tpu.core_type = #tpu.core_type<tc>, window_params = [{transform_indices = @transform_0, window_bounds = array<i64: 9, 8, 32>}, {pipeline_mode = #tpu.pipeline_mode<synchronous>, transform_indices = @transform_1, window_bounds = array<i64: 9, 1, 32>}, {pipeline_mode = #tpu.pipeline_mode<synchronous>, transform_indices = @transform_2, window_bounds = array<i64: 1, 32>}, {pipeline_mode = #tpu.pipeline_mode<synchronous>, transform_indices = @transform_3, window_bounds = array<i64: 1, 32>}, {pipeline_mode = #tpu.pipeline_mode<synchronous>, transform_indices = @transform_4, window_bounds = array<i64: 32, 32>}, {pipeline_mode = #tpu.pipeline_mode<synchronous>, transform_indices = @transform_5, window_bounds = array<i64: 1, 32>}, {pipeline_mode = #tpu.pipeline_mode<synchronous>, transform_indices = @transform_6, window_bounds = array<i64: 1, 32>}, {transform_indices = @transform_7, window_bounds = array<i64: 8, 32>}]} {
    %c0 = arith.constant 0 : index
    %c0_0 = arith.constant 0 : index
    %c0_1 = arith.constant 0 : index
    %0 = vector.load %arg1[%c0, %c0_0, %c0_1] : memref<9x8x32xbf16, #tpu.memory_space<vmem>>, vector<1x8x32xbf16>
    %1 = vector.shape_cast %0 : vector<1x8x32xbf16> to vector<8x32xbf16>
    %2 = arith.extf %1 : vector<8x32xbf16> to vector<8x32xf32>
    %c0_2 = arith.constant 0 : index
    %c0_3 = arith.constant 0 : index
    %c0_4 = arith.constant 0 : index
    %3 = vector.load %arg2[%c0_2, %c0_3, %c0_4] : memref<9x1x32xf32, #tpu.memory_space<vmem>>, vector<1x1x32xf32>
    %4 = vector.shape_cast %3 : vector<1x1x32xf32> to vector<1x32xf32>
    %5 = vector.broadcast %4 : vector<1x32xf32> to vector<8x32xf32>
    %6 = arith.mulf %2, %5 : vector<8x32xf32>
    %c1 = arith.constant 1 : index
    %c0_5 = arith.constant 0 : index
    %c0_6 = arith.constant 0 : index
    %7 = vector.load %arg1[%c1, %c0_5, %c0_6] : memref<9x8x32xbf16, #tpu.memory_space<vmem>>, vector<1x8x32xbf16>
    %8 = vector.shape_cast %7 : vector<1x8x32xbf16> to vector<8x32xbf16>
    %9 = arith.extf %8 : vector<8x32xbf16> to vector<8x32xf32>
    %c1_7 = arith.constant 1 : index
    %c0_8 = arith.constant 0 : index
    %c0_9 = arith.constant 0 : index
    %10 = vector.load %arg2[%c1_7, %c0_8, %c0_9] : memref<9x1x32xf32, #tpu.memory_space<vmem>>, vector<1x1x32xf32>
    %11 = vector.shape_cast %10 : vector<1x1x32xf32> to vector<1x32xf32>
    %12 = vector.broadcast %11 : vector<1x32xf32> to vector<8x32xf32>
    %13 = arith.mulf %9, %12 : vector<8x32xf32>
    %14 = arith.addf %6, %13 : vector<8x32xf32>
    %c2 = arith.constant 2 : index
    %c0_10 = arith.constant 0 : index
    %c0_11 = arith.constant 0 : index
    %15 = vector.load %arg1[%c2, %c0_10, %c0_11] : memref<9x8x32xbf16, #tpu.memory_space<vmem>>, vector<1x8x32xbf16>
    %16 = vector.shape_cast %15 : vector<1x8x32xbf16> to vector<8x32xbf16>
    %17 = arith.extf %16 : vector<8x32xbf16> to vector<8x32xf32>
    %c2_12 = arith.constant 2 : index
    %c0_13 = arith.constant 0 : index
    %c0_14 = arith.constant 0 : index
    %18 = vector.load %arg2[%c2_12, %c0_13, %c0_14] : memref<9x1x32xf32, #tpu.memory_space<vmem>>, vector<1x1x32xf32>
    %19 = vector.shape_cast %18 : vector<1x1x32xf32> to vector<1x32xf32>
    %20 = vector.broadcast %19 : vector<1x32xf32> to vector<8x32xf32>
    %21 = arith.mulf %17, %20 : vector<8x32xf32>
    %22 = arith.addf %14, %21 : vector<8x32xf32>
    %c3 = arith.constant 3 : index
    %c0_15 = arith.constant 0 : index
    %c0_16 = arith.constant 0 : index
    %23 = vector.load %arg1[%c3, %c0_15, %c0_16] : memref<9x8x32xbf16, #tpu.memory_space<vmem>>, vector<1x8x32xbf16>
    %24 = vector.shape_cast %23 : vector<1x8x32xbf16> to vector<8x32xbf16>
    %25 = arith.extf %24 : vector<8x32xbf16> to vector<8x32xf32>
    %c3_17 = arith.constant 3 : index
    %c0_18 = arith.constant 0 : index
    %c0_19 = arith.constant 0 : index
    %26 = vector.load %arg2[%c3_17, %c0_18, %c0_19] : memref<9x1x32xf32, #tpu.memory_space<vmem>>, vector<1x1x32xf32>
    %27 = vector.shape_cast %26 : vector<1x1x32xf32> to vector<1x32xf32>
    %28 = vector.broadcast %27 : vector<1x32xf32> to vector<8x32xf32>
    %29 = arith.mulf %25, %28 : vector<8x32xf32>
    %30 = arith.addf %22, %29 : vector<8x32xf32>
    %c4 = arith.constant 4 : index
    %c0_20 = arith.constant 0 : index
    %c0_21 = arith.constant 0 : index
    %31 = vector.load %arg1[%c4, %c0_20, %c0_21] : memref<9x8x32xbf16, #tpu.memory_space<vmem>>, vector<1x8x32xbf16>
    %32 = vector.shape_cast %31 : vector<1x8x32xbf16> to vector<8x32xbf16>
    %33 = arith.extf %32 : vector<8x32xbf16> to vector<8x32xf32>
    %c4_22 = arith.constant 4 : index
    %c0_23 = arith.constant 0 : index
    %c0_24 = arith.constant 0 : index
    %34 = vector.load %arg2[%c4_22, %c0_23, %c0_24] : memref<9x1x32xf32, #tpu.memory_space<vmem>>, vector<1x1x32xf32>
    %35 = vector.shape_cast %34 : vector<1x1x32xf32> to vector<1x32xf32>
    %36 = vector.broadcast %35 : vector<1x32xf32> to vector<8x32xf32>
    %37 = arith.mulf %33, %36 : vector<8x32xf32>
    %38 = arith.addf %30, %37 : vector<8x32xf32>
    %c5 = arith.constant 5 : index
    %c0_25 = arith.constant 0 : index
    %c0_26 = arith.constant 0 : index
    %39 = vector.load %arg1[%c5, %c0_25, %c0_26] : memref<9x8x32xbf16, #tpu.memory_space<vmem>>, vector<1x8x32xbf16>
    %40 = vector.shape_cast %39 : vector<1x8x32xbf16> to vector<8x32xbf16>
    %41 = arith.extf %40 : vector<8x32xbf16> to vector<8x32xf32>
    %c5_27 = arith.constant 5 : index
    %c0_28 = arith.constant 0 : index
    %c0_29 = arith.constant 0 : index
    %42 = vector.load %arg2[%c5_27, %c0_28, %c0_29] : memref<9x1x32xf32, #tpu.memory_space<vmem>>, vector<1x1x32xf32>
    %43 = vector.shape_cast %42 : vector<1x1x32xf32> to vector<1x32xf32>
    %44 = vector.broadcast %43 : vector<1x32xf32> to vector<8x32xf32>
    %45 = arith.mulf %41, %44 : vector<8x32xf32>
    %46 = arith.addf %38, %45 : vector<8x32xf32>
    %c6 = arith.constant 6 : index
    %c0_30 = arith.constant 0 : index
    %c0_31 = arith.constant 0 : index
    %47 = vector.load %arg1[%c6, %c0_30, %c0_31] : memref<9x8x32xbf16, #tpu.memory_space<vmem>>, vector<1x8x32xbf16>
    %48 = vector.shape_cast %47 : vector<1x8x32xbf16> to vector<8x32xbf16>
    %49 = arith.extf %48 : vector<8x32xbf16> to vector<8x32xf32>
    %c6_32 = arith.constant 6 : index
    %c0_33 = arith.constant 0 : index
    %c0_34 = arith.constant 0 : index
    %50 = vector.load %arg2[%c6_32, %c0_33, %c0_34] : memref<9x1x32xf32, #tpu.memory_space<vmem>>, vector<1x1x32xf32>
    %51 = vector.shape_cast %50 : vector<1x1x32xf32> to vector<1x32xf32>
    %52 = vector.broadcast %51 : vector<1x32xf32> to vector<8x32xf32>
    %53 = arith.mulf %49, %52 : vector<8x32xf32>
    %54 = arith.addf %46, %53 : vector<8x32xf32>
    %c7 = arith.constant 7 : index
    %c0_35 = arith.constant 0 : index
    %c0_36 = arith.constant 0 : index
    %55 = vector.load %arg1[%c7, %c0_35, %c0_36] : memref<9x8x32xbf16, #tpu.memory_space<vmem>>, vector<1x8x32xbf16>
    %56 = vector.shape_cast %55 : vector<1x8x32xbf16> to vector<8x32xbf16>
    %57 = arith.extf %56 : vector<8x32xbf16> to vector<8x32xf32>
    %c7_37 = arith.constant 7 : index
    %c0_38 = arith.constant 0 : index
    %c0_39 = arith.constant 0 : index
    %58 = vector.load %arg2[%c7_37, %c0_38, %c0_39] : memref<9x1x32xf32, #tpu.memory_space<vmem>>, vector<1x1x32xf32>
    %59 = vector.shape_cast %58 : vector<1x1x32xf32> to vector<1x32xf32>
    %60 = vector.broadcast %59 : vector<1x32xf32> to vector<8x32xf32>
    %61 = arith.mulf %57, %60 : vector<8x32xf32>
    %62 = arith.addf %54, %61 : vector<8x32xf32>
    %c8 = arith.constant 8 : index
    %c0_40 = arith.constant 0 : index
    %c0_41 = arith.constant 0 : index
    %63 = vector.load %arg1[%c8, %c0_40, %c0_41] : memref<9x8x32xbf16, #tpu.memory_space<vmem>>, vector<1x8x32xbf16>
    %64 = vector.shape_cast %63 : vector<1x8x32xbf16> to vector<8x32xbf16>
    %65 = arith.extf %64 : vector<8x32xbf16> to vector<8x32xf32>
    %c8_42 = arith.constant 8 : index
    %c0_43 = arith.constant 0 : index
    %c0_44 = arith.constant 0 : index
    %66 = vector.load %arg2[%c8_42, %c0_43, %c0_44] : memref<9x1x32xf32, #tpu.memory_space<vmem>>, vector<1x1x32xf32>
    %67 = vector.shape_cast %66 : vector<1x1x32xf32> to vector<1x32xf32>
    %68 = vector.broadcast %67 : vector<1x32xf32> to vector<8x32xf32>
    %69 = arith.mulf %65, %68 : vector<8x32xf32>
    %70 = arith.addf %62, %69 : vector<8x32xf32>
    %c0_45 = arith.constant 0 : index
    %c0_46 = arith.constant 0 : index
    %71 = vector.load %arg3[%c0_45, %c0_46] : memref<1x32xf32, #tpu.memory_space<vmem>>, vector<1x32xf32>
    %72 = vector.broadcast %71 : vector<1x32xf32> to vector<8x32xf32>
    %73 = arith.mulf %70, %72 : vector<8x32xf32>
    %c0_47 = arith.constant 0 : index
    %c0_48 = arith.constant 0 : index
    %74 = vector.load %arg4[%c0_47, %c0_48] : memref<1x32xf32, #tpu.memory_space<vmem>>, vector<1x32xf32>
    %75 = vector.broadcast %74 : vector<1x32xf32> to vector<8x32xf32>
    %76 = arith.addf %73, %75 : vector<8x32xf32>
    %77 = arith.truncf %76 : vector<8x32xf32> to vector<8x32xbf16>
    %c0_49 = arith.constant 0 : index
    %c0_50 = arith.constant 0 : index
    %78 = vector.load %arg5[%c0_49, %c0_50] : memref<32x32xbf16, #tpu.memory_space<vmem>>, vector<32x32xbf16>
    %cst = arith.constant dense<0.000000e+00> : vector<8x32xf32>
    %79 = tpu.matmul %77, %78, %cst {dimension_numbers = #tpu.dot_dimension_numbers<[1], [0], [0], [1], [0, 0, 1, 1], [], []>} : vector<8x32xbf16>, vector<32x32xbf16>, vector<8x32xf32> -> vector<8x32xf32>
    %c0_51 = arith.constant 0 : index
    %c0_52 = arith.constant 0 : index
    %80 = vector.load %arg6[%c0_51, %c0_52] : memref<1x32xf32, #tpu.memory_space<vmem>>, vector<1x32xf32>
    %81 = vector.broadcast %80 : vector<1x32xf32> to vector<8x32xf32>
    %82 = arith.mulf %79, %81 : vector<8x32xf32>
    %c0_53 = arith.constant 0 : index
    %c0_54 = arith.constant 0 : index
    %83 = vector.load %arg7[%c0_53, %c0_54] : memref<1x32xf32, #tpu.memory_space<vmem>>, vector<1x32xf32>
    %84 = vector.broadcast %83 : vector<1x32xf32> to vector<8x32xf32>
    %85 = arith.addf %82, %84 : vector<8x32xf32>
    %cst_55 = arith.constant 0.000000e+00 : f32
    %86 = vector.broadcast %cst_55 : f32 to vector<8x32xf32>
    %87 = arith.maximumf %85, %86 : vector<8x32xf32>
    %88 = arith.truncf %87 : vector<8x32xf32> to vector<8x32xbf16>
    %c0_56 = arith.constant 0 : index
    %c0_57 = arith.constant 0 : index
    %89 = vector.load %arg8[%c0_56, %c0_57] : memref<8x32xbf16, #tpu.memory_space<vmem>>, vector<8x32xbf16>
    tpu.vector_store %arg8[%c0_56, %c0_57], %88 {strides = array<i32>} : memref<8x32xbf16, #tpu.memory_space<vmem>>, vector<8x32xbf16>,
    return
  }
  func.func @transform_0(%arg0: i32) -> (i32, i32, i32) {
    %c0_i32 = arith.constant 0 : i32
    %c0_i32_0 = arith.constant 0 : i32
    %c0_i32_1 = arith.constant 0 : i32
    return %c0_i32, %arg0, %c0_i32_0 : i32, i32, i32
  }
  func.func @transform_1(%arg0: i32) -> (i32, i32, i32) {
    %c0_i32 = arith.constant 0 : i32
    %c0_i32_0 = arith.constant 0 : i32
    %c0_i32_1 = arith.constant 0 : i32
    %c0_i32_2 = arith.constant 0 : i32
    return %c0_i32, %c0_i32_0, %c0_i32_1 : i32, i32, i32
  }
  func.func @transform_2(%arg0: i32) -> (i32, i32) {
    %c0_i32 = arith.constant 0 : i32
    %c0_i32_0 = arith.constant 0 : i32
    %c0_i32_1 = arith.constant 0 : i32
    return %c0_i32, %c0_i32_0 : i32, i32
  }
  func.func @transform_3(%arg0: i32) -> (i32, i32) {
    %c0_i32 = arith.constant 0 : i32
    %c0_i32_0 = arith.constant 0 : i32
    %c0_i32_1 = arith.constant 0 : i32
    return %c0_i32, %c0_i32_0 : i32, i32
  }
  func.func @transform_4(%arg0: i32) -> (i32, i32) {
    %c0_i32 = arith.constant 0 : i32
    %c0_i32_0 = arith.constant 0 : i32
    %c0_i32_1 = arith.constant 0 : i32
    return %c0_i32, %c0_i32_0 : i32, i32
  }
  func.func @transform_5(%arg0: i32) -> (i32, i32) {
    %c0_i32 = arith.constant 0 : i32
    %c0_i32_0 = arith.constant 0 : i32
    %c0_i32_1 = arith.constant 0 : i32
    return %c0_i32, %c0_i32_0 : i32, i32
  }
  func.func @transform_6(%arg0: i32) -> (i32, i32) {
    %c0_i32 = arith.constant 0 : i32
    %c0_i32_0 = arith.constant 0 : i32
    %c0_i32_1 = arith.constant 0 : i32
    return %c0_i32, %c0_i32_0 : i32, i32
  }
  func.func @transform_7(%arg0: i32) -> (i32, i32) {
    %c0_i32 = arith.constant 0 : i32
    %c0_i32_0 = arith.constant 0 : i32
    return %arg0, %c0_i32 : i32, i32
  }
}

module attributes {stable_mosaic.version = 11 : i64} {
  func.func @_matmul_bn_kernel(%arg0: i32, %arg1: memref<32x32xbf16, #tpu.memory_space<vmem>>, %arg2: memref<32x32xbf16, #tpu.memory_space<vmem>>, %arg3: memref<1x32xf32, #tpu.memory_space<vmem>>, %arg4: memref<1x32xf32, #tpu.memory_space<vmem>>, %arg5: memref<32x32xbf16, #tpu.memory_space<vmem>>) attributes {dimension_semantics = [#tpu.dimension_semantics<parallel>], iteration_bounds = array<i64: 1>, scalar_prefetch = 0 : i64, scratch_operands = 0 : i64, tpu.core_type = #tpu.core_type<tc>, window_params = [{transform_indices = @transform_0, window_bounds = array<i64: 32, 32>}, {pipeline_mode = #tpu.pipeline_mode<synchronous>, transform_indices = @transform_1, window_bounds = array<i64: 32, 32>}, {pipeline_mode = #tpu.pipeline_mode<synchronous>, transform_indices = @transform_2, window_bounds = array<i64: 1, 32>}, {pipeline_mode = #tpu.pipeline_mode<synchronous>, transform_indices = @transform_3, window_bounds = array<i64: 1, 32>}, {transform_indices = @transform_4, window_bounds = array<i64: 32, 32>}]} {
    %c0 = arith.constant 0 : index
    %c0_0 = arith.constant 0 : index
    %0 = vector.load %arg1[%c0, %c0_0] : memref<32x32xbf16, #tpu.memory_space<vmem>>, vector<32x32xbf16>
    %c0_1 = arith.constant 0 : index
    %c0_2 = arith.constant 0 : index
    %1 = vector.load %arg2[%c0_1, %c0_2] : memref<32x32xbf16, #tpu.memory_space<vmem>>, vector<32x32xbf16>
    %cst = arith.constant dense<0.000000e+00> : vector<32x32xf32>
    %2 = tpu.matmul %0, %1, %cst {dimension_numbers = #tpu.dot_dimension_numbers<[1], [0], [0], [1], [0, 0, 1, 1], [], []>} : vector<32x32xbf16>, vector<32x32xbf16>, vector<32x32xf32> -> vector<32x32xf32>
    %c0_3 = arith.constant 0 : index
    %c0_4 = arith.constant 0 : index
    %3 = vector.load %arg3[%c0_3, %c0_4] : memref<1x32xf32, #tpu.memory_space<vmem>>, vector<1x32xf32>
    %4 = vector.broadcast %3 : vector<1x32xf32> to vector<32x32xf32>
    %5 = arith.mulf %2, %4 : vector<32x32xf32>
    %c0_5 = arith.constant 0 : index
    %c0_6 = arith.constant 0 : index
    %6 = vector.load %arg4[%c0_5, %c0_6] : memref<1x32xf32, #tpu.memory_space<vmem>>, vector<1x32xf32>
    %7 = vector.broadcast %6 : vector<1x32xf32> to vector<32x32xf32>
    %8 = arith.addf %5, %7 : vector<32x32xf32>
    %cst_7 = arith.constant 0.000000e+00 : f32
    %9 = vector.broadcast %cst_7 : f32 to vector<32x32xf32>
    %10 = arith.maximumf %8, %9 : vector<32x32xf32>
    %11 = arith.truncf %10 : vector<32x32xf32> to vector<32x32xbf16>
    %c0_8 = arith.constant 0 : index
    %c0_9 = arith.constant 0 : index
    %12 = vector.load %arg5[%c0_8, %c0_9] : memref<32x32xbf16, #tpu.memory_space<vmem>>, vector<32x32xbf16>
    tpu.vector_store %arg5[%c0_8, %c0_9], %11 {strides = array<i32>} : memref<32x32xbf16, #tpu.memory_space<vmem>>, vector<32x32xbf16>,
    return
  }
  func.func @transform_0(%arg0: i32) -> (i32, i32) {
    %c0_i32 = arith.constant 0 : i32
    %c0_i32_0 = arith.constant 0 : i32
    return %arg0, %c0_i32 : i32, i32
  }
  func.func @transform_1(%arg0: i32) -> (i32, i32) {
    %c0_i32 = arith.constant 0 : i32
    %c0_i32_0 = arith.constant 0 : i32
    %c0_i32_1 = arith.constant 0 : i32
    return %c0_i32, %c0_i32_0 : i32, i32
  }
  func.func @transform_2(%arg0: i32) -> (i32, i32) {
    %c0_i32 = arith.constant 0 : i32
    %c0_i32_0 = arith.constant 0 : i32
    %c0_i32_1 = arith.constant 0 : i32
    return %c0_i32, %c0_i32_0 : i32, i32
  }
  func.func @transform_3(%arg0: i32) -> (i32, i32) {
    %c0_i32 = arith.constant 0 : i32
    %c0_i32_0 = arith.constant 0 : i32
    %c0_i32_1 = arith.constant 0 : i32
    return %c0_i32, %c0_i32_0 : i32, i32
  }
  func.func @transform_4(%arg0: i32) -> (i32, i32) {
    %c0_i32 = arith.constant 0 : i32
    %c0_i32_0 = arith.constant 0 : i32
    return %arg0, %c0_i32 : i32, i32
  }
}

module attributes {stable_mosaic.version = 11 : i64} {
  func.func @_branch2_s1_kernel(%arg0: i32, %arg1: memref<1x20x32xbf16, #tpu.memory_space<vmem>>, %arg2: memref<20x1xf32, #tpu.memory_space<vmem>>, %arg3: memref<32x32xbf16, #tpu.memory_space<vmem>>, %arg4: memref<1x32xf32, #tpu.memory_space<vmem>>, %arg5: memref<1x32xf32, #tpu.memory_space<vmem>>, %arg6: memref<9x1x32xf32, #tpu.memory_space<vmem>>, %arg7: memref<1x32xf32, #tpu.memory_space<vmem>>, %arg8: memref<1x32xf32, #tpu.memory_space<vmem>>, %arg9: memref<32x32xbf16, #tpu.memory_space<vmem>>, %arg10: memref<1x32xf32, #tpu.memory_space<vmem>>, %arg11: memref<1x32xf32, #tpu.memory_space<vmem>>, %arg12: memref<1x8x32xbf16, #tpu.memory_space<vmem>>) attributes {dimension_semantics = [#tpu.dimension_semantics<parallel>], iteration_bounds = array<i64: 2>, scalar_prefetch = 0 : i64, scratch_operands = 0 : i64, tpu.core_type = #tpu.core_type<tc>, window_params = [{transform_indices = @transform_0, window_bounds = array<i64: 1, 20, 32>}, {pipeline_mode = #tpu.pipeline_mode<synchronous>, transform_indices = @transform_1, window_bounds = array<i64: 20, 1>}, {pipeline_mode = #tpu.pipeline_mode<synchronous>, transform_indices = @transform_2, window_bounds = array<i64: 32, 32>}, {pipeline_mode = #tpu.pipeline_mode<synchronous>, transform_indices = @transform_3, window_bounds = array<i64: 1, 32>}, {pipeline_mode = #tpu.pipeline_mode<synchronous>, transform_indices = @transform_4, window_bounds = array<i64: 1, 32>}, {pipeline_mode = #tpu.pipeline_mode<synchronous>, transform_indices = @transform_5, window_bounds = array<i64: 9, 1, 32>}, {pipeline_mode = #tpu.pipeline_mode<synchronous>, transform_indices = @transform_6, window_bounds = array<i64: 1, 32>}, {pipeline_mode = #tpu.pipeline_mode<synchronous>, transform_indices = @transform_7, window_bounds = array<i64: 1, 32>}, {pipeline_mode = #tpu.pipeline_mode<synchronous>, transform_indices = @transform_8, window_bounds = array<i64: 32, 32>}, {pipeline_mode = #tpu.pipeline_mode<synchronous>, transform_indices = @transform_9, window_bounds = array<i64: 1, 32>}, {pipeline_mode = #tpu.pipeline_mode<synchronous>, transform_indices = @transform_10, window_bounds = array<i64: 1, 32>}, {transform_indices = @transform_11, window_bounds = array<i64: 1, 8, 32>}]} {
    %c0 = arith.constant 0 : index
    %c0_0 = arith.constant 0 : index
    %c0_1 = arith.constant 0 : index
    %0 = vector.load %arg1[%c0, %c0_0, %c0_1] : memref<1x20x32xbf16, #tpu.memory_space<vmem>>, vector<1x20x32xbf16>
    %1 = vector.shape_cast %0 : vector<1x20x32xbf16> to vector<20x32xbf16>
    %c0_2 = arith.constant 0 : index
    %c0_3 = arith.constant 0 : index
    %2 = vector.load %arg3[%c0_2, %c0_3] : memref<32x32xbf16, #tpu.memory_space<vmem>>, vector<32x32xbf16>
    %cst = arith.constant dense<0.000000e+00> : vector<20x32xf32>
    %3 = tpu.matmul %1, %2, %cst {dimension_numbers = #tpu.dot_dimension_numbers<[1], [0], [0], [1], [0, 0, 1, 1], [], []>} : vector<20x32xbf16>, vector<32x32xbf16>, vector<20x32xf32> -> vector<20x32xf32>
    %c0_4 = arith.constant 0 : index
    %c0_5 = arith.constant 0 : index
    %4 = vector.load %arg4[%c0_4, %c0_5] : memref<1x32xf32, #tpu.memory_space<vmem>>, vector<1x32xf32>
    %5 = vector.broadcast %4 : vector<1x32xf32> to vector<20x32xf32>
    %6 = arith.mulf %3, %5 : vector<20x32xf32>
    %c0_6 = arith.constant 0 : index
    %c0_7 = arith.constant 0 : index
    %7 = vector.load %arg5[%c0_6, %c0_7] : memref<1x32xf32, #tpu.memory_space<vmem>>, vector<1x32xf32>
    %8 = vector.broadcast %7 : vector<1x32xf32> to vector<20x32xf32>
    %9 = arith.addf %6, %8 : vector<20x32xf32>
    %cst_8 = arith.constant 0.000000e+00 : f32
    %10 = vector.broadcast %cst_8 : f32 to vector<20x32xf32>
    %11 = arith.maximumf %9, %10 : vector<20x32xf32>
    %c0_9 = arith.constant 0 : index
    %c0_10 = arith.constant 0 : index
    %12 = vector.load %arg2[%c0_9, %c0_10] : memref<20x1xf32, #tpu.memory_space<vmem>>, vector<20x1xf32>
    %13 = vector.broadcast %12 : vector<20x1xf32> to vector<20x32xf32>
    %14 = arith.mulf %11, %13 : vector<20x32xf32>
    %15 = vector.extract_strided_slice %14 {offsets = [0, 0], sizes = [8, 32], strides = [1, 1]} : vector<20x32xf32> to vector<8x32xf32>
    %c0_11 = arith.constant 0 : index
    %c0_12 = arith.constant 0 : index
    %c0_13 = arith.constant 0 : index
    %16 = vector.load %arg6[%c0_11, %c0_12, %c0_13] : memref<9x1x32xf32, #tpu.memory_space<vmem>>, vector<1x1x32xf32>
    %17 = vector.shape_cast %16 : vector<1x1x32xf32> to vector<1x32xf32>
    %18 = vector.broadcast %17 : vector<1x32xf32> to vector<8x32xf32>
    %19 = arith.mulf %15, %18 : vector<8x32xf32>
    %20 = vector.extract_strided_slice %14 {offsets = [1, 0], sizes = [8, 32], strides = [1, 1]} : vector<20x32xf32> to vector<8x32xf32>
    %c1 = arith.constant 1 : index
    %c0_14 = arith.constant 0 : index
    %c0_15 = arith.constant 0 : index
    %21 = vector.load %arg6[%c1, %c0_14, %c0_15] : memref<9x1x32xf32, #tpu.memory_space<vmem>>, vector<1x1x32xf32>
    %22 = vector.shape_cast %21 : vector<1x1x32xf32> to vector<1x32xf32>
    %23 = vector.broadcast %22 : vector<1x32xf32> to vector<8x32xf32>
    %24 = arith.mulf %20, %23 : vector<8x32xf32>
    %25 = arith.addf %19, %24 : vector<8x32xf32>
    %26 = vector.extract_strided_slice %14 {offsets = [2, 0], sizes = [8, 32], strides = [1, 1]} : vector<20x32xf32> to vector<8x32xf32>
    %c2 = arith.constant 2 : index
    %c0_16 = arith.constant 0 : index
    %c0_17 = arith.constant 0 : index
    %27 = vector.load %arg6[%c2, %c0_16, %c0_17] : memref<9x1x32xf32, #tpu.memory_space<vmem>>, vector<1x1x32xf32>
    %28 = vector.shape_cast %27 : vector<1x1x32xf32> to vector<1x32xf32>
    %29 = vector.broadcast %28 : vector<1x32xf32> to vector<8x32xf32>
    %30 = arith.mulf %26, %29 : vector<8x32xf32>
    %31 = arith.addf %25, %30 : vector<8x32xf32>
    %32 = vector.extract_strided_slice %14 {offsets = [4, 0], sizes = [8, 32], strides = [1, 1]} : vector<20x32xf32> to vector<8x32xf32>
    %c3 = arith.constant 3 : index
    %c0_18 = arith.constant 0 : index
    %c0_19 = arith.constant 0 : index
    %33 = vector.load %arg6[%c3, %c0_18, %c0_19] : memref<9x1x32xf32, #tpu.memory_space<vmem>>, vector<1x1x32xf32>
    %34 = vector.shape_cast %33 : vector<1x1x32xf32> to vector<1x32xf32>
    %35 = vector.broadcast %34 : vector<1x32xf32> to vector<8x32xf32>
    %36 = arith.mulf %32, %35 : vector<8x32xf32>
    %37 = arith.addf %31, %36 : vector<8x32xf32>
    %38 = vector.extract_strided_slice %14 {offsets = [5, 0], sizes = [8, 32], strides = [1, 1]} : vector<20x32xf32> to vector<8x32xf32>
    %c4 = arith.constant 4 : index
    %c0_20 = arith.constant 0 : index
    %c0_21 = arith.constant 0 : index
    %39 = vector.load %arg6[%c4, %c0_20, %c0_21] : memref<9x1x32xf32, #tpu.memory_space<vmem>>, vector<1x1x32xf32>
    %40 = vector.shape_cast %39 : vector<1x1x32xf32> to vector<1x32xf32>
    %41 = vector.broadcast %40 : vector<1x32xf32> to vector<8x32xf32>
    %42 = arith.mulf %38, %41 : vector<8x32xf32>
    %43 = arith.addf %37, %42 : vector<8x32xf32>
    %44 = vector.extract_strided_slice %14 {offsets = [6, 0], sizes = [8, 32], strides = [1, 1]} : vector<20x32xf32> to vector<8x32xf32>
    %c5 = arith.constant 5 : index
    %c0_22 = arith.constant 0 : index
    %c0_23 = arith.constant 0 : index
    %45 = vector.load %arg6[%c5, %c0_22, %c0_23] : memref<9x1x32xf32, #tpu.memory_space<vmem>>, vector<1x1x32xf32>
    %46 = vector.shape_cast %45 : vector<1x1x32xf32> to vector<1x32xf32>
    %47 = vector.broadcast %46 : vector<1x32xf32> to vector<8x32xf32>
    %48 = arith.mulf %44, %47 : vector<8x32xf32>
    %49 = arith.addf %43, %48 : vector<8x32xf32>
    %50 = vector.extract_strided_slice %14 {offsets = [8, 0], sizes = [8, 32], strides = [1, 1]} : vector<20x32xf32> to vector<8x32xf32>
    %c6 = arith.constant 6 : index
    %c0_24 = arith.constant 0 : index
    %c0_25 = arith.constant 0 : index
    %51 = vector.load %arg6[%c6, %c0_24, %c0_25] : memref<9x1x32xf32, #tpu.memory_space<vmem>>, vector<1x1x32xf32>
    %52 = vector.shape_cast %51 : vector<1x1x32xf32> to vector<1x32xf32>
    %53 = vector.broadcast %52 : vector<1x32xf32> to vector<8x32xf32>
    %54 = arith.mulf %50, %53 : vector<8x32xf32>
    %55 = arith.addf %49, %54 : vector<8x32xf32>
    %56 = vector.extract_strided_slice %14 {offsets = [9, 0], sizes = [8, 32], strides = [1, 1]} : vector<20x32xf32> to vector<8x32xf32>
    %c7 = arith.constant 7 : index
    %c0_26 = arith.constant 0 : index
    %c0_27 = arith.constant 0 : index
    %57 = vector.load %arg6[%c7, %c0_26, %c0_27] : memref<9x1x32xf32, #tpu.memory_space<vmem>>, vector<1x1x32xf32>
    %58 = vector.shape_cast %57 : vector<1x1x32xf32> to vector<1x32xf32>
    %59 = vector.broadcast %58 : vector<1x32xf32> to vector<8x32xf32>
    %60 = arith.mulf %56, %59 : vector<8x32xf32>
    %61 = arith.addf %55, %60 : vector<8x32xf32>
    %62 = vector.extract_strided_slice %14 {offsets = [10, 0], sizes = [8, 32], strides = [1, 1]} : vector<20x32xf32> to vector<8x32xf32>
    %c8 = arith.constant 8 : index
    %c0_28 = arith.constant 0 : index
    %c0_29 = arith.constant 0 : index
    %63 = vector.load %arg6[%c8, %c0_28, %c0_29] : memref<9x1x32xf32, #tpu.memory_space<vmem>>, vector<1x1x32xf32>
    %64 = vector.shape_cast %63 : vector<1x1x32xf32> to vector<1x32xf32>
    %65 = vector.broadcast %64 : vector<1x32xf32> to vector<8x32xf32>
    %66 = arith.mulf %62, %65 : vector<8x32xf32>
    %67 = arith.addf %61, %66 : vector<8x32xf32>
    %c0_30 = arith.constant 0 : index
    %c0_31 = arith.constant 0 : index
    %68 = vector.load %arg7[%c0_30, %c0_31] : memref<1x32xf32, #tpu.memory_space<vmem>>, vector<1x32xf32>
    %69 = vector.broadcast %68 : vector<1x32xf32> to vector<8x32xf32>
    %70 = arith.mulf %67, %69 : vector<8x32xf32>
    %c0_32 = arith.constant 0 : index
    %c0_33 = arith.constant 0 : index
    %71 = vector.load %arg8[%c0_32, %c0_33] : memref<1x32xf32, #tpu.memory_space<vmem>>, vector<1x32xf32>
    %72 = vector.broadcast %71 : vector<1x32xf32> to vector<8x32xf32>
    %73 = arith.addf %70, %72 : vector<8x32xf32>
    %74 = arith.truncf %73 : vector<8x32xf32> to vector<8x32xbf16>
    %c0_34 = arith.constant 0 : index
    %c0_35 = arith.constant 0 : index
    %75 = vector.load %arg9[%c0_34, %c0_35] : memref<32x32xbf16, #tpu.memory_space<vmem>>, vector<32x32xbf16>
    %cst_36 = arith.constant dense<0.000000e+00> : vector<8x32xf32>
    %76 = tpu.matmul %74, %75, %cst_36 {dimension_numbers = #tpu.dot_dimension_numbers<[1], [0], [0], [1], [0, 0, 1, 1], [], []>} : vector<8x32xbf16>, vector<32x32xbf16>, vector<8x32xf32> -> vector<8x32xf32>
    %c0_37 = arith.constant 0 : index
    %c0_38 = arith.constant 0 : index
    %77 = vector.load %arg10[%c0_37, %c0_38] : memref<1x32xf32, #tpu.memory_space<vmem>>, vector<1x32xf32>
    %78 = vector.broadcast %77 : vector<1x32xf32> to vector<8x32xf32>
    %79 = arith.mulf %76, %78 : vector<8x32xf32>
    %c0_39 = arith.constant 0 : index
    %c0_40 = arith.constant 0 : index
    %80 = vector.load %arg11[%c0_39, %c0_40] : memref<1x32xf32, #tpu.memory_space<vmem>>, vector<1x32xf32>
    %81 = vector.broadcast %80 : vector<1x32xf32> to vector<8x32xf32>
    %82 = arith.addf %79, %81 : vector<8x32xf32>
    %cst_41 = arith.constant 0.000000e+00 : f32
    %83 = vector.broadcast %cst_41 : f32 to vector<8x32xf32>
    %84 = arith.maximumf %82, %83 : vector<8x32xf32>
    %85 = arith.truncf %84 : vector<8x32xf32> to vector<8x32xbf16>
    %c0_42 = arith.constant 0 : index
    %c0_43 = arith.constant 0 : index
    %c0_44 = arith.constant 0 : index
    %86 = vector.load %arg12[%c0_42, %c0_43, %c0_44] : memref<1x8x32xbf16, #tpu.memory_space<vmem>>, vector<1x8x32xbf16>
    %87 = vector.shape_cast %86 : vector<1x8x32xbf16> to vector<8x32xbf16>
    %88 = vector.shape_cast %85 : vector<8x32xbf16> to vector<1x8x32xbf16>
    tpu.vector_store %arg12[%c0_42, %c0_43, %c0_44], %88 {strides = array<i32>} : memref<1x8x32xbf16, #tpu.memory_space<vmem>>, vector<1x8x32xbf16>,
    return
  }
  func.func @transform_0(%arg0: i32) -> (i32, i32, i32) {
    %c0_i32 = arith.constant 0 : i32
    %c0_i32_0 = arith.constant 0 : i32
    %c0_i32_1 = arith.constant 0 : i32
    return %arg0, %c0_i32, %c0_i32_0 : i32, i32, i32
  }
  func.func @transform_1(%arg0: i32) -> (i32, i32) {
    %c0_i32 = arith.constant 0 : i32
    %c0_i32_0 = arith.constant 0 : i32
    %c0_i32_1 = arith.constant 0 : i32
    return %c0_i32, %c0_i32_0 : i32, i32
  }
  func.func @transform_2(%arg0: i32) -> (i32, i32) {
    %c0_i32 = arith.constant 0 : i32
    %c0_i32_0 = arith.constant 0 : i32
    %c0_i32_1 = arith.constant 0 : i32
    return %c0_i32, %c0_i32_0 : i32, i32
  }
  func.func @transform_3(%arg0: i32) -> (i32, i32) {
    %c0_i32 = arith.constant 0 : i32
    %c0_i32_0 = arith.constant 0 : i32
    %c0_i32_1 = arith.constant 0 : i32
    return %c0_i32, %c0_i32_0 : i32, i32
  }
  func.func @transform_4(%arg0: i32) -> (i32, i32) {
    %c0_i32 = arith.constant 0 : i32
    %c0_i32_0 = arith.constant 0 : i32
    %c0_i32_1 = arith.constant 0 : i32
    return %c0_i32, %c0_i32_0 : i32, i32
  }
  func.func @transform_5(%arg0: i32) -> (i32, i32, i32) {
    %c0_i32 = arith.constant 0 : i32
    %c0_i32_0 = arith.constant 0 : i32
    %c0_i32_1 = arith.constant 0 : i32
    %c0_i32_2 = arith.constant 0 : i32
    return %c0_i32, %c0_i32_0, %c0_i32_1 : i32, i32, i32
  }
  func.func @transform_6(%arg0: i32) -> (i32, i32) {
    %c0_i32 = arith.constant 0 : i32
    %c0_i32_0 = arith.constant 0 : i32
    %c0_i32_1 = arith.constant 0 : i32
    return %c0_i32, %c0_i32_0 : i32, i32
  }
  func.func @transform_7(%arg0: i32) -> (i32, i32) {
    %c0_i32 = arith.constant 0 : i32
    %c0_i32_0 = arith.constant 0 : i32
    %c0_i32_1 = arith.constant 0 : i32
    return %c0_i32, %c0_i32_0 : i32, i32
  }
  func.func @transform_8(%arg0: i32) -> (i32, i32) {
    %c0_i32 = arith.constant 0 : i32
    %c0_i32_0 = arith.constant 0 : i32
    %c0_i32_1 = arith.constant 0 : i32
    return %c0_i32, %c0_i32_0 : i32, i32
  }
  func.func @transform_9(%arg0: i32) -> (i32, i32) {
    %c0_i32 = arith.constant 0 : i32
    %c0_i32_0 = arith.constant 0 : i32
    %c0_i32_1 = arith.constant 0 : i32
    return %c0_i32, %c0_i32_0 : i32, i32
  }
  func.func @transform_10(%arg0: i32) -> (i32, i32) {
    %c0_i32 = arith.constant 0 : i32
    %c0_i32_0 = arith.constant 0 : i32
    %c0_i32_1 = arith.constant 0 : i32
    return %c0_i32, %c0_i32_0 : i32, i32
  }
  func.func @transform_11(%arg0: i32) -> (i32, i32, i32) {
    %c0_i32 = arith.constant 0 : i32
    %c0_i32_0 = arith.constant 0 : i32
    %c0_i32_1 = arith.constant 0 : i32
    return %arg0, %c0_i32, %c0_i32_0 : i32, i32, i32
  }
}

module attributes {stable_mosaic.version = 11 : i64} {
  func.func @_matmul_bn_kernel(%arg0: i32, %arg1: memref<8x64xbf16, #tpu.memory_space<vmem>>, %arg2: memref<64x64xbf16, #tpu.memory_space<vmem>>, %arg3: memref<1x64xf32, #tpu.memory_space<vmem>>, %arg4: memref<1x64xf32, #tpu.memory_space<vmem>>, %arg5: memref<8x64xbf16, #tpu.memory_space<vmem>>) attributes {dimension_semantics = [#tpu.dimension_semantics<parallel>], iteration_bounds = array<i64: 1>, scalar_prefetch = 0 : i64, scratch_operands = 0 : i64, tpu.core_type = #tpu.core_type<tc>, window_params = [{transform_indices = @transform_0, window_bounds = array<i64: 8, 64>}, {pipeline_mode = #tpu.pipeline_mode<synchronous>, transform_indices = @transform_1, window_bounds = array<i64: 64, 64>}, {pipeline_mode = #tpu.pipeline_mode<synchronous>, transform_indices = @transform_2, window_bounds = array<i64: 1, 64>}, {pipeline_mode = #tpu.pipeline_mode<synchronous>, transform_indices = @transform_3, window_bounds = array<i64: 1, 64>}, {transform_indices = @transform_4, window_bounds = array<i64: 8, 64>}]} {
    %c0 = arith.constant 0 : index
    %c0_0 = arith.constant 0 : index
    %0 = vector.load %arg1[%c0, %c0_0] : memref<8x64xbf16, #tpu.memory_space<vmem>>, vector<8x64xbf16>
    %c0_1 = arith.constant 0 : index
    %c0_2 = arith.constant 0 : index
    %1 = vector.load %arg2[%c0_1, %c0_2] : memref<64x64xbf16, #tpu.memory_space<vmem>>, vector<64x64xbf16>
    %cst = arith.constant dense<0.000000e+00> : vector<8x64xf32>
    %2 = tpu.matmul %0, %1, %cst {dimension_numbers = #tpu.dot_dimension_numbers<[1], [0], [0], [1], [0, 0, 1, 1], [], []>} : vector<8x64xbf16>, vector<64x64xbf16>, vector<8x64xf32> -> vector<8x64xf32>
    %c0_3 = arith.constant 0 : index
    %c0_4 = arith.constant 0 : index
    %3 = vector.load %arg3[%c0_3, %c0_4] : memref<1x64xf32, #tpu.memory_space<vmem>>, vector<1x64xf32>
    %4 = vector.broadcast %3 : vector<1x64xf32> to vector<8x64xf32>
    %5 = arith.mulf %2, %4 : vector<8x64xf32>
    %c0_5 = arith.constant 0 : index
    %c0_6 = arith.constant 0 : index
    %6 = vector.load %arg4[%c0_5, %c0_6] : memref<1x64xf32, #tpu.memory_space<vmem>>, vector<1x64xf32>
    %7 = vector.broadcast %6 : vector<1x64xf32> to vector<8x64xf32>
    %8 = arith.addf %5, %7 : vector<8x64xf32>
    %cst_7 = arith.constant 0.000000e+00 : f32
    %9 = vector.broadcast %cst_7 : f32 to vector<8x64xf32>
    %10 = arith.maximumf %8, %9 : vector<8x64xf32>
    %11 = arith.truncf %10 : vector<8x64xf32> to vector<8x64xbf16>
    %c0_8 = arith.constant 0 : index
    %c0_9 = arith.constant 0 : index
    %12 = vector.load %arg5[%c0_8, %c0_9] : memref<8x64xbf16, #tpu.memory_space<vmem>>, vector<8x64xbf16>
    tpu.vector_store %arg5[%c0_8, %c0_9], %11 {strides = array<i32>} : memref<8x64xbf16, #tpu.memory_space<vmem>>, vector<8x64xbf16>,
    return
  }
  func.func @transform_0(%arg0: i32) -> (i32, i32) {
    %c0_i32 = arith.constant 0 : i32
    %c0_i32_0 = arith.constant 0 : i32
    return %arg0, %c0_i32 : i32, i32
  }
  func.func @transform_1(%arg0: i32) -> (i32, i32) {
    %c0_i32 = arith.constant 0 : i32
    %c0_i32_0 = arith.constant 0 : i32
    %c0_i32_1 = arith.constant 0 : i32
    return %c0_i32, %c0_i32_0 : i32, i32
  }
  func.func @transform_2(%arg0: i32) -> (i32, i32) {
    %c0_i32 = arith.constant 0 : i32
    %c0_i32_0 = arith.constant 0 : i32
    %c0_i32_1 = arith.constant 0 : i32
    return %c0_i32, %c0_i32_0 : i32, i32
  }
  func.func @transform_3(%arg0: i32) -> (i32, i32) {
    %c0_i32 = arith.constant 0 : i32
    %c0_i32_0 = arith.constant 0 : i32
    %c0_i32_1 = arith.constant 0 : i32
    return %c0_i32, %c0_i32_0 : i32, i32
  }
  func.func @transform_4(%arg0: i32) -> (i32, i32) {
    %c0_i32 = arith.constant 0 : i32
    %c0_i32_0 = arith.constant 0 : i32
    return %arg0, %c0_i32 : i32, i32
  }
}

module attributes {stable_mosaic.version = 11 : i64} {
  func.func @_dw_pw_bn_kernel(%arg0: i32, %arg1: memref<9x8x64xbf16, #tpu.memory_space<vmem>>, %arg2: memref<9x1x64xf32, #tpu.memory_space<vmem>>, %arg3: memref<1x64xf32, #tpu.memory_space<vmem>>, %arg4: memref<1x64xf32, #tpu.memory_space<vmem>>, %arg5: memref<64x64xbf16, #tpu.memory_space<vmem>>, %arg6: memref<1x64xf32, #tpu.memory_space<vmem>>, %arg7: memref<1x64xf32, #tpu.memory_space<vmem>>, %arg8: memref<8x64xbf16, #tpu.memory_space<vmem>>) attributes {dimension_semantics = [#tpu.dimension_semantics<parallel>], iteration_bounds = array<i64: 1>, scalar_prefetch = 0 : i64, scratch_operands = 0 : i64, tpu.core_type = #tpu.core_type<tc>, window_params = [{transform_indices = @transform_0, window_bounds = array<i64: 9, 8, 64>}, {pipeline_mode = #tpu.pipeline_mode<synchronous>, transform_indices = @transform_1, window_bounds = array<i64: 9, 1, 64>}, {pipeline_mode = #tpu.pipeline_mode<synchronous>, transform_indices = @transform_2, window_bounds = array<i64: 1, 64>}, {pipeline_mode = #tpu.pipeline_mode<synchronous>, transform_indices = @transform_3, window_bounds = array<i64: 1, 64>}, {pipeline_mode = #tpu.pipeline_mode<synchronous>, transform_indices = @transform_4, window_bounds = array<i64: 64, 64>}, {pipeline_mode = #tpu.pipeline_mode<synchronous>, transform_indices = @transform_5, window_bounds = array<i64: 1, 64>}, {pipeline_mode = #tpu.pipeline_mode<synchronous>, transform_indices = @transform_6, window_bounds = array<i64: 1, 64>}, {transform_indices = @transform_7, window_bounds = array<i64: 8, 64>}]} {
    %c0 = arith.constant 0 : index
    %c0_0 = arith.constant 0 : index
    %c0_1 = arith.constant 0 : index
    %0 = vector.load %arg1[%c0, %c0_0, %c0_1] : memref<9x8x64xbf16, #tpu.memory_space<vmem>>, vector<1x8x64xbf16>
    %1 = vector.shape_cast %0 : vector<1x8x64xbf16> to vector<8x64xbf16>
    %2 = arith.extf %1 : vector<8x64xbf16> to vector<8x64xf32>
    %c0_2 = arith.constant 0 : index
    %c0_3 = arith.constant 0 : index
    %c0_4 = arith.constant 0 : index
    %3 = vector.load %arg2[%c0_2, %c0_3, %c0_4] : memref<9x1x64xf32, #tpu.memory_space<vmem>>, vector<1x1x64xf32>
    %4 = vector.shape_cast %3 : vector<1x1x64xf32> to vector<1x64xf32>
    %5 = vector.broadcast %4 : vector<1x64xf32> to vector<8x64xf32>
    %6 = arith.mulf %2, %5 : vector<8x64xf32>
    %c1 = arith.constant 1 : index
    %c0_5 = arith.constant 0 : index
    %c0_6 = arith.constant 0 : index
    %7 = vector.load %arg1[%c1, %c0_5, %c0_6] : memref<9x8x64xbf16, #tpu.memory_space<vmem>>, vector<1x8x64xbf16>
    %8 = vector.shape_cast %7 : vector<1x8x64xbf16> to vector<8x64xbf16>
    %9 = arith.extf %8 : vector<8x64xbf16> to vector<8x64xf32>
    %c1_7 = arith.constant 1 : index
    %c0_8 = arith.constant 0 : index
    %c0_9 = arith.constant 0 : index
    %10 = vector.load %arg2[%c1_7, %c0_8, %c0_9] : memref<9x1x64xf32, #tpu.memory_space<vmem>>, vector<1x1x64xf32>
    %11 = vector.shape_cast %10 : vector<1x1x64xf32> to vector<1x64xf32>
    %12 = vector.broadcast %11 : vector<1x64xf32> to vector<8x64xf32>
    %13 = arith.mulf %9, %12 : vector<8x64xf32>
    %14 = arith.addf %6, %13 : vector<8x64xf32>
    %c2 = arith.constant 2 : index
    %c0_10 = arith.constant 0 : index
    %c0_11 = arith.constant 0 : index
    %15 = vector.load %arg1[%c2, %c0_10, %c0_11] : memref<9x8x64xbf16, #tpu.memory_space<vmem>>, vector<1x8x64xbf16>
    %16 = vector.shape_cast %15 : vector<1x8x64xbf16> to vector<8x64xbf16>
    %17 = arith.extf %16 : vector<8x64xbf16> to vector<8x64xf32>
    %c2_12 = arith.constant 2 : index
    %c0_13 = arith.constant 0 : index
    %c0_14 = arith.constant 0 : index
    %18 = vector.load %arg2[%c2_12, %c0_13, %c0_14] : memref<9x1x64xf32, #tpu.memory_space<vmem>>, vector<1x1x64xf32>
    %19 = vector.shape_cast %18 : vector<1x1x64xf32> to vector<1x64xf32>
    %20 = vector.broadcast %19 : vector<1x64xf32> to vector<8x64xf32>
    %21 = arith.mulf %17, %20 : vector<8x64xf32>
    %22 = arith.addf %14, %21 : vector<8x64xf32>
    %c3 = arith.constant 3 : index
    %c0_15 = arith.constant 0 : index
    %c0_16 = arith.constant 0 : index
    %23 = vector.load %arg1[%c3, %c0_15, %c0_16] : memref<9x8x64xbf16, #tpu.memory_space<vmem>>, vector<1x8x64xbf16>
    %24 = vector.shape_cast %23 : vector<1x8x64xbf16> to vector<8x64xbf16>
    %25 = arith.extf %24 : vector<8x64xbf16> to vector<8x64xf32>
    %c3_17 = arith.constant 3 : index
    %c0_18 = arith.constant 0 : index
    %c0_19 = arith.constant 0 : index
    %26 = vector.load %arg2[%c3_17, %c0_18, %c0_19] : memref<9x1x64xf32, #tpu.memory_space<vmem>>, vector<1x1x64xf32>
    %27 = vector.shape_cast %26 : vector<1x1x64xf32> to vector<1x64xf32>
    %28 = vector.broadcast %27 : vector<1x64xf32> to vector<8x64xf32>
    %29 = arith.mulf %25, %28 : vector<8x64xf32>
    %30 = arith.addf %22, %29 : vector<8x64xf32>
    %c4 = arith.constant 4 : index
    %c0_20 = arith.constant 0 : index
    %c0_21 = arith.constant 0 : index
    %31 = vector.load %arg1[%c4, %c0_20, %c0_21] : memref<9x8x64xbf16, #tpu.memory_space<vmem>>, vector<1x8x64xbf16>
    %32 = vector.shape_cast %31 : vector<1x8x64xbf16> to vector<8x64xbf16>
    %33 = arith.extf %32 : vector<8x64xbf16> to vector<8x64xf32>
    %c4_22 = arith.constant 4 : index
    %c0_23 = arith.constant 0 : index
    %c0_24 = arith.constant 0 : index
    %34 = vector.load %arg2[%c4_22, %c0_23, %c0_24] : memref<9x1x64xf32, #tpu.memory_space<vmem>>, vector<1x1x64xf32>
    %35 = vector.shape_cast %34 : vector<1x1x64xf32> to vector<1x64xf32>
    %36 = vector.broadcast %35 : vector<1x64xf32> to vector<8x64xf32>
    %37 = arith.mulf %33, %36 : vector<8x64xf32>
    %38 = arith.addf %30, %37 : vector<8x64xf32>
    %c5 = arith.constant 5 : index
    %c0_25 = arith.constant 0 : index
    %c0_26 = arith.constant 0 : index
    %39 = vector.load %arg1[%c5, %c0_25, %c0_26] : memref<9x8x64xbf16, #tpu.memory_space<vmem>>, vector<1x8x64xbf16>
    %40 = vector.shape_cast %39 : vector<1x8x64xbf16> to vector<8x64xbf16>
    %41 = arith.extf %40 : vector<8x64xbf16> to vector<8x64xf32>
    %c5_27 = arith.constant 5 : index
    %c0_28 = arith.constant 0 : index
    %c0_29 = arith.constant 0 : index
    %42 = vector.load %arg2[%c5_27, %c0_28, %c0_29] : memref<9x1x64xf32, #tpu.memory_space<vmem>>, vector<1x1x64xf32>
    %43 = vector.shape_cast %42 : vector<1x1x64xf32> to vector<1x64xf32>
    %44 = vector.broadcast %43 : vector<1x64xf32> to vector<8x64xf32>
    %45 = arith.mulf %41, %44 : vector<8x64xf32>
    %46 = arith.addf %38, %45 : vector<8x64xf32>
    %c6 = arith.constant 6 : index
    %c0_30 = arith.constant 0 : index
    %c0_31 = arith.constant 0 : index
    %47 = vector.load %arg1[%c6, %c0_30, %c0_31] : memref<9x8x64xbf16, #tpu.memory_space<vmem>>, vector<1x8x64xbf16>
    %48 = vector.shape_cast %47 : vector<1x8x64xbf16> to vector<8x64xbf16>
    %49 = arith.extf %48 : vector<8x64xbf16> to vector<8x64xf32>
    %c6_32 = arith.constant 6 : index
    %c0_33 = arith.constant 0 : index
    %c0_34 = arith.constant 0 : index
    %50 = vector.load %arg2[%c6_32, %c0_33, %c0_34] : memref<9x1x64xf32, #tpu.memory_space<vmem>>, vector<1x1x64xf32>
    %51 = vector.shape_cast %50 : vector<1x1x64xf32> to vector<1x64xf32>
    %52 = vector.broadcast %51 : vector<1x64xf32> to vector<8x64xf32>
    %53 = arith.mulf %49, %52 : vector<8x64xf32>
    %54 = arith.addf %46, %53 : vector<8x64xf32>
    %c7 = arith.constant 7 : index
    %c0_35 = arith.constant 0 : index
    %c0_36 = arith.constant 0 : index
    %55 = vector.load %arg1[%c7, %c0_35, %c0_36] : memref<9x8x64xbf16, #tpu.memory_space<vmem>>, vector<1x8x64xbf16>
    %56 = vector.shape_cast %55 : vector<1x8x64xbf16> to vector<8x64xbf16>
    %57 = arith.extf %56 : vector<8x64xbf16> to vector<8x64xf32>
    %c7_37 = arith.constant 7 : index
    %c0_38 = arith.constant 0 : index
    %c0_39 = arith.constant 0 : index
    %58 = vector.load %arg2[%c7_37, %c0_38, %c0_39] : memref<9x1x64xf32, #tpu.memory_space<vmem>>, vector<1x1x64xf32>
    %59 = vector.shape_cast %58 : vector<1x1x64xf32> to vector<1x64xf32>
    %60 = vector.broadcast %59 : vector<1x64xf32> to vector<8x64xf32>
    %61 = arith.mulf %57, %60 : vector<8x64xf32>
    %62 = arith.addf %54, %61 : vector<8x64xf32>
    %c8 = arith.constant 8 : index
    %c0_40 = arith.constant 0 : index
    %c0_41 = arith.constant 0 : index
    %63 = vector.load %arg1[%c8, %c0_40, %c0_41] : memref<9x8x64xbf16, #tpu.memory_space<vmem>>, vector<1x8x64xbf16>
    %64 = vector.shape_cast %63 : vector<1x8x64xbf16> to vector<8x64xbf16>
    %65 = arith.extf %64 : vector<8x64xbf16> to vector<8x64xf32>
    %c8_42 = arith.constant 8 : index
    %c0_43 = arith.constant 0 : index
    %c0_44 = arith.constant 0 : index
    %66 = vector.load %arg2[%c8_42, %c0_43, %c0_44] : memref<9x1x64xf32, #tpu.memory_space<vmem>>, vector<1x1x64xf32>
    %67 = vector.shape_cast %66 : vector<1x1x64xf32> to vector<1x64xf32>
    %68 = vector.broadcast %67 : vector<1x64xf32> to vector<8x64xf32>
    %69 = arith.mulf %65, %68 : vector<8x64xf32>
    %70 = arith.addf %62, %69 : vector<8x64xf32>
    %c0_45 = arith.constant 0 : index
    %c0_46 = arith.constant 0 : index
    %71 = vector.load %arg3[%c0_45, %c0_46] : memref<1x64xf32, #tpu.memory_space<vmem>>, vector<1x64xf32>
    %72 = vector.broadcast %71 : vector<1x64xf32> to vector<8x64xf32>
    %73 = arith.mulf %70, %72 : vector<8x64xf32>
    %c0_47 = arith.constant 0 : index
    %c0_48 = arith.constant 0 : index
    %74 = vector.load %arg4[%c0_47, %c0_48] : memref<1x64xf32, #tpu.memory_space<vmem>>, vector<1x64xf32>
    %75 = vector.broadcast %74 : vector<1x64xf32> to vector<8x64xf32>
    %76 = arith.addf %73, %75 : vector<8x64xf32>
    %77 = arith.truncf %76 : vector<8x64xf32> to vector<8x64xbf16>
    %c0_49 = arith.constant 0 : index
    %c0_50 = arith.constant 0 : index
    %78 = vector.load %arg5[%c0_49, %c0_50] : memref<64x64xbf16, #tpu.memory_space<vmem>>, vector<64x64xbf16>
    %cst = arith.constant dense<0.000000e+00> : vector<8x64xf32>
    %79 = tpu.matmul %77, %78, %cst {dimension_numbers = #tpu.dot_dimension_numbers<[1], [0], [0], [1], [0, 0, 1, 1], [], []>} : vector<8x64xbf16>, vector<64x64xbf16>, vector<8x64xf32> -> vector<8x64xf32>
    %c0_51 = arith.constant 0 : index
    %c0_52 = arith.constant 0 : index
    %80 = vector.load %arg6[%c0_51, %c0_52] : memref<1x64xf32, #tpu.memory_space<vmem>>, vector<1x64xf32>
    %81 = vector.broadcast %80 : vector<1x64xf32> to vector<8x64xf32>
    %82 = arith.mulf %79, %81 : vector<8x64xf32>
    %c0_53 = arith.constant 0 : index
    %c0_54 = arith.constant 0 : index
    %83 = vector.load %arg7[%c0_53, %c0_54] : memref<1x64xf32, #tpu.memory_space<vmem>>, vector<1x64xf32>
    %84 = vector.broadcast %83 : vector<1x64xf32> to vector<8x64xf32>
    %85 = arith.addf %82, %84 : vector<8x64xf32>
    %cst_55 = arith.constant 0.000000e+00 : f32
    %86 = vector.broadcast %cst_55 : f32 to vector<8x64xf32>
    %87 = arith.maximumf %85, %86 : vector<8x64xf32>
    %88 = arith.truncf %87 : vector<8x64xf32> to vector<8x64xbf16>
    %c0_56 = arith.constant 0 : index
    %c0_57 = arith.constant 0 : index
    %89 = vector.load %arg8[%c0_56, %c0_57] : memref<8x64xbf16, #tpu.memory_space<vmem>>, vector<8x64xbf16>
    tpu.vector_store %arg8[%c0_56, %c0_57], %88 {strides = array<i32>} : memref<8x64xbf16, #tpu.memory_space<vmem>>, vector<8x64xbf16>,
    return
  }
  func.func @transform_0(%arg0: i32) -> (i32, i32, i32) {
    %c0_i32 = arith.constant 0 : i32
    %c0_i32_0 = arith.constant 0 : i32
    %c0_i32_1 = arith.constant 0 : i32
    return %c0_i32, %arg0, %c0_i32_0 : i32, i32, i32
  }
  func.func @transform_1(%arg0: i32) -> (i32, i32, i32) {
    %c0_i32 = arith.constant 0 : i32
    %c0_i32_0 = arith.constant 0 : i32
    %c0_i32_1 = arith.constant 0 : i32
    %c0_i32_2 = arith.constant 0 : i32
    return %c0_i32, %c0_i32_0, %c0_i32_1 : i32, i32, i32
  }
  func.func @transform_2(%arg0: i32) -> (i32, i32) {
    %c0_i32 = arith.constant 0 : i32
    %c0_i32_0 = arith.constant 0 : i32
    %c0_i32_1 = arith.constant 0 : i32
    return %c0_i32, %c0_i32_0 : i32, i32
  }
  func.func @transform_3(%arg0: i32) -> (i32, i32) {
    %c0_i32 = arith.constant 0 : i32
    %c0_i32_0 = arith.constant 0 : i32
    %c0_i32_1 = arith.constant 0 : i32
    return %c0_i32, %c0_i32_0 : i32, i32
  }
  func.func @transform_4(%arg0: i32) -> (i32, i32) {
    %c0_i32 = arith.constant 0 : i32
    %c0_i32_0 = arith.constant 0 : i32
    %c0_i32_1 = arith.constant 0 : i32
    return %c0_i32, %c0_i32_0 : i32, i32
  }
  func.func @transform_5(%arg0: i32) -> (i32, i32) {
    %c0_i32 = arith.constant 0 : i32
    %c0_i32_0 = arith.constant 0 : i32
    %c0_i32_1 = arith.constant 0 : i32
    return %c0_i32, %c0_i32_0 : i32, i32
  }
  func.func @transform_6(%arg0: i32) -> (i32, i32) {
    %c0_i32 = arith.constant 0 : i32
    %c0_i32_0 = arith.constant 0 : i32
    %c0_i32_1 = arith.constant 0 : i32
    return %c0_i32, %c0_i32_0 : i32, i32
  }
  func.func @transform_7(%arg0: i32) -> (i32, i32) {
    %c0_i32 = arith.constant 0 : i32
    %c0_i32_0 = arith.constant 0 : i32
    return %arg0, %c0_i32 : i32, i32
  }
}

module attributes {stable_mosaic.version = 11 : i64} {
  func.func @_branch2_s1_kernel(%arg0: i32, %arg1: memref<1x12x64xbf16, #tpu.memory_space<vmem>>, %arg2: memref<12x1xf32, #tpu.memory_space<vmem>>, %arg3: memref<64x64xbf16, #tpu.memory_space<vmem>>, %arg4: memref<1x64xf32, #tpu.memory_space<vmem>>, %arg5: memref<1x64xf32, #tpu.memory_space<vmem>>, %arg6: memref<9x1x64xf32, #tpu.memory_space<vmem>>, %arg7: memref<1x64xf32, #tpu.memory_space<vmem>>, %arg8: memref<1x64xf32, #tpu.memory_space<vmem>>, %arg9: memref<64x64xbf16, #tpu.memory_space<vmem>>, %arg10: memref<1x64xf32, #tpu.memory_space<vmem>>, %arg11: memref<1x64xf32, #tpu.memory_space<vmem>>, %arg12: memref<1x3x64xbf16, #tpu.memory_space<vmem>>) attributes {dimension_semantics = [#tpu.dimension_semantics<parallel>], iteration_bounds = array<i64: 2>, scalar_prefetch = 0 : i64, scratch_operands = 0 : i64, tpu.core_type = #tpu.core_type<tc>, window_params = [{transform_indices = @transform_0, window_bounds = array<i64: 1, 12, 64>}, {pipeline_mode = #tpu.pipeline_mode<synchronous>, transform_indices = @transform_1, window_bounds = array<i64: 12, 1>}, {pipeline_mode = #tpu.pipeline_mode<synchronous>, transform_indices = @transform_2, window_bounds = array<i64: 64, 64>}, {pipeline_mode = #tpu.pipeline_mode<synchronous>, transform_indices = @transform_3, window_bounds = array<i64: 1, 64>}, {pipeline_mode = #tpu.pipeline_mode<synchronous>, transform_indices = @transform_4, window_bounds = array<i64: 1, 64>}, {pipeline_mode = #tpu.pipeline_mode<synchronous>, transform_indices = @transform_5, window_bounds = array<i64: 9, 1, 64>}, {pipeline_mode = #tpu.pipeline_mode<synchronous>, transform_indices = @transform_6, window_bounds = array<i64: 1, 64>}, {pipeline_mode = #tpu.pipeline_mode<synchronous>, transform_indices = @transform_7, window_bounds = array<i64: 1, 64>}, {pipeline_mode = #tpu.pipeline_mode<synchronous>, transform_indices = @transform_8, window_bounds = array<i64: 64, 64>}, {pipeline_mode = #tpu.pipeline_mode<synchronous>, transform_indices = @transform_9, window_bounds = array<i64: 1, 64>}, {pipeline_mode = #tpu.pipeline_mode<synchronous>, transform_indices = @transform_10, window_bounds = array<i64: 1, 64>}, {transform_indices = @transform_11, window_bounds = array<i64: 1, 3, 64>}]} {
    %c0 = arith.constant 0 : index
    %c0_0 = arith.constant 0 : index
    %c0_1 = arith.constant 0 : index
    %0 = vector.load %arg1[%c0, %c0_0, %c0_1] : memref<1x12x64xbf16, #tpu.memory_space<vmem>>, vector<1x12x64xbf16>
    %1 = vector.shape_cast %0 : vector<1x12x64xbf16> to vector<12x64xbf16>
    %c0_2 = arith.constant 0 : index
    %c0_3 = arith.constant 0 : index
    %2 = vector.load %arg3[%c0_2, %c0_3] : memref<64x64xbf16, #tpu.memory_space<vmem>>, vector<64x64xbf16>
    %cst = arith.constant dense<0.000000e+00> : vector<12x64xf32>
    %3 = tpu.matmul %1, %2, %cst {dimension_numbers = #tpu.dot_dimension_numbers<[1], [0], [0], [1], [0, 0, 1, 1], [], []>} : vector<12x64xbf16>, vector<64x64xbf16>, vector<12x64xf32> -> vector<12x64xf32>
    %c0_4 = arith.constant 0 : index
    %c0_5 = arith.constant 0 : index
    %4 = vector.load %arg4[%c0_4, %c0_5] : memref<1x64xf32, #tpu.memory_space<vmem>>, vector<1x64xf32>
    %5 = vector.broadcast %4 : vector<1x64xf32> to vector<12x64xf32>
    %6 = arith.mulf %3, %5 : vector<12x64xf32>
    %c0_6 = arith.constant 0 : index
    %c0_7 = arith.constant 0 : index
    %7 = vector.load %arg5[%c0_6, %c0_7] : memref<1x64xf32, #tpu.memory_space<vmem>>, vector<1x64xf32>
    %8 = vector.broadcast %7 : vector<1x64xf32> to vector<12x64xf32>
    %9 = arith.addf %6, %8 : vector<12x64xf32>
    %cst_8 = arith.constant 0.000000e+00 : f32
    %10 = vector.broadcast %cst_8 : f32 to vector<12x64xf32>
    %11 = arith.maximumf %9, %10 : vector<12x64xf32>
    %c0_9 = arith.constant 0 : index
    %c0_10 = arith.constant 0 : index
    %12 = vector.load %arg2[%c0_9, %c0_10] : memref<12x1xf32, #tpu.memory_space<vmem>>, vector<12x1xf32>
    %13 = vector.broadcast %12 : vector<12x1xf32> to vector<12x64xf32>
    %14 = arith.mulf %11, %13 : vector<12x64xf32>
    %15 = vector.extract_strided_slice %14 {offsets = [0, 0], sizes = [3, 64], strides = [1, 1]} : vector<12x64xf32> to vector<3x64xf32>
    %c0_11 = arith.constant 0 : index
    %c0_12 = arith.constant 0 : index
    %c0_13 = arith.constant 0 : index
    %16 = vector.load %arg6[%c0_11, %c0_12, %c0_13] : memref<9x1x64xf32, #tpu.memory_space<vmem>>, vector<1x1x64xf32>
    %17 = vector.shape_cast %16 : vector<1x1x64xf32> to vector<1x64xf32>
    %18 = vector.broadcast %17 : vector<1x64xf32> to vector<3x64xf32>
    %19 = arith.mulf %15, %18 : vector<3x64xf32>
    %20 = vector.extract_strided_slice %14 {offsets = [1, 0], sizes = [3, 64], strides = [1, 1]} : vector<12x64xf32> to vector<3x64xf32>
    %c1 = arith.constant 1 : index
    %c0_14 = arith.constant 0 : index
    %c0_15 = arith.constant 0 : index
    %21 = vector.load %arg6[%c1, %c0_14, %c0_15] : memref<9x1x64xf32, #tpu.memory_space<vmem>>, vector<1x1x64xf32>
    %22 = vector.shape_cast %21 : vector<1x1x64xf32> to vector<1x64xf32>
    %23 = vector.broadcast %22 : vector<1x64xf32> to vector<3x64xf32>
    %24 = arith.mulf %20, %23 : vector<3x64xf32>
    %25 = arith.addf %19, %24 : vector<3x64xf32>
    %26 = vector.extract_strided_slice %14 {offsets = [2, 0], sizes = [3, 64], strides = [1, 1]} : vector<12x64xf32> to vector<3x64xf32>
    %c2 = arith.constant 2 : index
    %c0_16 = arith.constant 0 : index
    %c0_17 = arith.constant 0 : index
    %27 = vector.load %arg6[%c2, %c0_16, %c0_17] : memref<9x1x64xf32, #tpu.memory_space<vmem>>, vector<1x1x64xf32>
    %28 = vector.shape_cast %27 : vector<1x1x64xf32> to vector<1x64xf32>
    %29 = vector.broadcast %28 : vector<1x64xf32> to vector<3x64xf32>
    %30 = arith.mulf %26, %29 : vector<3x64xf32>
    %31 = arith.addf %25, %30 : vector<3x64xf32>
    %32 = vector.extract_strided_slice %14 {offsets = [3, 0], sizes = [3, 64], strides = [1, 1]} : vector<12x64xf32> to vector<3x64xf32>
    %c3 = arith.constant 3 : index
    %c0_18 = arith.constant 0 : index
    %c0_19 = arith.constant 0 : index
    %33 = vector.load %arg6[%c3, %c0_18, %c0_19] : memref<9x1x64xf32, #tpu.memory_space<vmem>>, vector<1x1x64xf32>
    %34 = vector.shape_cast %33 : vector<1x1x64xf32> to vector<1x64xf32>
    %35 = vector.broadcast %34 : vector<1x64xf32> to vector<3x64xf32>
    %36 = arith.mulf %32, %35 : vector<3x64xf32>
    %37 = arith.addf %31, %36 : vector<3x64xf32>
    %38 = vector.extract_strided_slice %14 {offsets = [4, 0], sizes = [3, 64], strides = [1, 1]} : vector<12x64xf32> to vector<3x64xf32>
    %c4 = arith.constant 4 : index
    %c0_20 = arith.constant 0 : index
    %c0_21 = arith.constant 0 : index
    %39 = vector.load %arg6[%c4, %c0_20, %c0_21] : memref<9x1x64xf32, #tpu.memory_space<vmem>>, vector<1x1x64xf32>
    %40 = vector.shape_cast %39 : vector<1x1x64xf32> to vector<1x64xf32>
    %41 = vector.broadcast %40 : vector<1x64xf32> to vector<3x64xf32>
    %42 = arith.mulf %38, %41 : vector<3x64xf32>
    %43 = arith.addf %37, %42 : vector<3x64xf32>
    %44 = vector.extract_strided_slice %14 {offsets = [5, 0], sizes = [3, 64], strides = [1, 1]} : vector<12x64xf32> to vector<3x64xf32>
    %c5 = arith.constant 5 : index
    %c0_22 = arith.constant 0 : index
    %c0_23 = arith.constant 0 : index
    %45 = vector.load %arg6[%c5, %c0_22, %c0_23] : memref<9x1x64xf32, #tpu.memory_space<vmem>>, vector<1x1x64xf32>
    %46 = vector.shape_cast %45 : vector<1x1x64xf32> to vector<1x64xf32>
    %47 = vector.broadcast %46 : vector<1x64xf32> to vector<3x64xf32>
    %48 = arith.mulf %44, %47 : vector<3x64xf32>
    %49 = arith.addf %43, %48 : vector<3x64xf32>
    %50 = vector.extract_strided_slice %14 {offsets = [6, 0], sizes = [3, 64], strides = [1, 1]} : vector<12x64xf32> to vector<3x64xf32>
    %c6 = arith.constant 6 : index
    %c0_24 = arith.constant 0 : index
    %c0_25 = arith.constant 0 : index
    %51 = vector.load %arg6[%c6, %c0_24, %c0_25] : memref<9x1x64xf32, #tpu.memory_space<vmem>>, vector<1x1x64xf32>
    %52 = vector.shape_cast %51 : vector<1x1x64xf32> to vector<1x64xf32>
    %53 = vector.broadcast %52 : vector<1x64xf32> to vector<3x64xf32>
    %54 = arith.mulf %50, %53 : vector<3x64xf32>
    %55 = arith.addf %49, %54 : vector<3x64xf32>
    %56 = vector.extract_strided_slice %14 {offsets = [7, 0], sizes = [3, 64], strides = [1, 1]} : vector<12x64xf32> to vector<3x64xf32>
    %c7 = arith.constant 7 : index
    %c0_26 = arith.constant 0 : index
    %c0_27 = arith.constant 0 : index
    %57 = vector.load %arg6[%c7, %c0_26, %c0_27] : memref<9x1x64xf32, #tpu.memory_space<vmem>>, vector<1x1x64xf32>
    %58 = vector.shape_cast %57 : vector<1x1x64xf32> to vector<1x64xf32>
    %59 = vector.broadcast %58 : vector<1x64xf32> to vector<3x64xf32>
    %60 = arith.mulf %56, %59 : vector<3x64xf32>
    %61 = arith.addf %55, %60 : vector<3x64xf32>
    %62 = vector.extract_strided_slice %14 {offsets = [8, 0], sizes = [3, 64], strides = [1, 1]} : vector<12x64xf32> to vector<3x64xf32>
    %c8 = arith.constant 8 : index
    %c0_28 = arith.constant 0 : index
    %c0_29 = arith.constant 0 : index
    %63 = vector.load %arg6[%c8, %c0_28, %c0_29] : memref<9x1x64xf32, #tpu.memory_space<vmem>>, vector<1x1x64xf32>
    %64 = vector.shape_cast %63 : vector<1x1x64xf32> to vector<1x64xf32>
    %65 = vector.broadcast %64 : vector<1x64xf32> to vector<3x64xf32>
    %66 = arith.mulf %62, %65 : vector<3x64xf32>
    %67 = arith.addf %61, %66 : vector<3x64xf32>
    %c0_30 = arith.constant 0 : index
    %c0_31 = arith.constant 0 : index
    %68 = vector.load %arg7[%c0_30, %c0_31] : memref<1x64xf32, #tpu.memory_space<vmem>>, vector<1x64xf32>
    %69 = vector.broadcast %68 : vector<1x64xf32> to vector<3x64xf32>
    %70 = arith.mulf %67, %69 : vector<3x64xf32>
    %c0_32 = arith.constant 0 : index
    %c0_33 = arith.constant 0 : index
    %71 = vector.load %arg8[%c0_32, %c0_33] : memref<1x64xf32, #tpu.memory_space<vmem>>, vector<1x64xf32>
    %72 = vector.broadcast %71 : vector<1x64xf32> to vector<3x64xf32>
    %73 = arith.addf %70, %72 : vector<3x64xf32>
    %74 = arith.truncf %73 : vector<3x64xf32> to vector<3x64xbf16>
    %c0_34 = arith.constant 0 : index
    %c0_35 = arith.constant 0 : index
    %75 = vector.load %arg9[%c0_34, %c0_35] : memref<64x64xbf16, #tpu.memory_space<vmem>>, vector<64x64xbf16>
    %cst_36 = arith.constant dense<0.000000e+00> : vector<3x64xf32>
    %76 = tpu.matmul %74, %75, %cst_36 {dimension_numbers = #tpu.dot_dimension_numbers<[1], [0], [0], [1], [0, 0, 1, 1], [], []>} : vector<3x64xbf16>, vector<64x64xbf16>, vector<3x64xf32> -> vector<3x64xf32>
    %c0_37 = arith.constant 0 : index
    %c0_38 = arith.constant 0 : index
    %77 = vector.load %arg10[%c0_37, %c0_38] : memref<1x64xf32, #tpu.memory_space<vmem>>, vector<1x64xf32>
    %78 = vector.broadcast %77 : vector<1x64xf32> to vector<3x64xf32>
    %79 = arith.mulf %76, %78 : vector<3x64xf32>
    %c0_39 = arith.constant 0 : index
    %c0_40 = arith.constant 0 : index
    %80 = vector.load %arg11[%c0_39, %c0_40] : memref<1x64xf32, #tpu.memory_space<vmem>>, vector<1x64xf32>
    %81 = vector.broadcast %80 : vector<1x64xf32> to vector<3x64xf32>
    %82 = arith.addf %79, %81 : vector<3x64xf32>
    %cst_41 = arith.constant 0.000000e+00 : f32
    %83 = vector.broadcast %cst_41 : f32 to vector<3x64xf32>
    %84 = arith.maximumf %82, %83 : vector<3x64xf32>
    %85 = arith.truncf %84 : vector<3x64xf32> to vector<3x64xbf16>
    %c0_42 = arith.constant 0 : index
    %c0_43 = arith.constant 0 : index
    %c0_44 = arith.constant 0 : index
    %86 = vector.load %arg12[%c0_42, %c0_43, %c0_44] : memref<1x3x64xbf16, #tpu.memory_space<vmem>>, vector<1x3x64xbf16>
    %87 = vector.shape_cast %86 : vector<1x3x64xbf16> to vector<3x64xbf16>
    %88 = vector.shape_cast %85 : vector<3x64xbf16> to vector<1x3x64xbf16>
    tpu.vector_store %arg12[%c0_42, %c0_43, %c0_44], %88 {strides = array<i32>} : memref<1x3x64xbf16, #tpu.memory_space<vmem>>, vector<1x3x64xbf16>,
    return
  }
  func.func @transform_0(%arg0: i32) -> (i32, i32, i32) {
    %c0_i32 = arith.constant 0 : i32
    %c0_i32_0 = arith.constant 0 : i32
    %c0_i32_1 = arith.constant 0 : i32
    return %arg0, %c0_i32, %c0_i32_0 : i32, i32, i32
  }
  func.func @transform_1(%arg0: i32) -> (i32, i32) {
    %c0_i32 = arith.constant 0 : i32
    %c0_i32_0 = arith.constant 0 : i32
    %c0_i32_1 = arith.constant 0 : i32
    return %c0_i32, %c0_i32_0 : i32, i32
  }
  func.func @transform_2(%arg0: i32) -> (i32, i32) {
    %c0_i32 = arith.constant 0 : i32
    %c0_i32_0 = arith.constant 0 : i32
    %c0_i32_1 = arith.constant 0 : i32
    return %c0_i32, %c0_i32_0 : i32, i32
  }
  func.func @transform_3(%arg0: i32) -> (i32, i32) {
    %c0_i32 = arith.constant 0 : i32
    %c0_i32_0 = arith.constant 0 : i32
    %c0_i32_1 = arith.constant 0 : i32
    return %c0_i32, %c0_i32_0 : i32, i32
  }
  func.func @transform_4(%arg0: i32) -> (i32, i32) {
    %c0_i32 = arith.constant 0 : i32
    %c0_i32_0 = arith.constant 0 : i32
    %c0_i32_1 = arith.constant 0 : i32
    return %c0_i32, %c0_i32_0 : i32, i32
  }
  func.func @transform_5(%arg0: i32) -> (i32, i32, i32) {
    %c0_i32 = arith.constant 0 : i32
    %c0_i32_0 = arith.constant 0 : i32
    %c0_i32_1 = arith.constant 0 : i32
    %c0_i32_2 = arith.constant 0 : i32
    return %c0_i32, %c0_i32_0, %c0_i32_1 : i32, i32, i32
  }
  func.func @transform_6(%arg0: i32) -> (i32, i32) {
    %c0_i32 = arith.constant 0 : i32
    %c0_i32_0 = arith.constant 0 : i32
    %c0_i32_1 = arith.constant 0 : i32
    return %c0_i32, %c0_i32_0 : i32, i32
  }
  func.func @transform_7(%arg0: i32) -> (i32, i32) {
    %c0_i32 = arith.constant 0 : i32
    %c0_i32_0 = arith.constant 0 : i32
    %c0_i32_1 = arith.constant 0 : i32
    return %c0_i32, %c0_i32_0 : i32, i32
  }
  func.func @transform_8(%arg0: i32) -> (i32, i32) {
    %c0_i32 = arith.constant 0 : i32
    %c0_i32_0 = arith.constant 0 : i32
    %c0_i32_1 = arith.constant 0 : i32
    return %c0_i32, %c0_i32_0 : i32, i32
  }
  func.func @transform_9(%arg0: i32) -> (i32, i32) {
    %c0_i32 = arith.constant 0 : i32
    %c0_i32_0 = arith.constant 0 : i32
    %c0_i32_1 = arith.constant 0 : i32
    return %c0_i32, %c0_i32_0 : i32, i32
  }
  func.func @transform_10(%arg0: i32) -> (i32, i32) {
    %c0_i32 = arith.constant 0 : i32
    %c0_i32_0 = arith.constant 0 : i32
    %c0_i32_1 = arith.constant 0 : i32
    return %c0_i32, %c0_i32_0 : i32, i32
  }
  func.func @transform_11(%arg0: i32) -> (i32, i32, i32) {
    %c0_i32 = arith.constant 0 : i32
    %c0_i32_0 = arith.constant 0 : i32
    %c0_i32_1 = arith.constant 0 : i32
    return %arg0, %c0_i32, %c0_i32_0 : i32, i32, i32
  }
}

module attributes {stable_mosaic.version = 11 : i64} {
  func.func @_matmul_bn_kernel(%arg0: i32, %arg1: memref<8x128xbf16, #tpu.memory_space<vmem>>, %arg2: memref<128x256xbf16, #tpu.memory_space<vmem>>, %arg3: memref<1x256xf32, #tpu.memory_space<vmem>>, %arg4: memref<1x256xf32, #tpu.memory_space<vmem>>, %arg5: memref<8x256xbf16, #tpu.memory_space<vmem>>) attributes {dimension_semantics = [#tpu.dimension_semantics<parallel>], iteration_bounds = array<i64: 1>, scalar_prefetch = 0 : i64, scratch_operands = 0 : i64, tpu.core_type = #tpu.core_type<tc>, window_params = [{transform_indices = @transform_0, window_bounds = array<i64: 8, 128>}, {pipeline_mode = #tpu.pipeline_mode<synchronous>, transform_indices = @transform_1, window_bounds = array<i64: 128, 256>}, {pipeline_mode = #tpu.pipeline_mode<synchronous>, transform_indices = @transform_2, window_bounds = array<i64: 1, 256>}, {pipeline_mode = #tpu.pipeline_mode<synchronous>, transform_indices = @transform_3, window_bounds = array<i64: 1, 256>}, {transform_indices = @transform_4, window_bounds = array<i64: 8, 256>}]} {
    %c0 = arith.constant 0 : index
    %c0_0 = arith.constant 0 : index
    %0 = vector.load %arg1[%c0, %c0_0] : memref<8x128xbf16, #tpu.memory_space<vmem>>, vector<8x128xbf16>
    %c0_1 = arith.constant 0 : index
    %c0_2 = arith.constant 0 : index
    %1 = vector.load %arg2[%c0_1, %c0_2] : memref<128x256xbf16, #tpu.memory_space<vmem>>, vector<128x256xbf16>
    %cst = arith.constant dense<0.000000e+00> : vector<8x256xf32>
    %2 = tpu.matmul %0, %1, %cst {dimension_numbers = #tpu.dot_dimension_numbers<[1], [0], [0], [1], [0, 0, 1, 1], [], []>} : vector<8x128xbf16>, vector<128x256xbf16>, vector<8x256xf32> -> vector<8x256xf32>
    %c0_3 = arith.constant 0 : index
    %c0_4 = arith.constant 0 : index
    %3 = vector.load %arg3[%c0_3, %c0_4] : memref<1x256xf32, #tpu.memory_space<vmem>>, vector<1x256xf32>
    %4 = vector.broadcast %3 : vector<1x256xf32> to vector<8x256xf32>
    %5 = arith.mulf %2, %4 : vector<8x256xf32>
    %c0_5 = arith.constant 0 : index
    %c0_6 = arith.constant 0 : index
    %6 = vector.load %arg4[%c0_5, %c0_6] : memref<1x256xf32, #tpu.memory_space<vmem>>, vector<1x256xf32>
    %7 = vector.broadcast %6 : vector<1x256xf32> to vector<8x256xf32>
    %8 = arith.addf %5, %7 : vector<8x256xf32>
    %cst_7 = arith.constant 0.000000e+00 : f32
    %9 = vector.broadcast %cst_7 : f32 to vector<8x256xf32>
    %10 = arith.maximumf %8, %9 : vector<8x256xf32>
    %11 = arith.truncf %10 : vector<8x256xf32> to vector<8x256xbf16>
    %c0_8 = arith.constant 0 : index
    %c0_9 = arith.constant 0 : index
    %12 = vector.load %arg5[%c0_8, %c0_9] : memref<8x256xbf16, #tpu.memory_space<vmem>>, vector<8x256xbf16>
    tpu.vector_store %arg5[%c0_8, %c0_9], %11 {strides = array<i32>} : memref<8x256xbf16, #tpu.memory_space<vmem>>, vector<8x256xbf16>,
    return
  }
  func.func @transform_0(%arg0: i32) -> (i32, i32) {
    %c0_i32 = arith.constant 0 : i32
    %c0_i32_0 = arith.constant 0 : i32
    return %arg0, %c0_i32 : i32, i32
  }
  func.func @transform_1(%arg0: i32) -> (i32, i32) {
    %c0_i32 = arith.constant 0 : i32
    %c0_i32_0 = arith.constant 0 : i32
    %c0_i32_1 = arith.constant 0 : i32
    return %c0_i32, %c0_i32_0 : i32, i32
  }
  func.func @transform_2(%arg0: i32) -> (i32, i32) {
    %c0_i32 = arith.constant 0 : i32
    %c0_i32_0 = arith.constant 0 : i32
    %c0_i32_1 = arith.constant 0 : i32
    return %c0_i32, %c0_i32_0 : i32, i32
  }
  func.func @transform_3(%arg0: i32) -> (i32, i32) {
    %c0_i32 = arith.constant 0 : i32
    %c0_i32_0 = arith.constant 0 : i32
    %c0_i32_1 = arith.constant 0 : i32
    return %c0_i32, %c0_i32_0 : i32, i32
  }
  func.func @transform_4(%arg0: i32) -> (i32, i32) {
    %c0_i32 = arith.constant 0 : i32
    %c0_i32_0 = arith.constant 0 : i32
    return %arg0, %c0_i32 : i32, i32
  }
}

</mosaic_0001>

<bundles_post_ra>
// kernel: _lambda_.15
= control target key start
LH: loop header
LB: loop body
LE: loop exit
PB: predicated region body
PF: predicated region fallthrough
CT: control target
= control target key end

     0   :  { %vm354_vm0 = vcmask 1044480   ;;  %vm355_vm1 = vcmask 1045504   ;;  %v1074_v2 = vmov 65535   ;;  %vm257_vm2 = vcmask 220160   ;;  %s1631_s1 = inlined_call_operand.vmem [shape: bf16[27,16], index: 1, kind: input, shape index: {}]   ;;  %s1632_s2 = inlined_call_operand.vmem [shape: f32[1,16], index: 2, kind: input, shape index: {}]   ;;  %s1633_s3 = inlined_call_operand.vmem [shape: f32[1,16], index: 3, kind: input, shape index: {}]   ;;  %s1634_s0 = inlined_call_operand.vmem [shape: bf16[512,27], index: 0, kind: input, shape index: {}]   ;;  %s1635_s4 = inlined_call_operand.vmem [shape: bf16[512,16], index: 4, kind: output, shape index: {}]  }
   0x1   :  { %v997_v0 = vld [vmem:[%s1631_s1 + $0x8] sm:$0xf]  ;;  %v1064_v1 = vld [vmem:[%s1631_s1 + $0x8] sm:$0x30]  ;;  %v356_v3 = vsel %vm354_vm0, 4294967295, %v1074_v2  ;;  %v1063_v7 = vld [vmem:[%s1631_s1] sm:$0xff] }
   0x2   :  { %v998_v4 = vor.u32 %v1064_v1, %v997_v0  ;;  %v357_v5 = vsel %vm355_vm1, %v356_v3, 0  ;;  %v1031_v8 = vld [vmem:[%s1634_s0] sm:$0xff]  ;;  %v1032_v12 = vld [vmem:[%s1634_s0 + $0x8] sm:$0xff]  ;;  %v1033_v16 = vld [vmem:[%s1634_s0 + $0x10] sm:$0xff]  ;;  %vm794_vm3 = vcmask 125952  }
   0x3   :  { %v1039_v9 = vld [vmem:[%s1634_s0 + $0x40] sm:$0xff]  ;;  %v1040_v13 = vld [vmem:[%s1634_s0 + $0x48] sm:$0xff]  ;;  %v1041_v17 = vld [vmem:[%s1634_s0 + $0x50] sm:$0xff] }
   0x4   :  { %v359_v6 = vand.u32 %v998_v4, %v357_v5  ;;  %v1047_v10 = vld [vmem:[%s1634_s0 + $0x80] sm:$0xff]  ;;  %v1048_v14 = vld [vmem:[%s1634_s0 + $0x88] sm:$0xff]  ;;  %v1049_v18 = vld [vmem:[%s1634_s0 + $0x90] sm:$0xff] }
   0x5   :  { %v1055_v11 = vld [vmem:[%s1634_s0 + $0xc0] sm:$0xff]  ;;  %v1056_v15 = vld [vmem:[%s1634_s0 + $0xc8] sm:$0xff]  ;;  %v1057_v19 = vld [vmem:[%s1634_s0 + $0xd0] sm:$0xff] }
   0x6   :  { %367 = vmatpush.bf16.msra.mxu0 %v359_v6  ;;  %1065 = vmatpush.bf16.msra.mxu1 %v359_v6  ;;  %v1034_v20 = vld [vmem:[%s1634_s0 + $0x18] sm:$0xff]  ;;  %v1035_v24 = vld [vmem:[%s1634_s0 + $0x20] sm:$0xff]  ;;  %v1036_v28 = vld [vmem:[%s1634_s0 + $0x28] sm:$0xff] }
   0x7   :  { %1066 = vmatpush.bf16.msra.mxu2 %v359_v6  ;;  %1067 = vmatpush.bf16.msra.mxu3 %v359_v6  ;;  %v1042_v21 = vld [vmem:[%s1634_s0 + $0x58] sm:$0xff]  ;;  %v1043_v25 = vld [vmem:[%s1634_s0 + $0x60] sm:$0xff]  ;;  %v1044_v29 = vld [vmem:[%s1634_s0 + $0x68] sm:$0xff] }
   0x8   :  { %v1050_v22 = vld [vmem:[%s1634_s0 + $0x98] sm:$0xff]  ;;  %v1051_v26 = vld [vmem:[%s1634_s0 + $0xa0] sm:$0xff]  ;;  %v1052_v30 = vld [vmem:[%s1634_s0 + $0xa8] sm:$0xff] }
   0x9   :  { %v1058_v23 = vld [vmem:[%s1634_s0 + $0xd8] sm:$0xff]  ;;  %v1059_v27 = vld [vmem:[%s1634_s0 + $0xe0] sm:$0xff]  ;;  %v1060_v31 = vld [vmem:[%s1634_s0 + $0xe8] sm:$0xff] }
   0xa   :  { %368 = vmatpush.bf16.msra.mxu0 %v1063_v7  ;;  %1068 = vmatpush.bf16.msra.mxu1 %v1063_v7  ;;  %v1037_v32 = vld [vmem:[%s1634_s0 + $0x30] sm:$0xff]  ;;  %v1038_v36 = vld [vmem:[%s1634_s0 + $0x38] sm:$0xff]  ;;  %v1240_v40 = vld [vmem:[%s1632_s2] ss:$0 sm:$0xff] }
   0xb   :  { %1069 = vmatpush.bf16.msra.mxu2 %v1063_v7  ;;  %1070 = vmatpush.bf16.msra.mxu3 %v1063_v7  ;;  %v1045_v33 = vld [vmem:[%s1634_s0 + $0x70] sm:$0xff]  ;;  %v1046_v37 = vld [vmem:[%s1634_s0 + $0x78] sm:$0xff]  ;;  %v1245_v41 = vld [vmem:[%s1633_s3] ss:$0 sm:$0xff] }
   0xc   :  { %v1053_v34 = vld [vmem:[%s1634_s0 + $0xb0] sm:$0xff]  ;;  %v1054_v38 = vld [vmem:[%s1634_s0 + $0xb8] sm:$0xff] }
   0xd   :  { %999 = vmatmul.msk.bf16.vlgmr.msra.gmra.mxu0 %vm257_vm2, %v1031_v8  ;;  %1007 = vmatmul.msk.bf16.vlgmr.msra.gmra.mxu1 %vm257_vm2, %v1039_v9  ;;  %v1061_v35 = vld [vmem:[%s1634_s0 + $0xf0] sm:$0xff]  ;;  %v1062_v39 = vld [vmem:[%s1634_s0 + $0xf8] sm:$0xff] }
   0xe   :  { %1015 = vmatmul.msk.bf16.vlgmr.msra.gmra.mxu2 %vm257_vm2, %v1047_v10  ;;  %1023 = vmatmul.msk.bf16.vlgmr.msra.gmra.mxu3 %vm257_vm2, %v1055_v11 }
  0x1d   :  { %1000 = vmatmul.msk.bf16.gmra.mxu0 %vm257_vm2, %v1032_v12  ;;  %1008 = vmatmul.msk.bf16.gmra.mxu1 %vm257_vm2, %v1040_v13 }
  0x1e   :  { %1016 = vmatmul.msk.bf16.gmra.mxu2 %vm257_vm2, %v1048_v14  ;;  %1024 = vmatmul.msk.bf16.gmra.mxu3 %vm257_vm2, %v1056_v15 }
  0x2d   :  { %1001 = vmatmul.msk.bf16.gmra.mxu0 %vm257_vm2, %v1033_v16  ;;  %1009 = vmatmul.msk.bf16.gmra.mxu1 %vm257_vm2, %v1041_v17 }
  0x2e   :  { %1017 = vmatmul.msk.bf16.gmra.mxu2 %vm257_vm2, %v1049_v18  ;;  %1025 = vmatmul.msk.bf16.gmra.mxu3 %vm257_vm2, %v1057_v19 }
  0x3d   :  { %1002 = vmatmul.msk.bf16.gmra.mxu0 %vm257_vm2, %v1034_v20  ;;  %1010 = vmatmul.msk.bf16.gmra.mxu1 %vm257_vm2, %v1042_v21 }
  0x3e   :  { %1018 = vmatmul.msk.bf16.gmra.mxu2 %vm257_vm2, %v1050_v22  ;;  %1026 = vmatmul.msk.bf16.gmra.mxu3 %vm257_vm2, %v1058_v23 }
  0x4d   :  { %1003 = vmatmul.msk.bf16.gmra.mxu0 %vm257_vm2, %v1035_v24  ;;  %1011 = vmatmul.msk.bf16.gmra.mxu1 %vm257_vm2, %v1043_v25 }
  0x4e   :  { %1019 = vmatmul.msk.bf16.gmra.mxu2 %vm257_vm2, %v1051_v26  ;;  %1027 = vmatmul.msk.bf16.gmra.mxu3 %vm257_vm2, %v1059_v27 }
  0x5d   :  { %1004 = vmatmul.msk.bf16.gmra.mxu0 %vm257_vm2, %v1036_v28  ;;  %1012 = vmatmul.msk.bf16.gmra.mxu1 %vm257_vm2, %v1044_v29 }
  0x5e   :  { %1020 = vmatmul.msk.bf16.gmra.mxu2 %vm257_vm2, %v1052_v30  ;;  %1028 = vmatmul.msk.bf16.gmra.mxu3 %vm257_vm2, %v1060_v31 }
  0x6d   :  { %1005 = vmatmul.msk.bf16.gmra.mxu0 %vm257_vm2, %v1037_v32  ;;  %1013 = vmatmul.msk.bf16.gmra.mxu1 %vm257_vm2, %v1045_v33 }
  0x6e   :  { %1021 = vmatmul.msk.bf16.gmra.mxu2 %vm257_vm2, %v1053_v34  ;;  %1029 = vmatmul.msk.bf16.gmra.mxu3 %vm257_vm2, %v1061_v35 }
  0x7d   :  { %1006 = vmatmul.msk.bf16.gmra.mxu0 %vm257_vm2, %v1038_v36  ;;  %1014 = vmatmul.msk.bf16.gmra.mxu1 %vm257_vm2, %v1046_v37 }
  0x7e   :  { %1022 = vmatmul.msk.bf16.gmra.mxu2 %vm257_vm2, %v1054_v38  ;;  %1030 = vmatmul.msk.bf16.gmra.mxu3 %vm257_vm2, %v1062_v39 }
  0x8a   :  { %v370_v42 = vpop.f32.mrf.mxu0  ;;  %v410_v43 = vpop.f32.mrf.mxu1 }
  0x8b   :  { %v534_v44 = vmul.f32 %v1240_v40, %v370_v42  ;;  %v550_v45 = vmul.f32 %v1240_v40, %v410_v43 }
  0x8d   :  { %v602_v46 = vadd.f32 %v1245_v41, %v534_v44  ;;  %v618_v47 = vadd.f32 %v1245_v41, %v550_v45 }
  0x8f   :  { %v666_v48 = vmax.f32 %v602_v46, 0.0  ;;  %v682_v49 = vmax.f32 %v618_v47, 0.0 }
  0x91   :  { %v730_v50 = vpack.c.bf16 %v666_v48, %v666_v48  ;;  %v746_v51 = vpack.c.bf16 %v682_v49, %v682_v49  ;;  %v450_v52 = vpop.f32.mrf.mxu2  ;;  %v490_v53 = vpop.f32.mrf.mxu3 }
  0x92   :  { %v566_v54 = vmul.f32 %v1240_v40, %v450_v52  ;;  %v582_v55 = vmul.f32 %v1240_v40, %v490_v53  ;;  %v372_v56 = vpop.f32.mrf.mxu0  ;;  %v412_v57 = vpop.f32.mrf.mxu1 }
  0x93   :  { %795 = vst.msk [vmem:[%s1635_s4] sm:$0xf] %vm794_vm3, %v730_v50  ;;  %v535_v58 = vmul.f32 %v1240_v40, %v372_v56  ;;  %v551_v59 = vmul.f32 %v1240_v40, %v412_v57 }
  0x94   :  { %811 = vst.msk [vmem:[%s1635_s4 + $0x40] sm:$0xf] %vm794_vm3, %v746_v51  ;;  %v634_v60 = vadd.f32 %v1245_v41, %v566_v54  ;;  %v650_v61 = vadd.f32 %v1245_v41, %v582_v55 }
  0x95   :  { %v603_v62 = vadd.f32 %v1245_v41, %v535_v58  ;;  %v619_v63 = vadd.f32 %v1245_v41, %v551_v59 }
  0x96   :  { %v698_v0 = vmax.f32 %v634_v60, 0.0  ;;  %v714_v1 = vmax.f32 %v650_v61, 0.0 }
  0x97   :  { %v667_v2 = vmax.f32 %v603_v62, 0.0  ;;  %v683_v3 = vmax.f32 %v619_v63, 0.0 }
  0x98   :  { %v762_v4 = vpack.c.bf16 %v698_v0, %v698_v0  ;;  %v778_v5 = vpack.c.bf16 %v714_v1, %v714_v1 }
  0x99   :  { %v731_v6 = vpack.c.bf16 %v667_v2, %v667_v2  ;;  %v747_v7 = vpack.c.bf16 %v683_v3, %v683_v3  ;;  %v452_v8 = vpop.f32.mrf.mxu2  ;;  %v492_v9 = vpop.f32.mrf.mxu3 }
  0x9a   :  { %827 = vst.msk [vmem:[%s1635_s4 + $0x80] sm:$0xf] %vm794_vm3, %v762_v4  ;;  %v567_v10 = vmul.f32 %v1240_v40, %v452_v8  ;;  %v583_v11 = vmul.f32 %v1240_v40, %v492_v9  ;;  %v375_v12 = vpop.f32.mrf.mxu0  ;;  %v415_v13 = vpop.f32.mrf.mxu1 }
  0x9b   :  { %843 = vst.msk [vmem:[%s1635_s4 + $0xc0] sm:$0xf] %vm794_vm3, %v778_v5  ;;  %v536_v14 = vmul.f32 %v1240_v40, %v375_v12  ;;  %v552_v15 = vmul.f32 %v1240_v40, %v415_v13 }
  0x9c   :  { %796 = vst.msk [vmem:[%s1635_s4 + $0x4] sm:$0xf] %vm794_vm3, %v731_v6  ;;  %v635_v16 = vadd.f32 %v1245_v41, %v567_v10  ;;  %v651_v17 = vadd.f32 %v1245_v41, %v583_v11 }
  0x9d   :  { %812 = vst.msk [vmem:[%s1635_s4 + $0x44] sm:$0xf] %vm794_vm3, %v747_v7  ;;  %v604_v18 = vadd.f32 %v1245_v41, %v536_v14  ;;  %v620_v19 = vadd.f32 %v1245_v41, %v552_v15 }
  0x9e   :  { %v699_v20 = vmax.f32 %v635_v16, 0.0  ;;  %v715_v21 = vmax.f32 %v651_v17, 0.0 }
  0x9f   :  { %v668_v22 = vmax.f32 %v604_v18, 0.0  ;;  %v684_v23 = vmax.f32 %v620_v19, 0.0 }
  0xa0   :  { %v763_v24 = vpack.c.bf16 %v699_v20, %v699_v20  ;;  %v779_v25 = vpack.c.bf16 %v715_v21, %v715_v21 }
  0xa1   :  { %v732_v26 = vpack.c.bf16 %v668_v22, %v668_v22  ;;  %v748_v27 = vpack.c.bf16 %v684_v23, %v684_v23  ;;  %v455_v28 = vpop.f32.mrf.mxu2  ;;  %v495_v29 = vpop.f32.mrf.mxu3 }
  0xa2   :  { %828 = vst.msk [vmem:[%s1635_s4 + $0x84] sm:$0xf] %vm794_vm3, %v763_v24  ;;  %v568_v30 = vmul.f32 %v1240_v40, %v455_v28  ;;  %v584_v31 = vmul.f32 %v1240_v40, %v495_v29  ;;  %v377_v32 = vpop.f32.mrf.mxu0  ;;  %v417_v33 = vpop.f32.mrf.mxu1 }
  0xa3   :  { %844 = vst.msk [vmem:[%s1635_s4 + $0xc4] sm:$0xf] %vm794_vm3, %v779_v25  ;;  %v537_v34 = vmul.f32 %v1240_v40, %v377_v32  ;;  %v553_v35 = vmul.f32 %v1240_v40, %v417_v33 }
  0xa4   :  { %797 = vst.msk [vmem:[%s1635_s4 + $0x8] sm:$0xf] %vm794_vm3, %v732_v26  ;;  %v636_v36 = vadd.f32 %v1245_v41, %v568_v30  ;;  %v652_v37 = vadd.f32 %v1245_v41, %v584_v31 }
  0xa5   :  { %813 = vst.msk [vmem:[%s1635_s4 + $0x48] sm:$0xf] %vm794_vm3, %v748_v27  ;;  %v605_v38 = vadd.f32 %v1245_v41, %v537_v34  ;;  %v621_v39 = vadd.f32 %v1245_v41, %v553_v35 }
  0xa6   :  { %v700_v42 = vmax.f32 %v636_v36, 0.0  ;;  %v716_v43 = vmax.f32 %v652_v37, 0.0 }
  0xa7   :  { %v669_v44 = vmax.f32 %v605_v38, 0.0  ;;  %v685_v45 = vmax.f32 %v621_v39, 0.0 }
  0xa8   :  { %v764_v46 = vpack.c.bf16 %v700_v42, %v700_v42  ;;  %v780_v47 = vpack.c.bf16 %v716_v43, %v716_v43 }
  0xa9   :  { %v733_v48 = vpack.c.bf16 %v669_v44, %v669_v44  ;;  %v749_v49 = vpack.c.bf16 %v685_v45, %v685_v45  ;;  %v457_v50 = vpop.f32.mrf.mxu2  ;;  %v497_v51 = vpop.f32.mrf.mxu3 }
  0xaa   :  { %829 = vst.msk [vmem:[%s1635_s4 + $0x88] sm:$0xf] %vm794_vm3, %v764_v46  ;;  %v569_v52 = vmul.f32 %v1240_v40, %v457_v50  ;;  %v585_v53 = vmul.f32 %v1240_v40, %v497_v51  ;;  %v380_v54 = vpop.f32.mrf.mxu0  ;;  %v420_v55 = vpop.f32.mrf.mxu1 }
  0xab   :  { %845 = vst.msk [vmem:[%s1635_s4 + $0xc8] sm:$0xf] %vm794_vm3, %v780_v47  ;;  %v538_v56 = vmul.f32 %v1240_v40, %v380_v54  ;;  %v554_v57 = vmul.f32 %v1240_v40, %v420_v55 }
  0xac   :  { %798 = vst.msk [vmem:[%s1635_s4 + $0xc] sm:$0xf] %vm794_vm3, %v733_v48  ;;  %v637_v58 = vadd.f32 %v1245_v41, %v569_v52  ;;  %v653_v59 = vadd.f32 %v1245_v41, %v585_v53 }
  0xad   :  { %814 = vst.msk [vmem:[%s1635_s4 + $0x4c] sm:$0xf] %vm794_vm3, %v749_v49  ;;  %v606_v60 = vadd.f32 %v1245_v41, %v538_v56  ;;  %v622_v61 = vadd.f32 %v1245_v41, %v554_v57 }
  0xae   :  { %v701_v62 = vmax.f32 %v637_v58, 0.0  ;;  %v717_v63 = vmax.f32 %v653_v59, 0.0 }
  0xaf   :  { %v670_v0 = vmax.f32 %v606_v60, 0.0  ;;  %v686_v1 = vmax.f32 %v622_v61, 0.0 }
  0xb0   :  { %v765_v2 = vpack.c.bf16 %v701_v62, %v701_v62  ;;  %v781_v3 = vpack.c.bf16 %v717_v63, %v717_v63 }
  0xb1   :  { %v734_v4 = vpack.c.bf16 %v670_v0, %v670_v0  ;;  %v750_v5 = vpack.c.bf16 %v686_v1, %v686_v1  ;;  %v460_v6 = vpop.f32.mrf.mxu2  ;;  %v500_v7 = vpop.f32.mrf.mxu3 }
  0xb2   :  { %830 = vst.msk [vmem:[%s1635_s4 + $0x8c] sm:$0xf] %vm794_vm3, %v765_v2  ;;  %v570_v8 = vmul.f32 %v1240_v40, %v460_v6  ;;  %v586_v9 = vmul.f32 %v1240_v40, %v500_v7  ;;  %v382_v10 = vpop.f32.mrf.mxu0  ;;  %v422_v11 = vpop.f32.mrf.mxu1 }
  0xb3   :  { %846 = vst.msk [vmem:[%s1635_s4 + $0xcc] sm:$0xf] %vm794_vm3, %v781_v3  ;;  %v539_v12 = vmul.f32 %v1240_v40, %v382_v10  ;;  %v555_v13 = vmul.f32 %v1240_v40, %v422_v11 }
  0xb4   :  { %799 = vst.msk [vmem:[%s1635_s4 + $0x10] sm:$0xf] %vm794_vm3, %v734_v4  ;;  %v638_v14 = vadd.f32 %v1245_v41, %v570_v8  ;;  %v654_v15 = vadd.f32 %v1245_v41, %v586_v9 }
  0xb5   :  { %815 = vst.msk [vmem:[%s1635_s4 + $0x50] sm:$0xf] %vm794_vm3, %v750_v5  ;;  %v607_v16 = vadd.f32 %v1245_v41, %v539_v12  ;;  %v623_v17 = vadd.f32 %v1245_v41, %v555_v13 }
  0xb6   :  { %v702_v18 = vmax.f32 %v638_v14, 0.0  ;;  %v718_v19 = vmax.f32 %v654_v15, 0.0 }
  0xb7   :  { %v671_v20 = vmax.f32 %v607_v16, 0.0  ;;  %v687_v21 = vmax.f32 %v623_v17, 0.0 }
  0xb8   :  { %v766_v22 = vpack.c.bf16 %v702_v18, %v702_v18  ;;  %v782_v23 = vpack.c.bf16 %v718_v19, %v718_v19 }
  0xb9   :  { %v735_v24 = vpack.c.bf16 %v671_v20, %v671_v20  ;;  %v751_v25 = vpack.c.bf16 %v687_v21, %v687_v21  ;;  %v462_v26 = vpop.f32.mrf.mxu2  ;;  %v502_v27 = vpop.f32.mrf.mxu3 }
  0xba   :  { %831 = vst.msk [vmem:[%s1635_s4 + $0x90] sm:$0xf] %vm794_vm3, %v766_v22  ;;  %v571_v28 = vmul.f32 %v1240_v40, %v462_v26  ;;  %v587_v29 = vmul.f32 %v1240_v40, %v502_v27  ;;  %v385_v30 = vpop.f32.mrf.mxu0  ;;  %v425_v31 = vpop.f32.mrf.mxu1 }
  0xbb   :  { %847 = vst.msk [vmem:[%s1635_s4 + $0xd0] sm:$0xf] %vm794_vm3, %v782_v23  ;;  %v540_v32 = vmul.f32 %v1240_v40, %v385_v30  ;;  %v556_v33 = vmul.f32 %v1240_v40, %v425_v31 }
  0xbc   :  { %800 = vst.msk [vmem:[%s1635_s4 + $0x14] sm:$0xf] %vm794_vm3, %v735_v24  ;;  %v639_v34 = vadd.f32 %v1245_v41, %v571_v28  ;;  %v655_v35 = vadd.f32 %v1245_v41, %v587_v29 }
  0xbd   :  { %816 = vst.msk [vmem:[%s1635_s4 + $0x54] sm:$0xf] %vm794_vm3, %v751_v25  ;;  %v608_v36 = vadd.f32 %v1245_v41, %v540_v32  ;;  %v624_v37 = vadd.f32 %v1245_v41, %v556_v33 }
  0xbe   :  { %v703_v38 = vmax.f32 %v639_v34, 0.0  ;;  %v719_v39 = vmax.f32 %v655_v35, 0.0 }
  0xbf   :  { %v672_v42 = vmax.f32 %v608_v36, 0.0  ;;  %v688_v43 = vmax.f32 %v624_v37, 0.0 }
  0xc0   :  { %v767_v44 = vpack.c.bf16 %v703_v38, %v703_v38  ;;  %v783_v45 = vpack.c.bf16 %v719_v39, %v719_v39 }
  0xc1   :  { %v736_v46 = vpack.c.bf16 %v672_v42, %v672_v42  ;;  %v752_v47 = vpack.c.bf16 %v688_v43, %v688_v43  ;;  %v465_v48 = vpop.f32.mrf.mxu2  ;;  %v505_v49 = vpop.f32.mrf.mxu3 }
  0xc2   :  { %832 = vst.msk [vmem:[%s1635_s4 + $0x94] sm:$0xf] %vm794_vm3, %v767_v44  ;;  %v572_v50 = vmul.f32 %v1240_v40, %v465_v48  ;;  %v588_v51 = vmul.f32 %v1240_v40, %v505_v49  ;;  %v387_v52 = vpop.f32.mrf.mxu0  ;;  %v427_v53 = vpop.f32.mrf.mxu1 }
  0xc3   :  { %848 = vst.msk [vmem:[%s1635_s4 + $0xd4] sm:$0xf] %vm794_vm3, %v783_v45  ;;  %v541_v54 = vmul.f32 %v1240_v40, %v387_v52  ;;  %v557_v55 = vmul.f32 %v1240_v40, %v427_v53 }
  0xc4   :  { %801 = vst.msk [vmem:[%s1635_s4 + $0x18] sm:$0xf] %vm794_vm3, %v736_v46  ;;  %v640_v56 = vadd.f32 %v1245_v41, %v572_v50  ;;  %v656_v57 = vadd.f32 %v1245_v41, %v588_v51 }
  0xc5   :  { %817 = vst.msk [vmem:[%s1635_s4 + $0x58] sm:$0xf] %vm794_vm3, %v752_v47  ;;  %v609_v58 = vadd.f32 %v1245_v41, %v541_v54  ;;  %v625_v59 = vadd.f32 %v1245_v41, %v557_v55 }
  0xc6   :  { %v704_v60 = vmax.f32 %v640_v56, 0.0  ;;  %v720_v61 = vmax.f32 %v656_v57, 0.0 }
  0xc7   :  { %v673_v62 = vmax.f32 %v609_v58, 0.0  ;;  %v689_v63 = vmax.f32 %v625_v59, 0.0 }
  0xc8   :  { %v768_v0 = vpack.c.bf16 %v704_v60, %v704_v60  ;;  %v784_v1 = vpack.c.bf16 %v720_v61, %v720_v61 }
  0xc9   :  { %v737_v2 = vpack.c.bf16 %v673_v62, %v673_v62  ;;  %v753_v3 = vpack.c.bf16 %v689_v63, %v689_v63  ;;  %v467_v4 = vpop.f32.mrf.mxu2  ;;  %v507_v5 = vpop.f32.mrf.mxu3 }
  0xca   :  { %833 = vst.msk [vmem:[%s1635_s4 + $0x98] sm:$0xf] %vm794_vm3, %v768_v0  ;;  %v573_v6 = vmul.f32 %v1240_v40, %v467_v4  ;;  %v589_v7 = vmul.f32 %v1240_v40, %v507_v5  ;;  %v390_v8 = vpop.f32.mrf.mxu0  ;;  %v430_v9 = vpop.f32.mrf.mxu1 }
  0xcb   :  { %849 = vst.msk [vmem:[%s1635_s4 + $0xd8] sm:$0xf] %vm794_vm3, %v784_v1  ;;  %v542_v10 = vmul.f32 %v1240_v40, %v390_v8  ;;  %v558_v11 = vmul.f32 %v1240_v40, %v430_v9 }
  0xcc   :  { %802 = vst.msk [vmem:[%s1635_s4 + $0x1c] sm:$0xf] %vm794_vm3, %v737_v2  ;;  %v641_v12 = vadd.f32 %v1245_v41, %v573_v6  ;;  %v657_v13 = vadd.f32 %v1245_v41, %v589_v7 }
  0xcd   :  { %818 = vst.msk [vmem:[%s1635_s4 + $0x5c] sm:$0xf] %vm794_vm3, %v753_v3  ;;  %v610_v14 = vadd.f32 %v1245_v41, %v542_v10  ;;  %v626_v15 = vadd.f32 %v1245_v41, %v558_v11 }
  0xce   :  { %v705_v16 = vmax.f32 %v641_v12, 0.0  ;;  %v721_v17 = vmax.f32 %v657_v13, 0.0 }
  0xcf   :  { %v674_v18 = vmax.f32 %v610_v14, 0.0  ;;  %v690_v19 = vmax.f32 %v626_v15, 0.0 }
  0xd0   :  { %v769_v20 = vpack.c.bf16 %v705_v16, %v705_v16  ;;  %v785_v21 = vpack.c.bf16 %v721_v17, %v721_v17 }
  0xd1   :  { %v738_v22 = vpack.c.bf16 %v674_v18, %v674_v18  ;;  %v754_v23 = vpack.c.bf16 %v690_v19, %v690_v19  ;;  %v470_v24 = vpop.f32.mrf.mxu2  ;;  %v510_v25 = vpop.f32.mrf.mxu3 }
  0xd2   :  { %834 = vst.msk [vmem:[%s1635_s4 + $0x9c] sm:$0xf] %vm794_vm3, %v769_v20  ;;  %v574_v26 = vmul.f32 %v1240_v40, %v470_v24  ;;  %v590_v27 = vmul.f32 %v1240_v40, %v510_v25  ;;  %v392_v28 = vpop.f32.mrf.mxu0  ;;  %v432_v29 = vpop.f32.mrf.mxu1 }
  0xd3   :  { %850 = vst.msk [vmem:[%s1635_s4 + $0xdc] sm:$0xf] %vm794_vm3, %v785_v21  ;;  %v543_v30 = vmul.f32 %v1240_v40, %v392_v28  ;;  %v559_v31 = vmul.f32 %v1240_v40, %v432_v29 }
  0xd4   :  { %803 = vst.msk [vmem:[%s1635_s4 + $0x20] sm:$0xf] %vm794_vm3, %v738_v22  ;;  %v642_v32 = vadd.f32 %v1245_v41, %v574_v26  ;;  %v658_v33 = vadd.f32 %v1245_v41, %v590_v27 }
  0xd5   :  { %819 = vst.msk [vmem:[%s1635_s4 + $0x60] sm:$0xf] %vm794_vm3, %v754_v23  ;;  %v611_v34 = vadd.f32 %v1245_v41, %v543_v30  ;;  %v627_v35 = vadd.f32 %v1245_v41, %v559_v31 }
  0xd6   :  { %v706_v36 = vmax.f32 %v642_v32, 0.0  ;;  %v722_v37 = vmax.f32 %v658_v33, 0.0 }
  0xd7   :  { %v675_v38 = vmax.f32 %v611_v34, 0.0  ;;  %v691_v39 = vmax.f32 %v627_v35, 0.0 }
  0xd8   :  { %v770_v42 = vpack.c.bf16 %v706_v36, %v706_v36  ;;  %v786_v43 = vpack.c.bf16 %v722_v37, %v722_v37 }
  0xd9   :  { %v739_v44 = vpack.c.bf16 %v675_v38, %v675_v38  ;;  %v755_v45 = vpack.c.bf16 %v691_v39, %v691_v39  ;;  %v472_v46 = vpop.f32.mrf.mxu2  ;;  %v512_v47 = vpop.f32.mrf.mxu3 }
  0xda   :  { %835 = vst.msk [vmem:[%s1635_s4 + $0xa0] sm:$0xf] %vm794_vm3, %v770_v42  ;;  %v575_v48 = vmul.f32 %v1240_v40, %v472_v46  ;;  %v591_v49 = vmul.f32 %v1240_v40, %v512_v47  ;;  %v395_v50 = vpop.f32.mrf.mxu0  ;;  %v435_v51 = vpop.f32.mrf.mxu1 }
  0xdb   :  { %851 = vst.msk [vmem:[%s1635_s4 + $0xe0] sm:$0xf] %vm794_vm3, %v786_v43  ;;  %v544_v52 = vmul.f32 %v1240_v40, %v395_v50  ;;  %v560_v53 = vmul.f32 %v1240_v40, %v435_v51 }
  0xdc   :  { %804 = vst.msk [vmem:[%s1635_s4 + $0x24] sm:$0xf] %vm794_vm3, %v739_v44  ;;  %v643_v54 = vadd.f32 %v1245_v41, %v575_v48  ;;  %v659_v55 = vadd.f32 %v1245_v41, %v591_v49 }
  0xdd   :  { %820 = vst.msk [vmem:[%s1635_s4 + $0x64] sm:$0xf] %vm794_vm3, %v755_v45  ;;  %v612_v56 = vadd.f32 %v1245_v41, %v544_v52  ;;  %v628_v57 = vadd.f32 %v1245_v41, %v560_v53 }
  0xde   :  { %v707_v58 = vmax.f32 %v643_v54, 0.0  ;;  %v723_v59 = vmax.f32 %v659_v55, 0.0 }
  0xdf   :  { %v676_v60 = vmax.f32 %v612_v56, 0.0  ;;  %v692_v61 = vmax.f32 %v628_v57, 0.0 }
  0xe0   :  { %v771_v62 = vpack.c.bf16 %v707_v58, %v707_v58  ;;  %v787_v63 = vpack.c.bf16 %v723_v59, %v723_v59 }
  0xe1   :  { %v740_v0 = vpack.c.bf16 %v676_v60, %v676_v60  ;;  %v756_v1 = vpack.c.bf16 %v692_v61, %v692_v61  ;;  %v475_v2 = vpop.f32.mrf.mxu2  ;;  %v515_v3 = vpop.f32.mrf.mxu3 }
  0xe2   :  { %836 = vst.msk [vmem:[%s1635_s4 + $0xa4] sm:$0xf] %vm794_vm3, %v771_v62  ;;  %v576_v4 = vmul.f32 %v1240_v40, %v475_v2  ;;  %v592_v5 = vmul.f32 %v1240_v40, %v515_v3  ;;  %v397_v6 = vpop.f32.mrf.mxu0  ;;  %v437_v7 = vpop.f32.mrf.mxu1 }
  0xe3   :  { %852 = vst.msk [vmem:[%s1635_s4 + $0xe4] sm:$0xf] %vm794_vm3, %v787_v63  ;;  %v545_v8 = vmul.f32 %v1240_v40, %v397_v6  ;;  %v561_v9 = vmul.f32 %v1240_v40, %v437_v7 }
  0xe4   :  { %805 = vst.msk [vmem:[%s1635_s4 + $0x28] sm:$0xf] %vm794_vm3, %v740_v0  ;;  %v644_v10 = vadd.f32 %v1245_v41, %v576_v4  ;;  %v660_v11 = vadd.f32 %v1245_v41, %v592_v5 }
  0xe5   :  { %821 = vst.msk [vmem:[%s1635_s4 + $0x68] sm:$0xf] %vm794_vm3, %v756_v1  ;;  %v613_v12 = vadd.f32 %v1245_v41, %v545_v8  ;;  %v629_v13 = vadd.f32 %v1245_v41, %v561_v9 }
  0xe6   :  { %v708_v14 = vmax.f32 %v644_v10, 0.0  ;;  %v724_v15 = vmax.f32 %v660_v11, 0.0 }
  0xe7   :  { %v677_v16 = vmax.f32 %v613_v12, 0.0  ;;  %v693_v17 = vmax.f32 %v629_v13, 0.0 }
  0xe8   :  { %v772_v18 = vpack.c.bf16 %v708_v14, %v708_v14  ;;  %v788_v19 = vpack.c.bf16 %v724_v15, %v724_v15 }
  0xe9   :  { %v741_v20 = vpack.c.bf16 %v677_v16, %v677_v16  ;;  %v757_v21 = vpack.c.bf16 %v693_v17, %v693_v17  ;;  %v477_v22 = vpop.f32.mrf.mxu2  ;;  %v517_v23 = vpop.f32.mrf.mxu3 }
  0xea   :  { %837 = vst.msk [vmem:[%s1635_s4 + $0xa8] sm:$0xf] %vm794_vm3, %v772_v18  ;;  %v577_v24 = vmul.f32 %v1240_v40, %v477_v22  ;;  %v593_v25 = vmul.f32 %v1240_v40, %v517_v23  ;;  %v400_v26 = vpop.f32.mrf.mxu0  ;;  %v440_v27 = vpop.f32.mrf.mxu1 }
  0xeb   :  { %853 = vst.msk [vmem:[%s1635_s4 + $0xe8] sm:$0xf] %vm794_vm3, %v788_v19  ;;  %v546_v28 = vmul.f32 %v1240_v40, %v400_v26  ;;  %v562_v29 = vmul.f32 %v1240_v40, %v440_v27 }
  0xec   :  { %806 = vst.msk [vmem:[%s1635_s4 + $0x2c] sm:$0xf] %vm794_vm3, %v741_v20  ;;  %v645_v30 = vadd.f32 %v1245_v41, %v577_v24  ;;  %v661_v31 = vadd.f32 %v1245_v41, %v593_v25 }
  0xed   :  { %822 = vst.msk [vmem:[%s1635_s4 + $0x6c] sm:$0xf] %vm794_vm3, %v757_v21  ;;  %v614_v32 = vadd.f32 %v1245_v41, %v546_v28  ;;  %v630_v33 = vadd.f32 %v1245_v41, %v562_v29 }
  0xee   :  { %v709_v34 = vmax.f32 %v645_v30, 0.0  ;;  %v725_v35 = vmax.f32 %v661_v31, 0.0 }
  0xef   :  { %v678_v36 = vmax.f32 %v614_v32, 0.0  ;;  %v694_v37 = vmax.f32 %v630_v33, 0.0 }
  0xf0   :  { %v773_v38 = vpack.c.bf16 %v709_v34, %v709_v34  ;;  %v789_v39 = vpack.c.bf16 %v725_v35, %v725_v35 }
  0xf1   :  { %v742_v42 = vpack.c.bf16 %v678_v36, %v678_v36  ;;  %v758_v43 = vpack.c.bf16 %v694_v37, %v694_v37  ;;  %v480_v44 = vpop.f32.mrf.mxu2  ;;  %v520_v45 = vpop.f32.mrf.mxu3 }
  0xf2   :  { %838 = vst.msk [vmem:[%s1635_s4 + $0xac] sm:$0xf] %vm794_vm3, %v773_v38  ;;  %v578_v46 = vmul.f32 %v1240_v40, %v480_v44  ;;  %v594_v47 = vmul.f32 %v1240_v40, %v520_v45  ;;  %v402_v48 = vpop.f32.mrf.mxu0  ;;  %v442_v49 = vpop.f32.mrf.mxu1 }
  0xf3   :  { %854 = vst.msk [vmem:[%s1635_s4 + $0xec] sm:$0xf] %vm794_vm3, %v789_v39  ;;  %v547_v50 = vmul.f32 %v1240_v40, %v402_v48  ;;  %v563_v51 = vmul.f32 %v1240_v40, %v442_v49 }
  0xf4   :  { %807 = vst.msk [vmem:[%s1635_s4 + $0x30] sm:$0xf] %vm794_vm3, %v742_v42  ;;  %v646_v52 = vadd.f32 %v1245_v41, %v578_v46  ;;  %v662_v53 = vadd.f32 %v1245_v41, %v594_v47 }
  0xf5   :  { %823 = vst.msk [vmem:[%s1635_s4 + $0x70] sm:$0xf] %vm794_vm3, %v758_v43  ;;  %v615_v54 = vadd.f32 %v1245_v41, %v547_v50  ;;  %v631_v55 = vadd.f32 %v1245_v41, %v563_v51 }
  0xf6   :  { %v710_v56 = vmax.f32 %v646_v52, 0.0  ;;  %v726_v57 = vmax.f32 %v662_v53, 0.0 }
  0xf7   :  { %v679_v58 = vmax.f32 %v615_v54, 0.0  ;;  %v695_v59 = vmax.f32 %v631_v55, 0.0 }
  0xf8   :  { %v774_v60 = vpack.c.bf16 %v710_v56, %v710_v56  ;;  %v790_v61 = vpack.c.bf16 %v726_v57, %v726_v57 }
  0xf9   :  { %v743_v62 = vpack.c.bf16 %v679_v58, %v679_v58  ;;  %v759_v63 = vpack.c.bf16 %v695_v59, %v695_v59  ;;  %v482_v0 = vpop.f32.mrf.mxu2  ;;  %v522_v1 = vpop.f32.mrf.mxu3 }
  0xfa   :  { %839 = vst.msk [vmem:[%s1635_s4 + $0xb0] sm:$0xf] %vm794_vm3, %v774_v60  ;;  %v579_v2 = vmul.f32 %v1240_v40, %v482_v0  ;;  %v595_v3 = vmul.f32 %v1240_v40, %v522_v1  ;;  %v405_v4 = vpop.f32.mrf.mxu0  ;;  %v445_v5 = vpop.f32.mrf.mxu1 }
  0xfb   :  { %855 = vst.msk [vmem:[%s1635_s4 + $0xf0] sm:$0xf] %vm794_vm3, %v790_v61  ;;  %v548_v6 = vmul.f32 %v1240_v40, %v405_v4  ;;  %v564_v7 = vmul.f32 %v1240_v40, %v445_v5 }
  0xfc   :  { %808 = vst.msk [vmem:[%s1635_s4 + $0x34] sm:$0xf] %vm794_vm3, %v743_v62  ;;  %v647_v8 = vadd.f32 %v1245_v41, %v579_v2  ;;  %v663_v9 = vadd.f32 %v1245_v41, %v595_v3 }
  0xfd   :  { %824 = vst.msk [vmem:[%s1635_s4 + $0x74] sm:$0xf] %vm794_vm3, %v759_v63  ;;  %v616_v10 = vadd.f32 %v1245_v41, %v548_v6  ;;  %v632_v11 = vadd.f32 %v1245_v41, %v564_v7 }
  0xfe   :  { %v711_v12 = vmax.f32 %v647_v8, 0.0  ;;  %v727_v13 = vmax.f32 %v663_v9, 0.0 }
  0xff   :  { %v680_v14 = vmax.f32 %v616_v10, 0.0  ;;  %v696_v15 = vmax.f32 %v632_v11, 0.0 }
 0x100   :  { %v775_v16 = vpack.c.bf16 %v711_v12, %v711_v12  ;;  %v791_v17 = vpack.c.bf16 %v727_v13, %v727_v13 }
 0x101   :  { %v744_v18 = vpack.c.bf16 %v680_v14, %v680_v14  ;;  %v760_v19 = vpack.c.bf16 %v696_v15, %v696_v15  ;;  %v485_v20 = vpop.f32.mrf.mxu2  ;;  %v525_v21 = vpop.f32.mrf.mxu3 }
 0x102   :  { %840 = vst.msk [vmem:[%s1635_s4 + $0xb4] sm:$0xf] %vm794_vm3, %v775_v16  ;;  %v580_v22 = vmul.f32 %v1240_v40, %v485_v20  ;;  %v596_v23 = vmul.f32 %v1240_v40, %v525_v21  ;;  %v407_v24 = vpop.f32.mrf.mxu0  ;;  %v447_v25 = vpop.f32.mrf.mxu1 }
 0x103   :  { %856 = vst.msk [vmem:[%s1635_s4 + $0xf4] sm:$0xf] %vm794_vm3, %v791_v17  ;;  %v549_v26 = vmul.f32 %v1240_v40, %v407_v24  ;;  %v565_v27 = vmul.f32 %v1240_v40, %v447_v25 }
 0x104   :  { %809 = vst.msk [vmem:[%s1635_s4 + $0x38] sm:$0xf] %vm794_vm3, %v744_v18  ;;  %v648_v28 = vadd.f32 %v1245_v41, %v580_v22  ;;  %v664_v29 = vadd.f32 %v1245_v41, %v596_v23 }
 0x105   :  { %825 = vst.msk [vmem:[%s1635_s4 + $0x78] sm:$0xf] %vm794_vm3, %v760_v19  ;;  %v617_v30 = vadd.f32 %v1245_v41, %v549_v26  ;;  %v633_v31 = vadd.f32 %v1245_v41, %v565_v27 }
 0x106   :  { %v712_v32 = vmax.f32 %v648_v28, 0.0  ;;  %v728_v33 = vmax.f32 %v664_v29, 0.0 }
 0x107   :  { %v681_v34 = vmax.f32 %v617_v30, 0.0  ;;  %v697_v35 = vmax.f32 %v633_v31, 0.0 }
 0x108   :  { %v776_v36 = vpack.c.bf16 %v712_v32, %v712_v32  ;;  %v792_v37 = vpack.c.bf16 %v728_v33, %v728_v33 }
 0x109   :  { %v745_v38 = vpack.c.bf16 %v681_v34, %v681_v34  ;;  %v761_v39 = vpack.c.bf16 %v697_v35, %v697_v35  ;;  %v487_v42 = vpop.f32.mrf.mxu2  ;;  %v527_v43 = vpop.f32.mrf.mxu3 }
 0x10a   :  { %841 = vst.msk [vmem:[%s1635_s4 + $0xb8] sm:$0xf] %vm794_vm3, %v776_v36  ;;  %v581_v44 = vmul.f32 %v1240_v40, %v487_v42  ;;  %v597_v45 = vmul.f32 %v1240_v40, %v527_v43 }
 0x10b   :  { %857 = vst.msk [vmem:[%s1635_s4 + $0xf8] sm:$0xf] %vm794_vm3, %v792_v37 }
 0x10c   :  { %810 = vst.msk [vmem:[%s1635_s4 + $0x3c] sm:$0xf] %vm794_vm3, %v745_v38  ;;  %v649_v46 = vadd.f32 %v1245_v41, %v581_v44  ;;  %v665_v47 = vadd.f32 %v1245_v41, %v597_v45 }
 0x10d   :  { %826 = vst.msk [vmem:[%s1635_s4 + $0x7c] sm:$0xf] %vm794_vm3, %v761_v39 }
 0x10e   :  { %v713_v40 = vmax.f32 %v649_v46, 0.0  ;;  %v729_v48 = vmax.f32 %v665_v47, 0.0 }
 0x110   :  { %v777_v49 = vpack.c.bf16 %v713_v40, %v713_v40  ;;  %v793_v50 = vpack.c.bf16 %v729_v48, %v729_v48 }
 0x112   :  { %842 = vst.msk [vmem:[%s1635_s4 + $0xbc] sm:$0xf] %vm794_vm3, %v777_v49 }
 0x113   :  { %858 = vst.msk [vmem:[%s1635_s4 + $0xfc] sm:$0xf] %vm794_vm3, %v793_v50 }

// kernel: _lambda_.16
= control target key start
LH: loop header
LB: loop body
LE: loop exit
PB: predicated region body
PF: predicated region fallthrough
CT: control target
= control target key end

     0   :  { %vm448_vm0 = vcmask 125952   ;;  %s1322_s0 = inlined_call_operand.vmem [shape: bf16[9,128,16], index: 0, kind: input, shape index: {}]   ;;  %s1323_s1 = inlined_call_operand.vmem [shape: bf16[128,16], index: 1, kind: output, shape index: {}]  }
   0x1   :  { %v598_v0 = vld [vmem:[%s1322_s0] sm:$0xff]   ;;  %v885_v17 = vld [vmem:[%s1322_s0 + $0x8] sm:$0xff]   ;;  %v886_v54 = vld [vmem:[%s1322_s0 + $0x10] sm:$0xff]  }
   0x2   :  { %v892_v1 = vld [vmem:[%s1322_s0 + $0x40] sm:$0xff]   ;;  %v599_v3 = vunpack.c.l.bf16 %v598_v0  ;;  %v600_v9 = vunpack.c.h.bf16 %v598_v0  ;;  %v893_v18 = vld [vmem:[%s1322_s0 + $0x48] sm:$0xff]   ;;  %v603_v31 = vunpack.c.l.bf16 %v885_v17  ;;  %v604_v48 = vunpack.c.h.bf16 %v885_v17  ;;  %v894_v59 = vld [vmem:[%s1322_s0 + $0x50] sm:$0xff]  }
   0x3   :  { %v900_v2 = vld [vmem:[%s1322_s0 + $0x80] sm:$0xff]   ;;  %v631_v4 = vunpack.c.l.bf16 %v892_v1  ;;  %v632_v13 = vunpack.c.h.bf16 %v892_v1  ;;  %v901_v23 = vld [vmem:[%s1322_s0 + $0x88] sm:$0xff]   ;;  %v635_v32 = vunpack.c.l.bf16 %v893_v18  ;;  %v636_v52 = vunpack.c.h.bf16 %v893_v18  ;;  %v902_v0 = vld [vmem:[%s1322_s0 + $0x90] sm:$0xff]  }
   0x4   :  { %v663_v5 = vunpack.c.l.bf16 %v900_v2  ;;  %v908_v6 = vld [vmem:[%s1322_s0 + $0xc0] sm:$0xff]   ;;  %v664_v21 = vunpack.c.h.bf16 %v900_v2  ;;  %v909_v28 = vld [vmem:[%s1322_s0 + $0xc8] sm:$0xff]   ;;  %v667_v37 = vunpack.c.l.bf16 %v901_v23  ;;  %v668_v53 = vunpack.c.h.bf16 %v901_v23  ;;  %v910_v1 = vld [vmem:[%s1322_s0 + $0xd0] sm:$0xff]  }
   0x5   :  { %v916_v7 = vld [vmem:[%s1322_s0 + $0x100] sm:$0xff]   ;;  %v73_v14 = vmax.f32 %v599_v3, %v631_v4  ;;  %v695_v15 = vunpack.c.l.bf16 %v908_v6  ;;  %v74_v20 = vmax.f32 %v600_v9, %v632_v13  ;;  %v696_v22 = vunpack.c.h.bf16 %v908_v6  ;;  %v917_v33 = vld [vmem:[%s1322_s0 + $0x108] sm:$0xff]  }
   0x6   :  { %v924_v8 = vld [vmem:[%s1322_s0 + $0x140] sm:$0xff]   ;;  %v727_v16 = vunpack.c.l.bf16 %v916_v7  ;;  %v728_v30 = vunpack.c.h.bf16 %v916_v7  ;;  %v75_v40 = vmax.f32 %v603_v31, %v635_v32  ;;  %v699_v41 = vunpack.c.l.bf16 %v909_v28  ;;  %v925_v42 = vld [vmem:[%s1322_s0 + $0x148] sm:$0xff]   ;;  %v1063_v31 = vld [vmem:[%s1322_s0 + $0x190] sm:$0xff]  }
   0x7   :  { %v932_v10 = vld [vmem:[%s1322_s0 + $0x180] sm:$0xff]   ;;  %v759_v19 = vunpack.c.l.bf16 %v924_v8  ;;  %v122_v24 = vmax.f32 %v73_v14, %v663_v5  ;;  %v123_v29 = vmax.f32 %v74_v20, %v664_v21  ;;  %v760_v35 = vunpack.c.h.bf16 %v924_v8  ;;  %v1021_v43 = vld [vmem:[%s1322_s0 + $0x188] sm:$0xff]  }
   0x8   :  { %v990_v11 = vld [vmem:[%s1322_s0 + $0x1c0] sm:$0xff]   ;;  %v791_v25 = vunpack.c.l.bf16 %v932_v10  ;;  %v792_v36 = vunpack.c.h.bf16 %v932_v10  ;;  %v1026_v44 = vld [vmem:[%s1322_s0 + $0x1c8] sm:$0xff]   ;;  %v731_v47 = vunpack.c.l.bf16 %v917_v33  ;;  %v124_v50 = vmax.f32 %v75_v40, %v667_v37  ;;  %v918_v10 = vld [vmem:[%s1322_s0 + $0x110] sm:$0xff]  }
   0x9   :  { %v995_v12 = vld [vmem:[%s1322_s0 + $0x200] sm:$0xff]   ;;  %v823_v26 = vunpack.c.l.bf16 %v990_v11  ;;  %v171_v34 = vmax.f32 %v122_v24, %v695_v15  ;;  %v172_v38 = vmax.f32 %v123_v29, %v696_v22  ;;  %v824_v39 = vunpack.c.h.bf16 %v990_v11  ;;  %v1032_v51 = vld [vmem:[%s1322_s0 + $0x208] sm:$0xff]   ;;  %v1068_v37 = vld [vmem:[%s1322_s0 + $0x1d0] sm:$0xff]  }
   0xa   :  { %v855_v27 = vunpack.c.l.bf16 %v995_v12  ;;  %v856_v46 = vunpack.c.h.bf16 %v995_v12  ;;  %v763_v56 = vunpack.c.l.bf16 %v925_v42  ;;  %v795_v57 = vunpack.c.l.bf16 %v1021_v43 }
   0xb   :  { %v220_v45 = vmax.f32 %v171_v34, %v727_v16  ;;  %v221_v49 = vmax.f32 %v172_v38, %v728_v30  ;;  %v827_v58 = vunpack.c.l.bf16 %v1026_v44  ;;  %v173_v61 = vmax.f32 %v124_v50, %v699_v41  ;;  %v950_v50 = vld [vmem:[%s1322_s0 + $0x210] sm:$0xff]  }
   0xc   :  { %v76_v62 = vmax.f32 %v604_v48, %v636_v52  ;;  %v700_v63 = vunpack.c.h.bf16 %v909_v28  ;;  %v859_v3 = vunpack.c.l.bf16 %v1032_v51  ;;  %v732_v4 = vunpack.c.h.bf16 %v917_v33  ;;  %v903_v48 = vld [vmem:[%s1322_s0 + $0x98] sm:$0xff]  }
   0xd   :  { %v269_v55 = vmax.f32 %v220_v45, %v759_v19  ;;  %v270_v60 = vmax.f32 %v221_v49, %v760_v35  ;;  %v607_v5 = vunpack.c.l.bf16 %v886_v54  ;;  %v222_v7 = vmax.f32 %v173_v61, %v731_v47  ;;  %v1055_v19 = vld [vmem:[%s1322_s0 + $0x150] sm:$0xff]   ;;  %v895_v47 = vld [vmem:[%s1322_s0 + $0x58] sm:$0xff]  }
   0xe   :  { %v125_v8 = vmax.f32 %v76_v62, %v668_v53  ;;  %v639_v9 = vunpack.c.l.bf16 %v894_v59  ;;  %v764_v12 = vunpack.c.h.bf16 %v925_v42  ;;  %v671_v13 = vunpack.c.l.bf16 %v902_v0  ;;  %v887_v42 = vld [vmem:[%s1322_s0 + $0x18] sm:$0xff]  }
   0xf   :  { %v318_v2 = vmax.f32 %v269_v55, %v791_v25  ;;  %v319_v6 = vmax.f32 %v270_v60, %v792_v36  ;;  %v703_v14 = vunpack.c.l.bf16 %v910_v1  ;;  %v271_v16 = vmax.f32 %v222_v7, %v763_v56  ;;  %v919_v62 = vld [vmem:[%s1322_s0 + $0x118] sm:$0xff]  }
  0x10   :  { %v174_v17 = vmax.f32 %v125_v8, %v700_v63  ;;  %v77_v18 = vmax.f32 %v607_v5, %v639_v9  ;;  %v796_v21 = vunpack.c.h.bf16 %v1021_v43  ;;  %v828_v22 = vunpack.c.h.bf16 %v1026_v44  ;;  %v1109_v7 = vld [vmem:[%s1322_s0 + $0x158] sm:$0xff]  }
  0x11   :  { %v367_v11 = vmax.f32 %v318_v2, %v823_v26  ;;  %v368_v15 = vmax.f32 %v319_v6, %v824_v39  ;;  %v735_v23 = vunpack.c.l.bf16 %v918_v10  ;;  %v320_v25 = vmax.f32 %v271_v16, %v795_v57  ;;  %v911_v57 = vld [vmem:[%s1322_s0 + $0xd8] sm:$0xff]  }
  0x12   :  { %v223_v26 = vmax.f32 %v174_v17, %v732_v4  ;;  %v126_v28 = vmax.f32 %v77_v18, %v671_v13  ;;  %v767_v30 = vunpack.c.l.bf16 %v1055_v19  ;;  %v608_v32 = vunpack.c.h.bf16 %v886_v54  ;;  %v1114_v8 = vld [vmem:[%s1322_s0 + $0x198] sm:$0xff]   ;;  %v888_v18 = vld [vmem:[%s1322_s0 + $0x20] sm:$0xff]  }
  0x13   :  { %v416_v20 = vmax.f32 %v367_v11, %v855_v27  ;;  %v417_v24 = vmax.f32 %v368_v15, %v856_v46  ;;  %v640_v33 = vunpack.c.h.bf16 %v894_v59  ;;  %v369_v34 = vmax.f32 %v320_v25, %v827_v58  ;;  %v1119_v15 = vld [vmem:[%s1322_s0 + $0x1d8] sm:$0xff]  }
  0x14   :  { %v272_v35 = vmax.f32 %v223_v26, %v764_v12  ;;  %v175_v36 = vmax.f32 %v126_v28, %v703_v14  ;;  %v860_v38 = vunpack.c.h.bf16 %v1032_v51  ;;  %v672_v40 = vunpack.c.h.bf16 %v902_v0  ;;  %v1136_v26 = vld [vmem:[%s1322_s0 + $0x218] sm:$0xff]  }
  0x15   :  { %v432_v29 = vpack.c.bf16 %v416_v20, %v416_v20  ;;  %v433_v27 = vpack.c.bf16 %v417_v24, %v417_v24  ;;  %v78_v39 = vmax.f32 %v608_v32, %v640_v33  ;;  %v704_v41 = vunpack.c.h.bf16 %v910_v1 }
  0x16   :  { %v418_v43 = vmax.f32 %v369_v34, %v859_v3  ;;  %v321_v44 = vmax.f32 %v272_v35, %v796_v21  ;;  %v224_v45 = vmax.f32 %v175_v36, %v735_v23  ;;  %v799_v46 = vunpack.c.l.bf16 %v1063_v31  ;;  %v896_v23 = vld [vmem:[%s1322_s0 + $0x60] sm:$0xff]  }
  0x17   :  { %449 = vst.msk [vmem:[%s1323_s1] sm:$0xf] %vm448_vm0, %v432_v29  ;;  %v831_v49 = vunpack.c.l.bf16 %v1068_v37  ;;  %v127_v51 = vmax.f32 %v78_v39, %v672_v40  ;;  %v736_v52 = vunpack.c.h.bf16 %v918_v10  ;;  %v611_v56 = vunpack.c.l.bf16 %v887_v42  ;;  %v1148_v39 = vld [vmem:[%s1322_s0 + $0x120] sm:$0xff]  }
  0x18   :  { %450 = vst.msk [vmem:[%s1323_s1 + $0x4] sm:$0xf] %vm448_vm0, %v433_v27  ;;  %v434_v53 = vpack.c.bf16 %v418_v43, %v418_v43  ;;  %v370_v54 = vmax.f32 %v321_v44, %v828_v22  ;;  %v273_v55 = vmax.f32 %v224_v45, %v767_v30  ;;  %v768_v59 = vunpack.c.h.bf16 %v1055_v19  ;;  %v904_v30 = vld [vmem:[%s1322_s0 + $0xa0] sm:$0xff]  }
  0x19   :  { %v176_v58 = vmax.f32 %v127_v51, %v704_v41  ;;  %v643_v60 = vunpack.c.l.bf16 %v895_v47  ;;  %v675_v61 = vunpack.c.l.bf16 %v903_v48  ;;  %v863_v1 = vunpack.c.l.bf16 %v950_v50 }
  0x1a   :  { %451 = vst.msk [vmem:[%s1323_s1 + $0x8] sm:$0xf] %vm448_vm0, %v434_v53  ;;  %v419_v63 = vmax.f32 %v370_v54, %v860_v38  ;;  %v322_v0 = vmax.f32 %v273_v55, %v799_v46  ;;  %v800_v2 = vunpack.c.h.bf16 %v1063_v31  ;;  %v832_v4 = vunpack.c.h.bf16 %v1068_v37  ;;  %v912_v31 = vld [vmem:[%s1322_s0 + $0xe0] sm:$0xff]  }
  0x1b   :  { %v225_v3 = vmax.f32 %v176_v58, %v736_v52  ;;  %v79_v5 = vmax.f32 %v611_v56, %v643_v60  ;;  %v707_v6 = vunpack.c.l.bf16 %v911_v57  ;;  %v739_v11 = vunpack.c.l.bf16 %v919_v62  ;;  %v1167_v52 = vld [vmem:[%s1322_s0 + $0x1a0] sm:$0xff]  }
  0x1c   :  { %v435_v9 = vpack.c.bf16 %v419_v63, %v419_v63  ;;  %v371_v10 = vmax.f32 %v322_v0, %v831_v49  ;;  %v612_v12 = vunpack.c.h.bf16 %v887_v42  ;;  %v644_v16 = vunpack.c.h.bf16 %v895_v47  ;;  %v1172_v58 = vld [vmem:[%s1322_s0 + $0x1e0] sm:$0xff]   ;;  %v889_v0 = vld [vmem:[%s1322_s0 + $0x28] sm:$0xff]  }
  0x1d   :  { %v274_v13 = vmax.f32 %v225_v3, %v768_v59  ;;  %v128_v14 = vmax.f32 %v79_v5, %v675_v61  ;;  %v676_v17 = vunpack.c.h.bf16 %v903_v48  ;;  %v864_v20 = vunpack.c.h.bf16 %v950_v50  ;;  %v1159_v48 = vld [vmem:[%s1322_s0 + $0x160] sm:$0xff]   ;;  %v897_v5 = vld [vmem:[%s1322_s0 + $0x68] sm:$0xff]  }
  0x1e   :  { %452 = vst.msk [vmem:[%s1323_s1 + $0xc] sm:$0xf] %vm448_vm0, %v435_v9  ;;  %v420_v19 = vmax.f32 %v371_v10, %v863_v1  ;;  %v771_v21 = vunpack.c.l.bf16 %v1109_v7  ;;  %v803_v22 = vunpack.c.l.bf16 %v1114_v8  ;;  %v80_v28 = vmax.f32 %v612_v12, %v644_v16  ;;  %v1177_v59 = vld [vmem:[%s1322_s0 + $0x220] sm:$0xff]  }
  0x1f   :  { %v323_v24 = vmax.f32 %v274_v13, %v800_v2  ;;  %v177_v25 = vmax.f32 %v128_v14, %v707_v6  ;;  %v708_v29 = vunpack.c.h.bf16 %v911_v57  ;;  %v835_v33 = vunpack.c.l.bf16 %v1119_v15  ;;  %v905_v6 = vld [vmem:[%s1322_s0 + $0xa8] sm:$0xff]  }
  0x20   :  { %v436_v32 = vpack.c.bf16 %v420_v19, %v420_v19  ;;  %v740_v27 = vunpack.c.h.bf16 %v919_v62  ;;  %v615_v34 = vunpack.c.l.bf16 %v888_v18  ;;  %v129_v37 = vmax.f32 %v80_v28, %v676_v17 }
  0x21   :  { %v372_v35 = vmax.f32 %v323_v24, %v832_v4  ;;  %v226_v36 = vmax.f32 %v177_v25, %v739_v11  ;;  %v647_v38 = vunpack.c.l.bf16 %v896_v23  ;;  %v867_v40 = vunpack.c.l.bf16 %v1136_v26 }
  0x22   :  { %453 = vst.msk [vmem:[%s1323_s1 + $0x10] sm:$0xf] %vm448_vm0, %v436_v32  ;;  %v772_v41 = vunpack.c.h.bf16 %v1109_v7  ;;  %v679_v42 = vunpack.c.l.bf16 %v904_v30  ;;  %v711_v43 = vunpack.c.l.bf16 %v912_v31  ;;  %v178_v46 = vmax.f32 %v129_v37, %v708_v29  ;;  %v1222_v37 = vld [vmem:[%s1322_s0 + $0x1e8] sm:$0xff]  }
  0x23   :  { %v421_v44 = vmax.f32 %v372_v35, %v864_v20  ;;  %v275_v45 = vmax.f32 %v226_v36, %v771_v21  ;;  %v81_v47 = vmax.f32 %v615_v34, %v647_v38  ;;  %v804_v49 = vunpack.c.h.bf16 %v1114_v8  ;;  %v921_v20 = vld [vmem:[%s1322_s0 + $0x128] sm:$0xff]  }
  0x24   :  { %v836_v50 = vunpack.c.h.bf16 %v1119_v15  ;;  %v743_v51 = vunpack.c.l.bf16 %v1148_v39  ;;  %v616_v53 = vunpack.c.h.bf16 %v888_v18  ;;  %v227_v56 = vmax.f32 %v178_v46, %v740_v27  ;;  %v913_v15 = vld [vmem:[%s1322_s0 + $0xe8] sm:$0xff]  }
  0x25   :  { %v437_v54 = vpack.c.bf16 %v421_v44, %v421_v44  ;;  %v324_v55 = vmax.f32 %v275_v45, %v803_v22  ;;  %v130_v57 = vmax.f32 %v81_v47, %v679_v42  ;;  %v868_v60 = vunpack.c.h.bf16 %v1136_v26  ;;  %v1217_v36 = vld [vmem:[%s1322_s0 + $0x1a8] sm:$0xff]  }
  0x26   :  { %v775_v61 = vunpack.c.l.bf16 %v1159_v48  ;;  %v648_v62 = vunpack.c.h.bf16 %v896_v23  ;;  %v680_v63 = vunpack.c.h.bf16 %v904_v30  ;;  %v276_v2 = vmax.f32 %v227_v56, %v772_v41  ;;  %v929_v30 = vld [vmem:[%s1322_s0 + $0x168] sm:$0xff]  }
  0x27   :  { %454 = vst.msk [vmem:[%s1323_s1 + $0x14] sm:$0xf] %vm448_vm0, %v437_v54  ;;  %v373_v1 = vmax.f32 %v324_v55, %v835_v33  ;;  %v179_v3 = vmax.f32 %v130_v57, %v711_v43  ;;  %v807_v4 = vunpack.c.l.bf16 %v1167_v52  ;;  %v839_v7 = vunpack.c.l.bf16 %v1172_v58  ;;  %v953_v57 = vld [vmem:[%s1322_s0 + $0x228] sm:$0xff]  }
  0x28   :  { %v871_v8 = vunpack.c.l.bf16 %v1177_v59  ;;  %v82_v9 = vmax.f32 %v616_v53, %v648_v62  ;;  %v712_v10 = vunpack.c.h.bf16 %v912_v31  ;;  %v325_v12 = vmax.f32 %v276_v2, %v804_v49  ;;  %v898_v49 = vld [vmem:[%s1322_s0 + $0x70] sm:$0xff]  }
  0x29   :  { %v422_v11 = vmax.f32 %v373_v1, %v867_v40  ;;  %v228_v13 = vmax.f32 %v179_v3, %v743_v51  ;;  %v619_v14 = vunpack.c.l.bf16 %v889_v0  ;;  %v744_v17 = vunpack.c.h.bf16 %v1148_v39 }
  0x2a   :  { %v131_v16 = vmax.f32 %v82_v9, %v680_v63  ;;  %v651_v18 = vunpack.c.l.bf16 %v897_v5  ;;  %v683_v19 = vunpack.c.l.bf16 %v905_v6  ;;  %v374_v22 = vmax.f32 %v325_v12, %v836_v50  ;;  %v906_v50 = vld [vmem:[%s1322_s0 + $0xb0] sm:$0xff]  }
  0x2b   :  { %v438_v21 = vpack.c.bf16 %v422_v11, %v422_v11  ;;  %v277_v23 = vmax.f32 %v228_v13, %v775_v61  ;;  %v776_v24 = vunpack.c.h.bf16 %v1159_v48  ;;  %v808_v26 = vunpack.c.h.bf16 %v1167_v52  ;;  %v890_v48 = vld [vmem:[%s1322_s0 + $0x30] sm:$0xff]  }
  0x2c   :  { %v180_v25 = vmax.f32 %v131_v16, %v712_v10  ;;  %v83_v28 = vmax.f32 %v619_v14, %v651_v18  ;;  %v715_v29 = vunpack.c.l.bf16 %v913_v15  ;;  %v423_v31 = vmax.f32 %v374_v22, %v868_v60  ;;  %v914_v61 = vld [vmem:[%s1322_s0 + $0xf0] sm:$0xff]  }
  0x2d   :  { %455 = vst.msk [vmem:[%s1323_s1 + $0x18] sm:$0xf] %vm448_vm0, %v438_v21  ;;  %v326_v32 = vmax.f32 %v277_v23, %v807_v4  ;;  %v840_v33 = vunpack.c.h.bf16 %v1172_v58  ;;  %v747_v27 = vunpack.c.l.bf16 %v921_v20  ;;  %v620_v38 = vunpack.c.h.bf16 %v889_v0  ;;  %v930_v14 = vld [vmem:[%s1322_s0 + $0x170] sm:$0xff]  }
  0x2e   :  { %v229_v34 = vmax.f32 %v180_v25, %v744_v17  ;;  %v132_v35 = vmax.f32 %v83_v28, %v683_v19  ;;  %v652_v39 = vunpack.c.h.bf16 %v897_v5  ;;  %v439_v40 = vpack.c.bf16 %v423_v31, %v423_v31  ;;  %v922_v5 = vld [vmem:[%s1322_s0 + $0x130] sm:$0xff]   ;;  %v899_v31 = vld [vmem:[%s1322_s0 + $0x78] sm:$0xff]  }
  0x2f   :  { %v375_v41 = vmax.f32 %v326_v32, %v839_v7  ;;  %v779_v42 = vunpack.c.l.bf16 %v929_v30  ;;  %v684_v43 = vunpack.c.h.bf16 %v905_v6  ;;  %v716_v47 = vunpack.c.h.bf16 %v913_v15  ;;  %v938_v17 = vld [vmem:[%s1322_s0 + $0x1b0] sm:$0xff]  }
  0x30   :  { %v278_v44 = vmax.f32 %v229_v34, %v776_v24  ;;  %v181_v45 = vmax.f32 %v132_v35, %v715_v29  ;;  %v84_v46 = vmax.f32 %v620_v38, %v652_v39  ;;  %456 = vst.msk [vmem:[%s1323_s1 + $0x1c] sm:$0xf] %vm448_vm0, %v439_v40  ;;  %v872_v52 = vunpack.c.h.bf16 %v1177_v59  ;;  %v946_v23 = vld [vmem:[%s1322_s0 + $0x1f0] sm:$0xff]   ;;  %v907_v35 = vld [vmem:[%s1322_s0 + $0xb8] sm:$0xff]  }
  0x31   :  { %v424_v51 = vmax.f32 %v375_v41, %v871_v8  ;;  %v811_v53 = vunpack.c.l.bf16 %v1217_v36  ;;  %v843_v54 = vunpack.c.l.bf16 %v1222_v37  ;;  %v748_v60 = vunpack.c.h.bf16 %v921_v20  ;;  %v954_v38 = vld [vmem:[%s1322_s0 + $0x230] sm:$0xff]   ;;  %v915_v41 = vld [vmem:[%s1322_s0 + $0xf8] sm:$0xff]  }
  0x32   :  { %v327_v55 = vmax.f32 %v278_v44, %v808_v26  ;;  %v230_v56 = vmax.f32 %v181_v45, %v747_v27  ;;  %v133_v58 = vmax.f32 %v84_v46, %v684_v43  ;;  %v623_v63 = vunpack.c.l.bf16 %v890_v48 }
  0x33   :  { %v440_v62 = vpack.c.bf16 %v424_v51, %v424_v51  ;;  %v655_v0 = vunpack.c.l.bf16 %v898_v49  ;;  %v687_v59 = vunpack.c.l.bf16 %v906_v50  ;;  %v780_v4 = vunpack.c.h.bf16 %v929_v30  ;;  %v891_v30 = vld [vmem:[%s1322_s0 + $0x38] sm:$0xff]  }
  0x34   :  { %v376_v1 = vmax.f32 %v327_v55, %v840_v33  ;;  %v279_v2 = vmax.f32 %v230_v56, %v779_v42  ;;  %v182_v3 = vmax.f32 %v133_v58, %v716_v47  ;;  %v875_v6 = vunpack.c.l.bf16 %v953_v57 }
  0x35   :  { %457 = vst.msk [vmem:[%s1323_s1 + $0x20] sm:$0xf] %vm448_vm0, %v440_v62  ;;  %v812_v7 = vunpack.c.h.bf16 %v1217_v36  ;;  %v85_v8 = vmax.f32 %v623_v63, %v655_v0  ;;  %v719_v9 = vunpack.c.l.bf16 %v914_v61  ;;  %v844_v13 = vunpack.c.h.bf16 %v1222_v37 }
  0x36   :  { %v425_v10 = vmax.f32 %v376_v1, %v872_v52  ;;  %v328_v11 = vmax.f32 %v279_v2, %v811_v53  ;;  %v231_v12 = vmax.f32 %v182_v3, %v748_v60  ;;  %v751_v16 = vunpack.c.l.bf16 %v922_v5  ;;  %v931_v60 = vld [vmem:[%s1322_s0 + $0x178] sm:$0xff]  }
  0x37   :  { %v134_v15 = vmax.f32 %v85_v8, %v687_v59  ;;  %v624_v18 = vunpack.c.h.bf16 %v890_v48  ;;  %v656_v19 = vunpack.c.h.bf16 %v898_v49  ;;  %v688_v24 = vunpack.c.h.bf16 %v906_v50  ;;  %v923_v50 = vld [vmem:[%s1322_s0 + $0x138] sm:$0xff]  }
  0x38   :  { %v441_v20 = vpack.c.bf16 %v425_v10, %v425_v10  ;;  %v377_v21 = vmax.f32 %v328_v11, %v843_v54  ;;  %v280_v22 = vmax.f32 %v231_v12, %v780_v4  ;;  %v783_v26 = vunpack.c.l.bf16 %v930_v14  ;;  %v939_v2 = vld [vmem:[%s1322_s0 + $0x1b8] sm:$0xff]  }
  0x39   :  { %v183_v25 = vmax.f32 %v134_v15, %v719_v9  ;;  %v86_v28 = vmax.f32 %v624_v18, %v656_v19  ;;  %v720_v29 = vunpack.c.h.bf16 %v914_v61  ;;  %v876_v27 = vunpack.c.h.bf16 %v953_v57  ;;  %v947_v10 = vld [vmem:[%s1322_s0 + $0x1f8] sm:$0xff]  }
  0x3a   :  { %458 = vst.msk [vmem:[%s1323_s1 + $0x24] sm:$0xf] %vm448_vm0, %v441_v20  ;;  %v426_v32 = vmax.f32 %v377_v21, %v875_v6  ;;  %v329_v33 = vmax.f32 %v280_v22, %v812_v7  ;;  %v815_v34 = vunpack.c.l.bf16 %v938_v17  ;;  %v847_v37 = vunpack.c.l.bf16 %v946_v23 }
  0x3b   :  { %v232_v36 = vmax.f32 %v183_v25, %v751_v16  ;;  %v135_v39 = vmax.f32 %v86_v28, %v688_v24  ;;  %v752_v40 = vunpack.c.h.bf16 %v922_v5  ;;  %v627_v44 = vunpack.c.l.bf16 %v891_v30 }
  0x3c   :  { %v442_v42 = vpack.c.bf16 %v426_v32, %v426_v32  ;;  %v378_v43 = vmax.f32 %v329_v33, %v844_v13  ;;  %v659_v45 = vunpack.c.l.bf16 %v899_v31  ;;  %v784_v48 = vunpack.c.h.bf16 %v930_v14 }
  0x3d   :  { %v281_v46 = vmax.f32 %v232_v36, %v783_v26  ;;  %v184_v47 = vmax.f32 %v135_v39, %v720_v29  ;;  %v691_v49 = vunpack.c.l.bf16 %v907_v35  ;;  %v879_v52 = vunpack.c.l.bf16 %v954_v38 }
  0x3e   :  { %459 = vst.msk [vmem:[%s1323_s1 + $0x28] sm:$0xf] %vm448_vm0, %v442_v42  ;;  %v427_v51 = vmax.f32 %v378_v43, %v876_v27  ;;  %v87_v53 = vmax.f32 %v627_v44, %v659_v45  ;;  %v723_v54 = vunpack.c.l.bf16 %v915_v41  ;;  %v816_v57 = vunpack.c.h.bf16 %v938_v17  ;;  %v955_v17 = vld [vmem:[%s1322_s0 + $0x238] sm:$0xff]  }
  0x3f   :  { %v330_v55 = vmax.f32 %v281_v46, %v815_v34  ;;  %v233_v56 = vmax.f32 %v184_v47, %v752_v40  ;;  %v848_v58 = vunpack.c.h.bf16 %v946_v23  ;;  %v755_v63 = vunpack.c.l.bf16 %v923_v50 }
  0x40   :  { %v443_v61 = vpack.c.bf16 %v427_v51, %v427_v51  ;;  %v136_v62 = vmax.f32 %v87_v53, %v691_v49  ;;  %v628_v0 = vunpack.c.h.bf16 %v891_v30  ;;  %v660_v3 = vunpack.c.h.bf16 %v899_v31 }
  0x41   :  { %v379_v59 = vmax.f32 %v330_v55, %v847_v37  ;;  %v282_v1 = vmax.f32 %v233_v56, %v784_v48  ;;  %v692_v4 = vunpack.c.h.bf16 %v907_v35  ;;  %v880_v5 = vunpack.c.h.bf16 %v954_v38 }
  0x42   :  { %460 = vst.msk [vmem:[%s1323_s1 + $0x2c] sm:$0xf] %vm448_vm0, %v443_v61  ;;  %v185_v6 = vmax.f32 %v136_v62, %v723_v54  ;;  %v787_v7 = vunpack.c.l.bf16 %v931_v60  ;;  %v88_v11 = vmax.f32 %v628_v0, %v660_v3  ;;  %v724_v12 = vunpack.c.h.bf16 %v915_v41 }
  0x43   :  { %v428_v8 = vmax.f32 %v379_v59, %v879_v52  ;;  %v331_v9 = vmax.f32 %v282_v1, %v816_v57  ;;  %v819_v14 = vunpack.c.l.bf16 %v939_v2  ;;  %v756_v19 = vunpack.c.h.bf16 %v923_v50 }
  0x44   :  { %v234_v13 = vmax.f32 %v185_v6, %v755_v63  ;;  %v137_v18 = vmax.f32 %v88_v11, %v692_v4  ;;  %v851_v21 = vunpack.c.l.bf16 %v947_v10  ;;  %v788_v24 = vunpack.c.h.bf16 %v931_v60 }
  0x45   :  { %v444_v15 = vpack.c.bf16 %v428_v8, %v428_v8  ;;  %v380_v16 = vmax.f32 %v331_v9, %v848_v58  ;;  %v883_v26 = vunpack.c.l.bf16 %v955_v17  ;;  %v820_v30 = vunpack.c.h.bf16 %v939_v2 }
  0x46   :  { %v283_v20 = vmax.f32 %v234_v13, %v787_v7  ;;  %v186_v23 = vmax.f32 %v137_v18, %v724_v12  ;;  %v852_v33 = vunpack.c.h.bf16 %v947_v10  ;;  %v884_v35 = vunpack.c.h.bf16 %v955_v17 }
  0x47   :  { %461 = vst.msk [vmem:[%s1323_s1 + $0x30] sm:$0xf] %vm448_vm0, %v444_v15  ;;  %v429_v22 = vmax.f32 %v380_v16, %v880_v5 }
  0x48   :  { %v332_v25 = vmax.f32 %v283_v20, %v819_v14  ;;  %v235_v29 = vmax.f32 %v186_v23, %v756_v19 }
  0x49   :  { %v445_v28 = vpack.c.bf16 %v429_v22, %v429_v22 }
  0x4a   :  { %v381_v31 = vmax.f32 %v332_v25, %v851_v21  ;;  %v284_v32 = vmax.f32 %v235_v29, %v788_v24 }
  0x4b   :  { %462 = vst.msk [vmem:[%s1323_s1 + $0x34] sm:$0xf] %vm448_vm0, %v445_v28 }
  0x4c   :  { %v430_v27 = vmax.f32 %v381_v31, %v883_v26  ;;  %v333_v34 = vmax.f32 %v284_v32, %v820_v30 }
  0x4e   :  { %v446_v36 = vpack.c.bf16 %v430_v27, %v430_v27  ;;  %v382_v37 = vmax.f32 %v333_v34, %v852_v33 }
  0x50   :  { %463 = vst.msk [vmem:[%s1323_s1 + $0x38] sm:$0xf] %vm448_vm0, %v446_v36  ;;  %v431_v38 = vmax.f32 %v382_v37, %v884_v35 }
  0x52   :  { %v447_v39 = vpack.c.bf16 %v431_v38, %v431_v38 }
  0x54   :  { %464 = vst.msk [vmem:[%s1323_s1 + $0x3c] sm:$0xf] %vm448_vm0, %v447_v39 }

// kernel: _lambda_.17
= control target key start
LH: loop header
LB: loop body
LE: loop exit
PB: predicated region body
PF: predicated region fallthrough
CT: control target
= control target key end

     0   :  { %vm245_vm0 = vcmask 130048   ;;  %vm295_vm1 = vcmask 125952   ;;  %s662_s4 = inlined_call_operand.vmem [shape: bf16[16,16], index: 4, kind: input, shape index: {}]   ;;  %s663_s0 = inlined_call_operand.vmem [shape: bf16[9,32,16], index: 0, kind: input, shape index: {}]   ;;  %s664_s1 = inlined_call_operand.vmem [shape: f32[9,1,16], index: 1, kind: input, shape index: {}]   ;;  %s665_s2 = inlined_call_operand.vmem [shape: f32[1,16], index: 2, kind: input, shape index: {}]   ;;  %s666_s3 = inlined_call_operand.vmem [shape: f32[1,16], index: 3, kind: input, shape index: {}]   ;;  %s667_s5 = inlined_call_operand.vmem [shape: f32[1,16], index: 5, kind: input, shape index: {}]   ;;  %s668_s6 = inlined_call_operand.vmem [shape: f32[1,16], index: 6, kind: input, shape index: {}]   ;;  %s669_s7 = inlined_call_operand.vmem [shape: bf16[32,16], index: 7, kind: output, shape index: {}]  }
   0x1   :  { %v350_v0 = vld [vmem:[%s662_s4] sm:$0xff]  ;;  %v424_v5 = vld [vmem:[%s663_s0 + $0x10] sm:$0xff]   ;;  %v579_v50 = vld [vmem:[%s664_s1 + $0x8] ss:$0 sm:$0xff] }
   0x2   :  { %v352_v1 = vld [vmem:[%s663_s0] sm:$0xff]   ;;  %259 = vmatpush.bf16.msra.mxu0 %v350_v0  ;;  %440 = vmatpush.bf16.msra.mxu1 %v350_v0  ;;  %v361_v6 = vunpack.c.l.bf16 %v424_v5  ;;  %v362_v7 = vunpack.c.h.bf16 %v424_v5  ;;  %v428_v15 = vld [vmem:[%s663_s0 + $0x30] sm:$0xff]   ;;  %v423_v55 = vld [vmem:[%s663_s0 + $0x8] sm:$0xff]  }
   0x3   :  { %v353_v2 = vunpack.c.l.bf16 %v352_v1  ;;  %v354_v3 = vunpack.c.h.bf16 %v352_v1  ;;  %v503_v4 = vld [vmem:[%s664_s1] ss:$0 sm:$0xff]  ;;  %v511_v8 = vld [vmem:[%s664_s1 + $0x1] ss:$0 sm:$0xff]  ;;  %v521_v14 = vld [vmem:[%s664_s1 + $0x2] ss:$0 sm:$0xff]  ;;  %v377_v18 = vunpack.c.l.bf16 %v428_v15  ;;  %v378_v19 = vunpack.c.h.bf16 %v428_v15 }
   0x4   :  { %v426_v9 = vld [vmem:[%s663_s0 + $0x20] sm:$0xff]   ;;  %v57_v16 = vmul.f32 %v511_v8, %v361_v6  ;;  %v58_v17 = vmul.f32 %v511_v8, %v362_v7  ;;  %v432_v27 = vld [vmem:[%s663_s0 + $0x50] sm:$0xff]   ;;  %v425_v60 = vld [vmem:[%s663_s0 + $0x18] sm:$0xff]   ;;  %v357_v63 = vunpack.c.l.bf16 %v423_v55  ;;  %v358_v0 = vunpack.c.h.bf16 %v423_v55 }
   0x5   :  { %v39_v10 = vmul.f32 %v503_v4, %v353_v2  ;;  %v40_v11 = vmul.f32 %v503_v4, %v354_v3  ;;  %v369_v12 = vunpack.c.l.bf16 %v426_v9  ;;  %v370_v13 = vunpack.c.h.bf16 %v426_v9  ;;  %v531_v20 = vld [vmem:[%s664_s1 + $0x3] ss:$0 sm:$0xff]  ;;  %v541_v26 = vld [vmem:[%s664_s1 + $0x4] ss:$0 sm:$0xff]  ;;  %v551_v32 = vld [vmem:[%s664_s1 + $0x5] ss:$0 sm:$0xff] }
   0x6   :  { %v430_v21 = vld [vmem:[%s663_s0 + $0x40] sm:$0xff]   ;;  %v101_v30 = vmul.f32 %v531_v20, %v377_v18  ;;  %v102_v31 = vmul.f32 %v531_v20, %v378_v19  ;;  %v393_v36 = vunpack.c.l.bf16 %v432_v27  ;;  %v394_v37 = vunpack.c.h.bf16 %v432_v27  ;;  %v436_v39 = vld [vmem:[%s663_s0 + $0x70] sm:$0xff]   ;;  %v427_v1 = vld [vmem:[%s663_s0 + $0x28] sm:$0xff]  }
   0x7   :  { %v79_v22 = vmul.f32 %v521_v14, %v369_v12  ;;  %v80_v23 = vmul.f32 %v521_v14, %v370_v13  ;;  %v385_v24 = vunpack.c.l.bf16 %v430_v21  ;;  %v386_v25 = vunpack.c.h.bf16 %v430_v21  ;;  %v434_v33 = vld [vmem:[%s663_s0 + $0x60] sm:$0xff]   ;;  %v429_v7 = vld [vmem:[%s663_s0 + $0x38] sm:$0xff]  }
   0x8   :  { %v61_v28 = vadd.f32 %v57_v16, %v39_v10  ;;  %v62_v29 = vadd.f32 %v58_v17, %v40_v11  ;;  %v561_v38 = vld [vmem:[%s664_s1 + $0x6] ss:$0 sm:$0xff]  ;;  %v401_v42 = vunpack.c.l.bf16 %v434_v33  ;;  %v402_v43 = vunpack.c.h.bf16 %v434_v33  ;;  %v569_v44 = vld [vmem:[%s664_s1 + $0x7] ss:$0 sm:$0xff] }
   0x9   :  { %v123_v34 = vmul.f32 %v541_v26, %v385_v24  ;;  %v124_v35 = vmul.f32 %v541_v26, %v386_v25  ;;  %v438_v45 = vld [vmem:[%s663_s0 + $0x80] sm:$0xff]   ;;  %v145_v46 = vmul.f32 %v551_v32, %v393_v36  ;;  %v146_v47 = vmul.f32 %v551_v32, %v394_v37 }
   0xa   :  { %v83_v40 = vadd.f32 %v79_v22, %v61_v28  ;;  %v84_v41 = vadd.f32 %v80_v23, %v62_v29  ;;  %v409_v48 = vunpack.c.l.bf16 %v436_v39  ;;  %v410_v49 = vunpack.c.h.bf16 %v436_v39  ;;  %v431_v23 = vld [vmem:[%s663_s0 + $0x48] sm:$0xff]  }
   0xb   :  { %v167_v53 = vmul.f32 %v561_v38, %v401_v42  ;;  %v168_v54 = vmul.f32 %v561_v38, %v402_v43  ;;  %v417_v58 = vunpack.c.l.bf16 %v438_v45  ;;  %v418_v59 = vunpack.c.h.bf16 %v438_v45  ;;  %v435_v43 = vld [vmem:[%s663_s0 + $0x68] sm:$0xff]  }
   0xc   :  { %v105_v51 = vadd.f32 %v101_v30, %v83_v40  ;;  %v106_v52 = vadd.f32 %v102_v31, %v84_v41  ;;  %v189_v56 = vmul.f32 %v569_v44, %v409_v48  ;;  %v190_v57 = vmul.f32 %v569_v44, %v410_v49  ;;  %v450_v30 = vld [vmem:[%s665_s2] ss:$0 sm:$0xff]  ;;  %v437_v48 = vld [vmem:[%s663_s0 + $0x78] sm:$0xff]  }
   0xd   :  { %v211_v2 = vmul.f32 %v579_v50, %v417_v58  ;;  %v212_v3 = vmul.f32 %v579_v50, %v418_v59  ;;  %v365_v5 = vunpack.c.l.bf16 %v425_v60  ;;  %v366_v6 = vunpack.c.h.bf16 %v425_v60  ;;  %v451_v40 = vld [vmem:[%s666_s3] ss:$0 sm:$0xff]  ;;  %v439_v58 = vld [vmem:[%s663_s0 + $0x88] sm:$0xff]  }
   0xe   :  { %v127_v61 = vadd.f32 %v123_v34, %v105_v51  ;;  %v128_v62 = vadd.f32 %v124_v35, %v106_v52  ;;  %v41_v11 = vmul.f32 %v503_v4, %v357_v63  ;;  %v42_v12 = vmul.f32 %v503_v4, %v358_v0 }
   0xf   :  { %v59_v13 = vmul.f32 %v511_v8, %v365_v5  ;;  %v60_v15 = vmul.f32 %v511_v8, %v366_v6  ;;  %v373_v16 = vunpack.c.l.bf16 %v427_v1  ;;  %v374_v17 = vunpack.c.h.bf16 %v427_v1  ;;  %v433_v8 = vld [vmem:[%s663_s0 + $0x58] sm:$0xff]  }
  0x10   :  { %v149_v9 = vadd.f32 %v145_v46, %v127_v61  ;;  %v150_v10 = vadd.f32 %v146_v47, %v128_v62  ;;  %v381_v21 = vunpack.c.l.bf16 %v429_v7  ;;  %v382_v22 = vunpack.c.h.bf16 %v429_v7 }
  0x11   :  { %v63_v24 = vadd.f32 %v59_v13, %v41_v11  ;;  %v64_v25 = vadd.f32 %v60_v15, %v42_v12  ;;  %v81_v27 = vmul.f32 %v521_v14, %v373_v16  ;;  %v82_v4 = vmul.f32 %v521_v14, %v374_v17 }
  0x12   :  { %v171_v18 = vadd.f32 %v167_v53, %v149_v9  ;;  %v172_v19 = vadd.f32 %v168_v54, %v150_v10  ;;  %v103_v31 = vmul.f32 %v531_v20, %v381_v21  ;;  %v104_v33 = vmul.f32 %v531_v20, %v382_v22  ;;  %v453_v22 = vld [vmem:[%s668_s6] ss:$0 sm:$0xff] }
  0x13   :  { %v85_v34 = vadd.f32 %v81_v27, %v63_v24  ;;  %v86_v35 = vadd.f32 %v82_v4, %v64_v25  ;;  %v389_v36 = vunpack.c.l.bf16 %v431_v23  ;;  %v390_v37 = vunpack.c.h.bf16 %v431_v23 }
  0x14   :  { %v193_v28 = vadd.f32 %v189_v56, %v171_v18  ;;  %v194_v29 = vadd.f32 %v190_v57, %v172_v19  ;;  %v397_v41 = vunpack.c.l.bf16 %v433_v8  ;;  %v398_v42 = vunpack.c.h.bf16 %v433_v8 }
  0x15   :  { %v107_v45 = vadd.f32 %v103_v31, %v85_v34  ;;  %v108_v46 = vadd.f32 %v104_v33, %v86_v35  ;;  %v125_v20 = vmul.f32 %v541_v26, %v389_v36  ;;  %v126_v47 = vmul.f32 %v541_v26, %v390_v37 }
  0x16   :  { %v215_v39 = vadd.f32 %v211_v2, %v193_v28  ;;  %v216_v14 = vadd.f32 %v212_v3, %v194_v29  ;;  %v147_v52 = vmul.f32 %v551_v32, %v397_v41  ;;  %v148_v53 = vmul.f32 %v551_v32, %v398_v42 }
  0x17   :  { %v129_v54 = vadd.f32 %v125_v20, %v107_v45  ;;  %v130_v55 = vadd.f32 %v126_v47, %v108_v46  ;;  %v405_v56 = vunpack.c.l.bf16 %v435_v43  ;;  %v406_v57 = vunpack.c.h.bf16 %v435_v43 }
  0x18   :  { %v223_v49 = vmul.f32 %v450_v30, %v215_v39  ;;  %v224_v51 = vmul.f32 %v450_v30, %v216_v14  ;;  %v413_v60 = vunpack.c.l.bf16 %v437_v48  ;;  %v414_v61 = vunpack.c.h.bf16 %v437_v48 }
  0x19   :  { %v151_v62 = vadd.f32 %v147_v52, %v129_v54  ;;  %v152_v63 = vadd.f32 %v148_v53, %v130_v55  ;;  %v169_v0 = vmul.f32 %v561_v38, %v405_v56  ;;  %v170_v1 = vmul.f32 %v561_v38, %v406_v57 }
  0x1a   :  { %v231_v59 = vadd.f32 %v451_v40, %v223_v49  ;;  %v232_v26 = vadd.f32 %v451_v40, %v224_v51  ;;  %v191_v32 = vmul.f32 %v569_v44, %v413_v60  ;;  %v192_v3 = vmul.f32 %v569_v44, %v414_v61  ;;  %v452_v44 = vld [vmem:[%s667_s5] ss:$0 sm:$0xff] }
  0x1b   :  { %v421_v5 = vunpack.c.l.bf16 %v439_v58  ;;  %v173_v6 = vadd.f32 %v169_v0, %v151_v62  ;;  %v174_v7 = vadd.f32 %v170_v1, %v152_v63  ;;  %v422_v9 = vunpack.c.h.bf16 %v439_v58 }
  0x1c   :  { %v235_v2 = vpack.c.bf16 %v232_v26, %v231_v59 }
  0x1d   :  { %v213_v10 = vmul.f32 %v579_v50, %v421_v5  ;;  %v195_v11 = vadd.f32 %v191_v32, %v173_v6  ;;  %v196_v12 = vadd.f32 %v192_v3, %v174_v7  ;;  %v214_v13 = vmul.f32 %v579_v50, %v422_v9 }
  0x1e   :  { %348 = vmatmul.msk.bf16.vlgmr.msra.gmra.mxu0 %vm245_vm0, %v235_v2 }
  0x1f   :  { %v217_v15 = vadd.f32 %v213_v10, %v195_v11  ;;  %v218_v16 = vadd.f32 %v214_v13, %v196_v12 }
  0x21   :  { %v225_v38 = vmul.f32 %v450_v30, %v217_v15  ;;  %v226_v17 = vmul.f32 %v450_v30, %v218_v16 }
  0x23   :  { %v233_v18 = vadd.f32 %v451_v40, %v225_v38  ;;  %v234_v19 = vadd.f32 %v451_v40, %v226_v17 }
  0x25   :  { %v236_v21 = vpack.c.bf16 %v234_v19, %v233_v18 }
  0x27   :  { %349 = vmatmul.msk.bf16.vlgmr.msra.gmra.mxu1 %vm245_vm0, %v236_v21 }
  0x9b   :  { %v261_v23 = vpop.f32.mrf.mxu0 }
  0x9c   :  { %v275_v24 = vmul.f32 %v452_v44, %v261_v23 }
  0x9e   :  { %v283_v50 = vadd.f32 %v453_v22, %v275_v24 }
  0xa0   :  { %v287_v25 = vmax.f32 %v283_v50, 0.0 }
  0xa2   :  { %v291_v27 = vpack.c.bf16 %v287_v25, %v287_v25 }
  0xa3   :  { %v263_v4 = vpop.f32.mrf.mxu0 }
  0xa4   :  { %296 = vst.msk [vmem:[%s669_s7] sm:$0xf] %vm295_vm1, %v291_v27  ;;  %v276_v8 = vmul.f32 %v452_v44, %v263_v4  ;;  %v266_v28 = vpop.f32.mrf.mxu1 }
  0xa5   :  { %v277_v30 = vmul.f32 %v452_v44, %v266_v28 }
  0xa6   :  { %v284_v29 = vadd.f32 %v453_v22, %v276_v8 }
  0xa7   :  { %v285_v33 = vadd.f32 %v453_v22, %v277_v30 }
  0xa8   :  { %v288_v31 = vmax.f32 %v284_v29, 0.0 }
  0xa9   :  { %v289_v35 = vmax.f32 %v285_v33, 0.0 }
  0xaa   :  { %v292_v34 = vpack.c.bf16 %v288_v31, %v288_v31 }
  0xab   :  { %v293_v36 = vpack.c.bf16 %v289_v35, %v289_v35 }
  0xac   :  { %297 = vst.msk [vmem:[%s669_s7 + $0x4] sm:$0xf] %vm295_vm1, %v292_v34  ;;  %v268_v37 = vpop.f32.mrf.mxu1 }
  0xad   :  { %298 = vst.msk [vmem:[%s669_s7 + $0x8] sm:$0xf] %vm295_vm1, %v293_v36  ;;  %v278_v39 = vmul.f32 %v452_v44, %v268_v37 }
  0xaf   :  { %v286_v14 = vadd.f32 %v453_v22, %v278_v39 }
  0xb1   :  { %v290_v40 = vmax.f32 %v286_v14, 0.0 }
  0xb3   :  { %v294_v41 = vpack.c.bf16 %v290_v40, %v290_v40 }
  0xb5   :  { %299 = vst.msk [vmem:[%s669_s7 + $0xc] sm:$0xf] %vm295_vm1, %v294_v41 }

// kernel: _lambda_.18
= control target key start
LH: loop header
LB: loop body
LE: loop exit
PB: predicated region body
PF: predicated region fallthrough
CT: control target
= control target key end

     0   :  { %vm82_vm0 = vcmask 130048   ;;  %vm228_vm1 = vcmask 125952   ;;  %s473_s1 = inlined_call_operand.vmem [shape: bf16[16,16], index: 1, kind: input, shape index: {}]   ;;  %s474_s0 = inlined_call_operand.vmem [shape: bf16[128,16], index: 0, kind: input, shape index: {}]   ;;  %s475_s2 = inlined_call_operand.vmem [shape: f32[1,16], index: 2, kind: input, shape index: {}]   ;;  %s476_s3 = inlined_call_operand.vmem [shape: f32[1,16], index: 3, kind: input, shape index: {}]   ;;  %s477_s4 = inlined_call_operand.vmem [shape: bf16[128,16], index: 4, kind: output, shape index: {}]  }
   0x1   :  { %v301_v0 = vld [vmem:[%s473_s1] sm:$0xff]  ;;  %v295_v2 = vld [vmem:[%s474_s0 + $0x10] sm:$0xff]  ;;  %v294_v5 = vld [vmem:[%s474_s0 + $0x8] sm:$0xff] }
   0x2   :  { %v293_v1 = vld [vmem:[%s474_s0] sm:$0xff]  ;;  %114 = vmatpush.bf16.msra.mxu0 %v301_v0  ;;  %302 = vmatpush.bf16.msra.mxu1 %v301_v0  ;;  %v299_v4 = vld [vmem:[%s474_s0 + $0x30] sm:$0xff]  ;;  %v296_v6 = vld [vmem:[%s474_s0 + $0x18] sm:$0xff] }
   0x3   :  { %v297_v3 = vld [vmem:[%s474_s0 + $0x20] sm:$0xff]  ;;  %303 = vmatpush.bf16.msra.mxu2 %v301_v0  ;;  %304 = vmatpush.bf16.msra.mxu3 %v301_v0  ;;  %v298_v7 = vld [vmem:[%s474_s0 + $0x28] sm:$0xff]  ;;  %v300_v8 = vld [vmem:[%s474_s0 + $0x38] sm:$0xff] }
   0x4   :  { %v370_v9 = vld [vmem:[%s475_s2] ss:$0 sm:$0xff] }
   0x5   :  { %285 = vmatmul.msk.bf16.vlgmr.msra.gmra.mxu0 %vm82_vm0, %v293_v1  ;;  %287 = vmatmul.msk.bf16.vlgmr.msra.gmra.mxu1 %vm82_vm0, %v295_v2  ;;  %v375_v10 = vld [vmem:[%s476_s3] ss:$0 sm:$0xff] }
   0x6   :  { %289 = vmatmul.msk.bf16.vlgmr.msra.gmra.mxu2 %vm82_vm0, %v297_v3  ;;  %291 = vmatmul.msk.bf16.vlgmr.msra.gmra.mxu3 %vm82_vm0, %v299_v4 }
  0x15   :  { %286 = vmatmul.msk.bf16.gmra.mxu0 %vm82_vm0, %v294_v5  ;;  %288 = vmatmul.msk.bf16.gmra.mxu1 %vm82_vm0, %v296_v6 }
  0x16   :  { %290 = vmatmul.msk.bf16.gmra.mxu2 %vm82_vm0, %v298_v7  ;;  %292 = vmatmul.msk.bf16.gmra.mxu3 %vm82_vm0, %v300_v8 }
  0x82   :  { %v116_v11 = vpop.f32.mrf.mxu0  ;;  %v126_v12 = vpop.f32.mrf.mxu1 }
  0x83   :  { %v160_v13 = vmul.f32 %v370_v9, %v116_v11  ;;  %v164_v14 = vmul.f32 %v370_v9, %v126_v12 }
  0x85   :  { %v180_v15 = vadd.f32 %v375_v10, %v160_v13  ;;  %v184_v16 = vadd.f32 %v375_v10, %v164_v14 }
  0x87   :  { %v196_v17 = vmax.f32 %v180_v15, 0.0  ;;  %v200_v18 = vmax.f32 %v184_v16, 0.0 }
  0x89   :  { %v212_v19 = vpack.c.bf16 %v196_v17, %v196_v17  ;;  %v216_v20 = vpack.c.bf16 %v200_v18, %v200_v18  ;;  %v136_v21 = vpop.f32.mrf.mxu2  ;;  %v146_v22 = vpop.f32.mrf.mxu3 }
  0x8a   :  { %v168_v23 = vmul.f32 %v370_v9, %v136_v21  ;;  %v172_v24 = vmul.f32 %v370_v9, %v146_v22  ;;  %v118_v25 = vpop.f32.mrf.mxu0  ;;  %v128_v26 = vpop.f32.mrf.mxu1 }
  0x8b   :  { %229 = vst.msk [vmem:[%s477_s4] sm:$0xf] %vm228_vm1, %v212_v19  ;;  %v161_v27 = vmul.f32 %v370_v9, %v118_v25  ;;  %v165_v28 = vmul.f32 %v370_v9, %v128_v26 }
  0x8c   :  { %233 = vst.msk [vmem:[%s477_s4 + $0x10] sm:$0xf] %vm228_vm1, %v216_v20  ;;  %v188_v29 = vadd.f32 %v375_v10, %v168_v23  ;;  %v192_v30 = vadd.f32 %v375_v10, %v172_v24 }
  0x8d   :  { %v181_v31 = vadd.f32 %v375_v10, %v161_v27  ;;  %v185_v32 = vadd.f32 %v375_v10, %v165_v28 }
  0x8e   :  { %v204_v33 = vmax.f32 %v188_v29, 0.0  ;;  %v208_v34 = vmax.f32 %v192_v30, 0.0 }
  0x8f   :  { %v197_v35 = vmax.f32 %v181_v31, 0.0  ;;  %v201_v36 = vmax.f32 %v185_v32, 0.0 }
  0x90   :  { %v220_v37 = vpack.c.bf16 %v204_v33, %v204_v33  ;;  %v224_v38 = vpack.c.bf16 %v208_v34, %v208_v34 }
  0x91   :  { %v213_v39 = vpack.c.bf16 %v197_v35, %v197_v35  ;;  %v217_v40 = vpack.c.bf16 %v201_v36, %v201_v36  ;;  %v138_v41 = vpop.f32.mrf.mxu2  ;;  %v148_v42 = vpop.f32.mrf.mxu3 }
  0x92   :  { %237 = vst.msk [vmem:[%s477_s4 + $0x20] sm:$0xf] %vm228_vm1, %v220_v37  ;;  %v169_v43 = vmul.f32 %v370_v9, %v138_v41  ;;  %v173_v44 = vmul.f32 %v370_v9, %v148_v42  ;;  %v121_v45 = vpop.f32.mrf.mxu0  ;;  %v131_v46 = vpop.f32.mrf.mxu1 }
  0x93   :  { %241 = vst.msk [vmem:[%s477_s4 + $0x30] sm:$0xf] %vm228_vm1, %v224_v38  ;;  %v162_v47 = vmul.f32 %v370_v9, %v121_v45  ;;  %v166_v48 = vmul.f32 %v370_v9, %v131_v46 }
  0x94   :  { %230 = vst.msk [vmem:[%s477_s4 + $0x4] sm:$0xf] %vm228_vm1, %v213_v39  ;;  %v189_v49 = vadd.f32 %v375_v10, %v169_v43  ;;  %v193_v50 = vadd.f32 %v375_v10, %v173_v44 }
  0x95   :  { %234 = vst.msk [vmem:[%s477_s4 + $0x14] sm:$0xf] %vm228_vm1, %v217_v40  ;;  %v182_v51 = vadd.f32 %v375_v10, %v162_v47  ;;  %v186_v52 = vadd.f32 %v375_v10, %v166_v48 }
  0x96   :  { %v205_v53 = vmax.f32 %v189_v49, 0.0  ;;  %v209_v54 = vmax.f32 %v193_v50, 0.0 }
  0x97   :  { %v198_v55 = vmax.f32 %v182_v51, 0.0  ;;  %v202_v56 = vmax.f32 %v186_v52, 0.0 }
  0x98   :  { %v221_v57 = vpack.c.bf16 %v205_v53, %v205_v53  ;;  %v225_v58 = vpack.c.bf16 %v209_v54, %v209_v54 }
  0x99   :  { %v214_v59 = vpack.c.bf16 %v198_v55, %v198_v55  ;;  %v218_v60 = vpack.c.bf16 %v202_v56, %v202_v56  ;;  %v141_v61 = vpop.f32.mrf.mxu2  ;;  %v151_v62 = vpop.f32.mrf.mxu3 }
  0x9a   :  { %238 = vst.msk [vmem:[%s477_s4 + $0x24] sm:$0xf] %vm228_vm1, %v221_v57  ;;  %v170_v63 = vmul.f32 %v370_v9, %v141_v61  ;;  %v174_v0 = vmul.f32 %v370_v9, %v151_v62  ;;  %v123_v1 = vpop.f32.mrf.mxu0  ;;  %v133_v2 = vpop.f32.mrf.mxu1 }
  0x9b   :  { %242 = vst.msk [vmem:[%s477_s4 + $0x34] sm:$0xf] %vm228_vm1, %v225_v58  ;;  %v163_v3 = vmul.f32 %v370_v9, %v123_v1  ;;  %v167_v4 = vmul.f32 %v370_v9, %v133_v2 }
  0x9c   :  { %231 = vst.msk [vmem:[%s477_s4 + $0x8] sm:$0xf] %vm228_vm1, %v214_v59  ;;  %v190_v5 = vadd.f32 %v375_v10, %v170_v63  ;;  %v194_v6 = vadd.f32 %v375_v10, %v174_v0 }
  0x9d   :  { %235 = vst.msk [vmem:[%s477_s4 + $0x18] sm:$0xf] %vm228_vm1, %v218_v60  ;;  %v183_v7 = vadd.f32 %v375_v10, %v163_v3  ;;  %v187_v8 = vadd.f32 %v375_v10, %v167_v4 }
  0x9e   :  { %v206_v11 = vmax.f32 %v190_v5, 0.0  ;;  %v210_v12 = vmax.f32 %v194_v6, 0.0 }
  0x9f   :  { %v199_v13 = vmax.f32 %v183_v7, 0.0  ;;  %v203_v14 = vmax.f32 %v187_v8, 0.0 }
  0xa0   :  { %v222_v15 = vpack.c.bf16 %v206_v11, %v206_v11  ;;  %v226_v16 = vpack.c.bf16 %v210_v12, %v210_v12 }
  0xa1   :  { %v215_v17 = vpack.c.bf16 %v199_v13, %v199_v13  ;;  %v219_v18 = vpack.c.bf16 %v203_v14, %v203_v14  ;;  %v143_v19 = vpop.f32.mrf.mxu2  ;;  %v153_v20 = vpop.f32.mrf.mxu3 }
  0xa2   :  { %239 = vst.msk [vmem:[%s477_s4 + $0x28] sm:$0xf] %vm228_vm1, %v222_v15  ;;  %v171_v21 = vmul.f32 %v370_v9, %v143_v19  ;;  %v175_v22 = vmul.f32 %v370_v9, %v153_v20 }
  0xa3   :  { %243 = vst.msk [vmem:[%s477_s4 + $0x38] sm:$0xf] %vm228_vm1, %v226_v16 }
  0xa4   :  { %232 = vst.msk [vmem:[%s477_s4 + $0xc] sm:$0xf] %vm228_vm1, %v215_v17  ;;  %v191_v23 = vadd.f32 %v375_v10, %v171_v21  ;;  %v195_v24 = vadd.f32 %v375_v10, %v175_v22 }
  0xa5   :  { %236 = vst.msk [vmem:[%s477_s4 + $0x1c] sm:$0xf] %vm228_vm1, %v219_v18 }
  0xa6   :  { %v207_v9 = vmax.f32 %v191_v23, 0.0  ;;  %v211_v25 = vmax.f32 %v195_v24, 0.0 }
  0xa8   :  { %v223_v26 = vpack.c.bf16 %v207_v9, %v207_v9  ;;  %v227_v27 = vpack.c.bf16 %v211_v25, %v211_v25 }
  0xaa   :  { %240 = vst.msk [vmem:[%s477_s4 + $0x2c] sm:$0xf] %vm228_vm1, %v223_v26 }
  0xab   :  { %244 = vst.msk [vmem:[%s477_s4 + $0x3c] sm:$0xf] %vm228_vm1, %v227_v27 }

// kernel: _lambda_.21
= control target key start
LH: loop header
LB: loop body
LE: loop exit
PB: predicated region body
PF: predicated region fallthrough
CT: control target
= control target key end

     0   :  { %vm141_vm0 = vcmask 261120   ;;  %vm170_vm1 = vcmask 257024   ;;  %s319_s4 = inlined_call_operand.vmem [shape: bf16[32,32], index: 4, kind: input, shape index: {}]   ;;  %s320_s0 = inlined_call_operand.vmem [shape: bf16[9,8,32], index: 0, kind: input, shape index: {}]   ;;  %s321_s1 = inlined_call_operand.vmem [shape: f32[9,1,32], index: 1, kind: input, shape index: {}]   ;;  %s322_s2 = inlined_call_operand.vmem [shape: f32[1,32], index: 2, kind: input, shape index: {}]   ;;  %s323_s3 = inlined_call_operand.vmem [shape: f32[1,32], index: 3, kind: input, shape index: {}]   ;;  %s324_s5 = inlined_call_operand.vmem [shape: f32[1,32], index: 5, kind: input, shape index: {}]   ;;  %s325_s6 = inlined_call_operand.vmem [shape: f32[1,32], index: 6, kind: input, shape index: {}]   ;;  %s326_s7 = inlined_call_operand.vmem [shape: bf16[8,32], index: 7, kind: output, shape index: {}]  }
   0x1   :  { %v202_v0 = vld [vmem:[%s319_s4 + $0x8] sm:$0xff]  ;;  %v201_v1 = vld [vmem:[%s319_s4] sm:$0xff]  ;;  %v182_v14 = vld [vmem:[%s320_s0 + $0x10] sm:$0xff]  }
   0x2   :  { %v27_v2 = vld [vmem:[%s320_s0] sm:$0xff]   ;;  %151 = vmatpush.bf16.msra.mxu0 %v202_v0  ;;  %v178_v7 = vld [vmem:[%s320_s0 + $0x8] sm:$0xff]   ;;  %v66_v17 = vunpack.c.l.bf16 %v182_v14  ;;  %v186_v18 = vld [vmem:[%s320_s0 + $0x18] sm:$0xff]   ;;  %v76_v21 = vunpack.c.h.bf16 %v182_v14 }
   0x3   :  { %v28_v3 = vunpack.c.l.bf16 %v27_v2  ;;  %v203_v4 = vld [vmem:[%s321_s1] ss:$0 sm:$0xff]  ;;  %v36_v5 = vunpack.c.h.bf16 %v27_v2  ;;  %v204_v6 = vld [vmem:[%s321_s1 + $0x1] ss:$0 sm:$0xff]  ;;  %v46_v9 = vunpack.c.l.bf16 %v178_v7  ;;  %v205_v10 = vld [vmem:[%s321_s1 + $0x2] ss:$0 sm:$0xff]  ;;  %v56_v11 = vunpack.c.h.bf16 %v178_v7 }
   0x4   :  { %v206_v12 = vld [vmem:[%s321_s1 + $0x3] ss:$0 sm:$0xff]  ;;  %v207_v15 = vld [vmem:[%s321_s1 + $0x4] ss:$0 sm:$0xff]  ;;  %v208_v22 = vld [vmem:[%s321_s1 + $0x5] ss:$0 sm:$0xff]  ;;  %v86_v25 = vunpack.c.l.bf16 %v186_v18  ;;  %v96_v30 = vunpack.c.h.bf16 %v186_v18 }
   0x5   :  { %v33_v8 = vmul.f32 %v203_v4, %v28_v3  ;;  %v42_v13 = vmul.f32 %v204_v6, %v36_v5  ;;  %v52_v16 = vmul.f32 %v205_v10, %v46_v9  ;;  %v62_v20 = vmul.f32 %v206_v12, %v56_v11  ;;  %v209_v26 = vld [vmem:[%s321_s1 + $0x6] ss:$0 sm:$0xff]  ;;  %v190_v27 = vld [vmem:[%s320_s0 + $0x20] sm:$0xf]  ;;  %v210_v31 = vld [vmem:[%s321_s1 + $0x7] ss:$0 sm:$0xff] }
   0x6   :  { %152 = vmatpush.bf16.msra.mxu0 %v201_v1  ;;  %v72_v24 = vmul.f32 %v207_v15, %v66_v17  ;;  %v82_v29 = vmul.f32 %v208_v22, %v76_v21  ;;  %v92_v33 = vmul.f32 %v209_v26, %v86_v25  ;;  %v106_v34 = vunpack.c.l.bf16 %v190_v27  ;;  %v211_v35 = vld [vmem:[%s321_s1 + $0x8] ss:$0 sm:$0xff]  ;;  %v212_v41 = vld [vmem:[%s322_s2] ss:$0 sm:$0xff] }
   0x7   :  { %v43_v19 = vadd.f32 %v42_v13, %v33_v8  ;;  %v102_v37 = vmul.f32 %v210_v31, %v96_v30  ;;  %v213_v43 = vld [vmem:[%s323_s3] ss:$0 sm:$0xff] }
   0x8   :  { %v112_v39 = vmul.f32 %v211_v35, %v106_v34  ;;  %v214_v47 = vld [vmem:[%s324_s5] ss:$0 sm:$0xff] }
   0x9   :  { %v53_v23 = vadd.f32 %v52_v16, %v43_v19  ;;  %v215_v48 = vld [vmem:[%s325_s6] ss:$0 sm:$0xff] }
   0xb   :  { %v63_v28 = vadd.f32 %v62_v20, %v53_v23 }
   0xd   :  { %v73_v32 = vadd.f32 %v72_v24, %v63_v28 }
   0xf   :  { %v83_v36 = vadd.f32 %v82_v29, %v73_v32 }
  0x11   :  { %v93_v38 = vadd.f32 %v92_v33, %v83_v36 }
  0x13   :  { %v103_v40 = vadd.f32 %v102_v37, %v93_v38 }
  0x15   :  { %v113_v42 = vadd.f32 %v112_v39, %v103_v40 }
  0x17   :  { %v118_v44 = vmul.f32 %v212_v41, %v113_v42 }
  0x19   :  { %v123_v45 = vadd.f32 %v213_v43, %v118_v44 }
  0x1b   :  { %v124_v46 = vpack.c.bf16 %v123_v45, %v123_v45 }
  0x1d   :  { %200 = vmatmul.msk.bf16.vlgmr.msra.gmra.mxu0 %vm141_vm0, %v124_v46 }
  0x9a   :  { %v154_v49 = vpop.f32.mrf.mxu0 }
  0x9b   :  { %v162_v50 = vmul.f32 %v214_v47, %v154_v49 }
  0x9d   :  { %v167_v51 = vadd.f32 %v215_v48, %v162_v50 }
  0x9f   :  { %v168_v52 = vmax.f32 %v167_v51, 0.0 }
  0xa1   :  { %v169_v53 = vpack.c.bf16 %v168_v52, %v168_v52 }
  0xa2   :  { %v156_v54 = vpop.f32.mrf.mxu0 }
  0xa3   :  { %171 = vst.msk [vmem:[%s326_s7] sm:$0xf] %vm170_vm1, %v169_v53 }

// kernel: _lambda_.20
= control target key start
LH: loop header
LB: loop body
LE: loop exit
PB: predicated region body
PF: predicated region fallthrough
CT: control target
= control target key end

     0   :  { %s988_s17 = smov 0   ;;  %s1218_s0 = inlined_call_operand.vmem [shape: bf16[2,42,16], index: 0, kind: input, shape index: {}]   ;;  %s1219_s1 = inlined_call_operand.vmem [shape: f32[42,1], index: 1, kind: input, shape index: {}]   ;;  %s1220_s2 = inlined_call_operand.vmem [shape: bf16[16,16], index: 2, kind: input, shape index: {}]   ;;  %s1221_s3 = inlined_call_operand.vmem [shape: f32[1,16], index: 3, kind: input, shape index: {}]   ;;  %s1222_s4 = inlined_call_operand.vmem [shape: f32[1,16], index: 4, kind: input, shape index: {}]   ;;  %s1223_s5 = inlined_call_operand.vmem [shape: f32[9,1,16], index: 5, kind: input, shape index: {}]   ;;  %s1224_s6 = inlined_call_operand.vmem [shape: f32[1,16], index: 6, kind: input, shape index: {}]   ;;  %s1225_s7 = inlined_call_operand.vmem [shape: f32[1,16], index: 7, kind: input, shape index: {}]   ;;  %s1226_s8 = inlined_call_operand.vmem [shape: bf16[16,16], index: 8, kind: input, shape index: {}]   ;;  %s1227_s9 = inlined_call_operand.vmem [shape: f32[1,16], index: 9, kind: input, shape index: {}]   ;;  %s1228_s10 = inlined_call_operand.vmem [shape: f32[1,16], index: 10, kind: input, shape index: {}]   ;;  %s1229_s11 = inlined_call_operand.vmem [shape: bf16[2,24,16], index: 11, kind: output, shape index: {}]  }
   0x1 LB: > { %s841_s18 = sadd.s32 4294967295, %s925_s17   ;;  %p845_p0 = scmp.ge.s32.totalorder %s925_s17, 1  ;;  %s925_s17 = sphi %s988_s17, %s21_s17  }
   0x2   : > { %p337_p1 = scmp.lt.s32.totalorder %s925_s17, 3 }
   0x4   : > { %p338_p2 = pnand %p845_p0, %p337_p1 }
   0x5   : > { %p377_p3 = scmp.lt.s32.totalorder (!%p338_p2), %s841_s18, 1 }
   0x6   : > { %341 = sbr.rel (%p338_p2) target bundleno = 335 (0x14f), region = 64 }
   0xb   : > { %v886_v0 = vld [vmem:[%s1220_s2] sm:$0xff]  ;;  %v475_v2 = vld [vmem:[%s1219_s1 + $0x10] sm:$0xff]  ;;  %v927_v3 = vmov 0   ;;  %s1231_s18 = smov (!%p377_p3, %s841_s18), 1  ;;  %vm417_vm0 = vcmask 130048   ;;  %v474_v7 = vld [vmem:[%s1219_s1 + $0x8] sm:$0xff] }
   0xc   : > { %v473_v1 = vld [vmem:[%s1219_s1] sm:$0xff]  ;;  %901 = vset.pattern.permute.xlu0 %v927_v3  ;;  %902 = vset.pattern.permute.xlu1 %v927_v3  ;;  %s890_s27 = smul.u32 24, %s1231_s18  ;;  %v476_v8 = vld [vmem:[%s1219_s1 + $0x18] sm:$0xff]  ;;  %vm528_vm1 = vcmask 1046528   ;;  %vm647_vm2 = vcmask 1043456   ;;  %vm555_vm3 = vcmask 1045504  }
   0xd   : > { %434 = vmatpush.bf16.msra.mxu0 %v886_v0  ;;  %888 = vmatpush.bf16.msra.mxu2 %v886_v0  ;;  %v477_v4 = vld [vmem:[%s1219_s1 + $0x20] sm:$0xff]  ;;  %vm582_vm4 = vcmask 1041408   ;;  %vm609_vm5 = vcmask 1040384   ;;  %vm674_vm6 = vcmask 1042432   ;;  %s891_s14 = smul.u32 12, %s1231_s18  ;;  %vm782_vm7 = vcmask 125952  }
   0xe   : > { %480 = vperm.xlu0 %901, %v473_v1   ;;  %490 = vperm.xlu1 %902, %v475_v2   ;;  %s381_s30 = scalar_lea.vmem %s1218_s0, %s890_s27  ;;  %v1026_v12 = vld [vmem:[%s1221_s3] ss:$0 sm:$0xff]  ;;  %v1041_v21 = vld [vmem:[%s1223_s5 + $0x1] ss:$0 sm:$0xff]  ;;  %v1047_v24 = vld [vmem:[%s1223_s5 + $0x2] ss:$0 sm:$0xff] }
   0xf   : > { %903 = vset.pattern.permute.xlu2 %v927_v3  ;;  %v883_v5 = vld [vmem:[%s381_s30] sm:$0xff]  ;;  %v884_v6 = vld [vmem:[%s381_s30 + $0x8] sm:$0xff]  ;;  %v858_v9 = vld [vmem:[%s381_s30 + $0x10] sm:$0xf]  ;;  %s386_s19 = scalar_lea.vmem %s1229_s11, %s891_s14 }
  0x10   : > { %500 = vperm.xlu2 %903, %v477_v4   ;;  %864 = vmatmul.msk.bf16.vlgmr.msra.gmra.mxu0 %vm417_vm0, %v883_v5  ;;  %v885_v10 = vld [vmem:[%s381_s30 + $0x10] sm:$0x10]  ;;  %v1031_v13 = vld [vmem:[%s1222_s4] ss:$0 sm:$0xff]  ;;  %v909_v26 = vld [vmem:[%s1223_s5 + $0x3] ss:$0 sm:$0xff] }
  0x11   : > { %865 = vmatmul.msk.bf16.vlgmr.msra.gmra.mxu2 %vm417_vm0, %v884_v6  ;;  %v859_v11 = vor.u32 %v885_v10, %v858_v9  ;;  %v887_v20 = vld [vmem:[%s1226_s8] sm:$0xff] }
  0x12   : > { %751 = vmatpush.bf16.msra.mxu1 %v887_v20  ;;  %889 = vmatpush.bf16.msra.mxu3 %v887_v20  ;;  %v910_v27 = vld [vmem:[%s1223_s5 + $0x4] ss:$0 sm:$0xff]  ;;  %v906_v31 = vld [vmem:[%s1223_s5] ss:$0 sm:$0xff]  ;;  %v1070_v36 = vld [vmem:[%s1223_s5 + $0x6] ss:$0 sm:$0xff] }
  0x13   : > { %v911_v56 = vld [vmem:[%s1223_s5 + $0x5] ss:$0 sm:$0xff]  ;;  %v913_v9 = vld [vmem:[%s1223_s5 + $0x7] ss:$0 sm:$0xff] }
  0x16   : > { %485 = vperm.xlu0 %901, %v474_v7   ;;  %495 = vperm.xlu1 %902, %v476_v8  }
  0x21   : > { %866 = vmatmul.msk.bf16.gmra.mxu2 %vm417_vm0, %v859_v11 }
  0x80   : > { %v481_v17 = vpop.permute.xlu0 %480  ;;  %v491_v28 = vpop.permute.xlu1 %490 }
  0x88   : > { %v486_v44 = vpop.permute.xlu0 %485  ;;  %v496_v63 = vpop.permute.xlu1 %495 }
  0x8d   : > { %v436_v14 = vpop.f32.mrf.mxu0 }
  0x8e   : > { %v454_v15 = vmul.f32 %v1026_v12, %v436_v14 }
  0x90   : > { %v463_v16 = vadd.f32 %v1031_v13, %v454_v15 }
  0x92   : > { %v468_v18 = vmax.f32 %v463_v16, 0.0 }
  0x94   : > { %v441_v19 = vpop.f32.mrf.mxu2  ;;  %v503_v22 = vmul.f32 %v481_v17, %v468_v18 }
  0x95   : > { %v456_v23 = vmul.f32 %v1026_v12, %v441_v19  ;;  %v438_v25 = vpop.f32.mrf.mxu0 }
  0x96   : > { %v455_v30 = vmul.f32 %v1026_v12, %v438_v25  ;;  %v1061_v32 = vmul.f32 %v1041_v21, %v503_v22  ;;  %v1064_v33 = vmul.f32 %v1047_v24, %v503_v22  ;;  %v1072_v37 = vmul.f32 %v909_v26, %v503_v22 }
  0x97   : > { %v465_v29 = vadd.f32 %v1031_v13, %v456_v23  ;;  %v1074_v38 = vmul.f32 %v910_v27, %v503_v22  ;;  %v1078_v42 = vmul.f32 %v906_v31, %v503_v22 }
  0x98   : > { %v464_v35 = vadd.f32 %v1031_v13, %v455_v30  ;;  %v529_v43 = vrot.slane %v1061_v32, 1  ;;  %v556_v46 = vrot.slane %v1064_v33, 2  ;;  %v583_v54 = vrot.slane %v1072_v37, 6 }
  0x99   : > { %v470_v34 = vmax.f32 %v465_v29, 0.0  ;;  %v610_v55 = vrot.slane %v1074_v38, 7 }
  0x9a   : > { %v469_v40 = vmax.f32 %v464_v35, 0.0 }
  0x9b   : > { %v1076_v39 = vmul.f32 %v491_v28, %v470_v34 }
  0x9c   : > { %v443_v41 = vpop.f32.mrf.mxu2  ;;  %v1083_v47 = vmul.f32 %v486_v44, %v469_v40 }
  0x9d   : > { %v457_v45 = vmul.f32 %v1026_v12, %v443_v41  ;;  %v522_v48 = vmul.f32 %v1041_v21, %v1076_v39  ;;  %v1089_v49 = vmul.f32 %v1047_v24, %v1076_v39  ;;  %v1093_v51 = vmul.f32 %v909_v26, %v1076_v39 }
  0x9e   : > { %v1096_v52 = vmul.f32 %v910_v27, %v1076_v39  ;;  %v1100_v53 = vmul.f32 %v1070_v36, %v1076_v39  ;;  %v514_v57 = vmul.f32 %v906_v31, %v1076_v39  ;;  %v639_v58 = vmul.f32 %v1070_v36, %v1083_v47 }
  0x9f   : > { %v466_v50 = vadd.f32 %v1031_v13, %v457_v45  ;;  %v532_v60 = vrot.slane %v522_v48, 1  ;;  %v559_v61 = vrot.slane %v1089_v49, 2  ;;  %v513_v62 = vmul.f32 %v906_v31, %v1083_v47 }
  0xa0   : > { %v586_v0 = vrot.slane %v1093_v51, 6  ;;  %v613_v1 = vrot.slane %v1096_v52, 7  ;;  %v648_v2 = vrot.slane %v639_v58, 4  ;;  %v521_v3 = vmul.f32 %v1041_v21, %v1083_v47 }
  0xa1   : > { %v471_v59 = vmax.f32 %v466_v50, 0.0  ;;  %v649_v5 = vrot.slane %v1100_v53, 4  ;;  %v548_v6 = vmul.f32 %v1047_v24, %v1083_v47  ;;  %v575_v7 = vmul.f32 %v909_v26, %v1083_v47 }
  0xa2   : > { %v530_v10 = vrot.slane %v521_v3, 1  ;;  %v602_v11 = vmul.f32 %v910_v27, %v1083_v47  ;;  %v628_v14 = vmul.f32 %v911_v56, %v1083_v47  ;;  %v1128_v15 = vmul.f32 %v911_v56, %v1076_v39 }
  0xa3   : > { %v1116_v4 = vmul.f32 %v496_v63, %v471_v59  ;;  %v1144_v23 = vsel %vm647_vm2, %v648_v2, %v649_v5  ;;  %v557_v30 = vrot.slane %v548_v6, 2  ;;  %v584_v31 = vrot.slane %v575_v7, 6 }
  0xa4   : > { %v446_v8 = vpop.f32.mrf.mxu2  ;;  %v533_v45 = vsel %vm528_vm1, %v530_v10, %v532_v60  ;;  %v611_v7 = vrot.slane %v602_v11, 7  ;;  %v666_v33 = vmul.f32 %v913_v9, %v1083_v47 }
  0xa5   : > { %v458_v16 = vmul.f32 %v1026_v12, %v446_v8  ;;  %v523_v17 = vmul.f32 %v1041_v21, %v1116_v4  ;;  %v550_v18 = vmul.f32 %v1047_v24, %v1116_v4  ;;  %v577_v19 = vmul.f32 %v909_v26, %v1116_v4  ;;  %v501_v26 = vpop.permute.xlu2 %500 }
  0xa6   : > { %v604_v20 = vmul.f32 %v910_v27, %v1116_v4  ;;  %v1139_v22 = vmul.f32 %v1070_v36, %v1116_v4  ;;  %v1147_v12 = vmul.f32 %v913_v9, %v1116_v4  ;;  %v531_v27 = vsel %vm528_vm1, %v529_v43, %v530_v10 }
  0xa7   : > { %v467_v21 = vadd.f32 %v1031_v13, %v458_v16  ;;  %v534_v25 = vrot.slane %v523_v17, 1  ;;  %v561_v24 = vrot.slane %v550_v18, 2  ;;  %v588_v28 = vrot.slane %v577_v19, 6 }
  0xa8   : > { %v615_v29 = vrot.slane %v604_v20, 7  ;;  %v630_v35 = vmul.f32 %v911_v56, %v1116_v4  ;;  %v651_v40 = vrot.slane %v1139_v22, 4  ;;  %v678_v44 = vrot.slane %v1147_v12, 5 }
  0xa9   : > { %v472_v32 = vmax.f32 %v467_v21, 0.0  ;;  %v535_v34 = vsel %vm528_vm1, %v532_v60, %v534_v25  ;;  %v562_v13 = vsel %vm555_vm3, %v559_v61, %v561_v24  ;;  %v589_v43 = vsel %vm582_vm4, %v586_v0, %v588_v28  ;;  %v914_v60 = vld [vmem:[%s1223_s5 + $0x8] ss:$0 sm:$0xff] }
  0xaa   : > { %v541_v41 = vadd.f32 %v535_v34, %v514_v57  ;;  %v539_v49 = vadd.f32 %v531_v27, %v1078_v42  ;;  %v540_v50 = vadd.f32 %v533_v45, %v513_v62  ;;  %v616_v56 = vsel %vm609_vm5, %v613_v1, %v615_v29 }
  0xab   : > { %v507_v48 = vmul.f32 %v501_v26, %v472_v32  ;;  %v558_v57 = vsel %vm555_vm3, %v556_v46, %v557_v30  ;;  %v560_v59 = vsel %vm555_vm3, %v557_v30, %v559_v61  ;;  %v585_v2 = vsel %vm582_vm4, %v583_v54, %v584_v31 }
  0xac   : > { %v568_v51 = vadd.f32 %v562_v13, %v541_v41  ;;  %v448_v58 = vpop.f32.mrf.mxu2  ;;  %v566_v62 = vadd.f32 %v558_v57, %v539_v49  ;;  %v567_v6 = vadd.f32 %v560_v59, %v540_v50  ;;  %v587_v61 = vsel %vm582_vm4, %v584_v31, %v586_v0 }
  0xad   : > { %v642_v63 = vmul.f32 %v1070_v36, %v507_v48  ;;  %v669_v42 = vmul.f32 %v913_v9, %v507_v48  ;;  %v696_v8 = vmul.f32 %v914_v60, %v507_v48  ;;  %v612_v36 = vsel %vm609_vm5, %v610_v55, %v611_v7  ;;  %v918_v58 = vld [vmem:[%s1228_s10] ss:$0 sm:$0xff] }
  0xae   : > { %v595_v3 = vadd.f32 %v589_v43, %v568_v51  ;;  %v593_v10 = vadd.f32 %v585_v2, %v566_v62  ;;  %v594_v18 = vadd.f32 %v587_v61, %v567_v6  ;;  %v614_v54 = vsel %vm609_vm5, %v611_v7, %v613_v1 }
  0xaf   : > { %v653_v46 = vrot.slane %v642_v63, 4  ;;  %v680_v17 = vrot.slane %v669_v42, 5  ;;  %v667_v19 = vmul.f32 %v913_v9, %v1076_v39  ;;  %v675_v0 = vrot.slane %v666_v33, 5 }
  0xb0   : > { %v622_v16 = vadd.f32 %v616_v56, %v595_v3  ;;  %v620_v11 = vadd.f32 %v612_v36, %v593_v10  ;;  %v621_v22 = vadd.f32 %v614_v54, %v594_v18  ;;  %v693_v12 = vmul.f32 %v914_v60, %v1083_v47  ;;  %v917_v56 = vld [vmem:[%s1227_s9] ss:$0 sm:$0xff] }
  0xb1   : > { %v654_v37 = vsel %vm647_vm2, %v651_v40, %v653_v46  ;;  %v676_v25 = vrot.slane %v667_v19, 5  ;;  %v694_v38 = vmul.f32 %v914_v60, %v1076_v39  ;;  %v695_v55 = vmul.f32 %v914_v60, %v1116_v4 }
  0xb2   : > { %v633_v20 = vadd.f32 %v630_v35, %v622_v16  ;;  %v631_v21 = vadd.f32 %v628_v14, %v620_v11  ;;  %v706_v28 = vrot.slane %v696_v8, 6  ;;  %v632_v52 = vadd.f32 %v1128_v15, %v621_v22  ;;  %v915_v15 = vld [vmem:[%s1224_s6] ss:$0 sm:$0xff] }
  0xb3   : > { %v701_v26 = vrot.slane %v693_v12, 6  ;;  %v652_v1 = vsel %vm647_vm2, %v649_v5, %v651_v40  ;;  %v681_v9 = vsel %vm674_vm6, %v678_v44, %v680_v17  ;;  %v677_v47 = vsel %vm674_vm6, %v675_v0, %v676_v25  ;;  %v916_v35 = vld [vmem:[%s1225_s7] ss:$0 sm:$0xff] }
  0xb4   : > { %v660_v24 = vadd.f32 %v654_v37, %v633_v20  ;;  %v658_v29 = vadd.f32 %v1144_v23, %v631_v21  ;;  %v659_v14 = vadd.f32 %v652_v1, %v632_v52  ;;  %v702_v27 = vrot.slane %v694_v38, 6 }
  0xb5   : > { %v704_v39 = vrot.slane %v695_v55, 6  ;;  %v679_v4 = vsel %vm674_vm6, %v676_v25, %v678_v44 }
  0xb6   : > { %v687_v30 = vadd.f32 %v681_v9, %v660_v24  ;;  %v685_v31 = vadd.f32 %v677_v47, %v658_v29  ;;  %v686_v53 = vadd.f32 %v679_v4, %v659_v14  ;;  %v703_v5 = vsel %vm582_vm4, %v701_v26, %v702_v27 }
  0xb7   : > { %v707_v32 = vsel %vm582_vm4, %v704_v39, %v706_v28  ;;  %v705_v23 = vsel %vm582_vm4, %v702_v27, %v704_v39 }
  0xb8   : > { %v711_v34 = vadd.f32 %v703_v5, %v685_v31  ;;  %v713_v40 = vadd.f32 %v707_v32, %v687_v30  ;;  %v712_v41 = vadd.f32 %v705_v23, %v686_v53 }
  0xba   : > { %v718_v13 = vmul.f32 %v915_v15, %v711_v34  ;;  %v720_v44 = vmul.f32 %v915_v15, %v713_v40  ;;  %v719_v45 = vmul.f32 %v915_v15, %v712_v41 }
  0xbc   : > { %v725_v48 = vadd.f32 %v916_v35, %v718_v13  ;;  %v727_v43 = vadd.f32 %v916_v35, %v720_v44  ;;  %v726_v49 = vadd.f32 %v916_v35, %v719_v45 }
  0xbe   : > { %v729_v50 = vpack.c.bf16 %v727_v43, %v727_v43  ;;  %v728_v51 = vpack.c.bf16 %v726_v49, %v725_v48 }
  0xc0   : > { %880 = vmatmul.msk.bf16.vlgmr.msra.gmra.mxu3 %vm417_vm0, %v729_v50  ;;  %879 = vmatmul.msk.bf16.vlgmr.msra.gmra.mxu1 %vm417_vm0, %v728_v51 }
 0x13d   : > { %v753_v57 = vpop.f32.mrf.mxu1 }
 0x13e   : > { %v766_v59 = vmul.f32 %v917_v56, %v753_v57 }
 0x140   : > { %v773_v60 = vadd.f32 %v918_v58, %v766_v59 }
 0x142   : > { %v776_v63 = vmax.f32 %v773_v60, 0.0 }
 0x143   : > { %v758_v42 = vpop.f32.mrf.mxu3 }
 0x144   : > { %v768_v62 = vmul.f32 %v917_v56, %v758_v42  ;;  %v779_v2 = vpack.c.bf16 %v776_v63, %v776_v63 }
 0x145   : > { %v755_v3 = vpop.f32.mrf.mxu1 }
 0x146   : > { %v775_v6 = vadd.f32 %v918_v58, %v768_v62  ;;  %783 = vst.msk [vmem:[%s386_s19] sm:$0xf] %vm782_vm7, %v779_v2  ;;  %v767_v7 = vmul.f32 %v917_v56, %v755_v3 }
 0x148   : > { %v778_v33 = vmax.f32 %v775_v6, 0.0  ;;  %v774_v46 = vadd.f32 %v918_v58, %v767_v7 }
 0x14a   : > { %v781_v8 = vpack.c.bf16 %v778_v33, %v778_v33  ;;  %v777_v61 = vmax.f32 %v774_v46, 0.0 }
 0x14b   : > { %v760_v10 = vpop.f32.mrf.mxu3 }
 0x14c   : > { %785 = vst.msk [vmem:[%s386_s19 + $0x8] sm:$0xf] %vm782_vm7, %v781_v8  ;;  %v780_v16 = vpack.c.bf16 %v777_v61, %v777_v61 }
 0x14e   : > { %784 = vst.msk [vmem:[%s386_s19 + $0x4] sm:$0xf] %vm782_vm7, %v780_v16 }
 0x14f PF: > { %s21_s17 = sadd.s32 1, %s925_s17  }
 0x150   : > { %p18_p4 = scmp.ge.s32.totalorder %s21_s17, 4  }
 0x152   :  { %20 = sbr.rel (!%p18_p4) target bundleno = 1 (0x1), region = 102 }

// kernel: _lambda_.22
= control target key start
LH: loop header
LB: loop body
LE: loop exit
PB: predicated region body
PF: predicated region fallthrough
CT: control target
= control target key end

     0   :  { %vm48_vm0 = vcmask 261120   ;;  %vm98_vm1 = vcmask 257024   ;;  %s192_s1 = inlined_call_operand.vmem [shape: bf16[32,32], index: 1, kind: input, shape index: {}]   ;;  %s193_s2 = inlined_call_operand.vmem [shape: f32[1,32], index: 2, kind: input, shape index: {}]   ;;  %s194_s3 = inlined_call_operand.vmem [shape: f32[1,32], index: 3, kind: input, shape index: {}]   ;;  %s195_s0 = inlined_call_operand.vmem [shape: bf16[32,32], index: 0, kind: input, shape index: {}]   ;;  %s196_s4 = inlined_call_operand.vmem [shape: bf16[32,32], index: 4, kind: output, shape index: {}]  }
   0x1   :  { %v128_v0 = vld [vmem:[%s192_s1 + $0x8] sm:$0xff]  ;;  %v127_v1 = vld [vmem:[%s192_s1] sm:$0xff] }
   0x2   :  { %61 = vmatpush.bf16.msra.mxu0 %v128_v0  ;;  %129 = vmatpush.bf16.msra.mxu1 %v128_v0  ;;  %v125_v2 = vld [vmem:[%s195_s0] sm:$0xff]  ;;  %v126_v3 = vld [vmem:[%s195_s0 + $0x8] sm:$0xff] }
   0x3   :  { %v131_v4 = vld [vmem:[%s193_s2] ss:$0 sm:$0xff] }
   0x4   :  { %v132_v5 = vld [vmem:[%s194_s3] ss:$0 sm:$0xff] }
   0x6   :  { %62 = vmatpush.bf16.msra.mxu0 %v127_v1  ;;  %130 = vmatpush.bf16.msra.mxu1 %v127_v1 }
   0x9   :  { %123 = vmatmul.msk.bf16.vlgmr.msra.gmra.mxu0 %vm48_vm0, %v125_v2  ;;  %124 = vmatmul.msk.bf16.vlgmr.msra.gmra.mxu1 %vm48_vm0, %v126_v3 }
  0x86   :  { %v64_v6 = vpop.f32.mrf.mxu0  ;;  %v69_v7 = vpop.f32.mrf.mxu1 }
  0x87   :  { %v78_v8 = vmul.f32 %v131_v4, %v64_v6  ;;  %v80_v9 = vmul.f32 %v131_v4, %v69_v7 }
  0x89   :  { %v86_v10 = vadd.f32 %v132_v5, %v78_v8  ;;  %v88_v11 = vadd.f32 %v132_v5, %v80_v9 }
  0x8b   :  { %v90_v12 = vmax.f32 %v86_v10, 0.0  ;;  %v92_v13 = vmax.f32 %v88_v11, 0.0 }
  0x8d   :  { %v94_v14 = vpack.c.bf16 %v90_v12, %v90_v12  ;;  %v96_v15 = vpack.c.bf16 %v92_v13, %v92_v13 }
  0x8e   :  { %v66_v16 = vpop.f32.mrf.mxu0  ;;  %v71_v17 = vpop.f32.mrf.mxu1 }
  0x8f   :  { %99 = vst.msk [vmem:[%s196_s4] sm:$0xf] %vm98_vm1, %v94_v14  ;;  %v79_v18 = vmul.f32 %v131_v4, %v66_v16  ;;  %v81_v19 = vmul.f32 %v131_v4, %v71_v17 }
  0x90   :  { %101 = vst.msk [vmem:[%s196_s4 + $0x8] sm:$0xf] %vm98_vm1, %v96_v15 }
  0x91   :  { %v87_v20 = vadd.f32 %v132_v5, %v79_v18  ;;  %v89_v21 = vadd.f32 %v132_v5, %v81_v19 }
  0x93   :  { %v91_v22 = vmax.f32 %v87_v20, 0.0  ;;  %v93_v23 = vmax.f32 %v89_v21, 0.0 }
  0x95   :  { %v95_v24 = vpack.c.bf16 %v91_v22, %v91_v22  ;;  %v97_v25 = vpack.c.bf16 %v93_v23, %v93_v23 }
  0x97   :  { %100 = vst.msk [vmem:[%s196_s4 + $0x4] sm:$0xf] %vm98_vm1, %v95_v24 }
  0x98   :  { %102 = vst.msk [vmem:[%s196_s4 + $0xc] sm:$0xf] %vm98_vm1, %v97_v25 }

// kernel: _lambda_.24
= control target key start
LH: loop header
LB: loop body
LE: loop exit
PB: predicated region body
PF: predicated region fallthrough
CT: control target
= control target key end

     0   :  { %s844_s17 = smov 0   ;;  %s938_s0 = inlined_call_operand.vmem [shape: bf16[2,20,32], index: 0, kind: input, shape index: {}]   ;;  %s939_s1 = inlined_call_operand.vmem [shape: f32[20,1], index: 1, kind: input, shape index: {}]   ;;  %s940_s2 = inlined_call_operand.vmem [shape: bf16[32,32], index: 2, kind: input, shape index: {}]   ;;  %s941_s3 = inlined_call_operand.vmem [shape: f32[1,32], index: 3, kind: input, shape index: {}]   ;;  %s942_s4 = inlined_call_operand.vmem [shape: f32[1,32], index: 4, kind: input, shape index: {}]   ;;  %s943_s5 = inlined_call_operand.vmem [shape: f32[9,1,32], index: 5, kind: input, shape index: {}]   ;;  %s944_s6 = inlined_call_operand.vmem [shape: f32[1,32], index: 6, kind: input, shape index: {}]   ;;  %s945_s7 = inlined_call_operand.vmem [shape: f32[1,32], index: 7, kind: input, shape index: {}]   ;;  %s946_s8 = inlined_call_operand.vmem [shape: bf16[32,32], index: 8, kind: input, shape index: {}]   ;;  %s947_s9 = inlined_call_operand.vmem [shape: f32[1,32], index: 9, kind: input, shape index: {}]   ;;  %s948_s10 = inlined_call_operand.vmem [shape: f32[1,32], index: 10, kind: input, shape index: {}]   ;;  %s949_s11 = inlined_call_operand.vmem [shape: bf16[2,8,32], index: 11, kind: output, shape index: {}]  }
   0x1 LB: > { %s701_s18 = sadd.s32 4294967295, %s781_s17   ;;  %p705_p0 = scmp.ge.s32.totalorder %s781_s17, 1  ;;  %s781_s17 = sphi %s844_s17, %s21_s17  }
   0x2   : > { %p337_p1 = scmp.lt.s32.totalorder %s781_s17, 3 }
   0x4   : > { %p338_p2 = pnand %p705_p0, %p337_p1 }
   0x5   : > { %p376_p3 = scmp.lt.s32.totalorder (!%p338_p2), %s701_s18, 1 }
   0x6   : > { %341 = sbr.rel (%p338_p2) target bundleno = 324 (0x144), region = 64 }
   0xb   : > { %v743_v0 = vld [vmem:[%s940_s2 + $0x8] sm:$0xff]  ;;  %v455_v1 = vld [vmem:[%s939_s1] sm:$0xff]  ;;  %v783_v2 = vmov 0   ;;  %v457_v3 = vld [vmem:[%s939_s1 + $0x10] sm:$0xf]  ;;  %s951_s18 = smov (!%p376_p3, %s701_s18), 1 }
   0xc   : > { %758 = vset.pattern.permute.xlu0 %v783_v2  ;;  %759 = vset.pattern.permute.xlu1 %v783_v2  ;;  %v742_v4 = vld [vmem:[%s940_s2] sm:$0xff]  ;;  %s748_s27 = smul.u32 12, %s951_s18  ;;  %vm413_vm0 = vcmask 261120   ;;  %v456_v8 = vld [vmem:[%s939_s1 + $0x8] sm:$0xff]  ;;  %vm490_vm1 = vcmask 1046528   ;;  %vm505_vm2 = vcmask 1045504  }
   0xd   : > { %426 = vmatpush.bf16.msra.mxu0 %v743_v0  ;;  %746 = vmatpush.bf16.msra.mxu2 %v743_v0  ;;  %v760_v10 = vld [vmem:[%s941_s3] ss:$0 sm:$0xff]  ;;  %v745_v14 = vld [vmem:[%s946_s8 + $0x8] sm:$0xff]  ;;  %v763_v25 = vld [vmem:[%s943_s5 + $0x1] ss:$0 sm:$0xff]  ;;  %vm520_vm3 = vcmask 1043456  }
   0xe   : > { %460 = vperm.xlu0 %758, %v455_v1   ;;  %470 = vperm.xlu1 %759, %v457_v3   ;;  %s380_s30 = scalar_lea.vmem %s938_s0, %s748_s27  ;;  %v761_v11 = vld [vmem:[%s942_s4] ss:$0 sm:$0xff]  ;;  %v764_v26 = vld [vmem:[%s943_s5 + $0x2] ss:$0 sm:$0xff]  ;;  %v765_v30 = vld [vmem:[%s943_s5 + $0x3] ss:$0 sm:$0xff] }
   0xf   : > { %v741_v5 = vld [vmem:[%s380_s30] sm:$0xff]  ;;  %v388_v6 = vld [vmem:[%s380_s30 + $0x8] sm:$0x3]  ;;  %627 = vmatpush.bf16.msra.mxu1 %v745_v14  ;;  %vm535_vm4 = vcmask 1042432   ;;  %vm550_vm5 = vcmask 1041408   ;;  %s707_s14 = sshll.u32 %s951_s18, 2 }
  0x10   : > { %v398_v7 = vunpack.c.l.b16 %v388_v6  ;;  %v744_v17 = vld [vmem:[%s946_s8] sm:$0xff]  ;;  %v770_v57 = vld [vmem:[%s943_s5 + $0x8] ss:$0 sm:$0xff]  ;;  %s384_s19 = scalar_lea.vmem %s949_s11, %s707_s14  ;;  %vm646_vm6 = vcmask 257024  }
  0x11   : > { %427 = vmatpush.bf16.msra.mxu0 %v742_v4  ;;  %747 = vmatpush.bf16.msra.mxu2 %v742_v4  ;;  %v762_v33 = vld [vmem:[%s943_s5] ss:$0 sm:$0xff]  ;;  %v766_v34 = vld [vmem:[%s943_s5 + $0x4] ss:$0 sm:$0xff]  ;;  %v767_v43 = vld [vmem:[%s943_s5 + $0x5] ss:$0 sm:$0xff] }
  0x12   : > { %v400_v9 = vpack.c.b16 %v398_v7, %v398_v7  ;;  %v769_v51 = vld [vmem:[%s943_s5 + $0x7] ss:$0 sm:$0xff]  ;;  %v768_v4 = vld [vmem:[%s943_s5 + $0x6] ss:$0 sm:$0xff] }
  0x13   : > { %628 = vmatpush.bf16.msra.mxu1 %v744_v17 }
  0x14   : > { %720 = vmatmul.msk.bf16.vlgmr.msra.gmra.mxu0 %vm413_vm0, %v741_v5  ;;  %721 = vmatmul.msk.bf16.vlgmr.msra.gmra.mxu2 %vm413_vm0, %v400_v9 }
  0x16   : > { %465 = vperm.xlu0 %758, %v456_v8  }
  0x80   : > { %v461_v16 = vpop.permute.xlu0 %460  ;;  %v471_v41 = vpop.permute.xlu1 %470 }
  0x88   : > { %v466_v29 = vpop.permute.xlu0 %465 }
  0x91   : > { %v429_v12 = vpop.f32.mrf.mxu0 }
  0x92   : > { %v442_v13 = vmul.f32 %v760_v10, %v429_v12 }
  0x94   : > { %v449_v15 = vadd.f32 %v761_v11, %v442_v13 }
  0x96   : > { %v452_v18 = vmax.f32 %v449_v15, 0.0 }
  0x97   : > { %v434_v21 = vpop.f32.mrf.mxu2 }
  0x98   : > { %v444_v22 = vmul.f32 %v760_v10, %v434_v21  ;;  %v473_v23 = vmul.f32 %v461_v16, %v452_v18  ;;  %v771_v21 = vld [vmem:[%s944_s6] ss:$0 sm:$0xff] }
  0x99   : > { %v431_v19 = vpop.f32.mrf.mxu0 }
  0x9a   : > { %v443_v20 = vmul.f32 %v760_v10, %v431_v19  ;;  %v451_v28 = vadd.f32 %v761_v11, %v444_v22  ;;  %v486_v32 = vmul.f32 %v763_v25, %v473_v23  ;;  %v501_v35 = vmul.f32 %v764_v26, %v473_v23 }
  0x9b   : > { %v516_v42 = vmul.f32 %v765_v30, %v473_v23  ;;  %v480_v48 = vmul.f32 %v762_v33, %v473_v23  ;;  %v531_v50 = vmul.f32 %v766_v34, %v473_v23  ;;  %v546_v61 = vmul.f32 %v767_v43, %v473_v23 }
  0x9c   : > { %v450_v24 = vadd.f32 %v761_v11, %v443_v20  ;;  %v454_v36 = vmax.f32 %v451_v28, 0.0  ;;  %v491_v44 = vrot.slane %v486_v32, 1  ;;  %v506_v49 = vrot.slane %v501_v35, 2  ;;  %v773_v28 = vld [vmem:[%s947_s9] ss:$0 sm:$0xff] }
  0x9d   : > { %v521_v59 = vrot.slane %v516_v42, 4  ;;  %v536_v63 = vrot.slane %v531_v50, 5  ;;  %v551_v7 = vrot.slane %v546_v61, 6 }
  0x9e   : > { %v453_v27 = vmax.f32 %v450_v24, 0.0  ;;  %v475_v52 = vmul.f32 %v471_v41, %v454_v36  ;;  %v772_v24 = vld [vmem:[%s945_s7] ss:$0 sm:$0xff] }
  0x9f   : > { %v436_v40 = vpop.f32.mrf.mxu2 }
  0xa0   : > { %v474_v31 = vmul.f32 %v466_v29, %v453_v27  ;;  %v569_v3 = vmul.f32 %v769_v51, %v475_v52  ;;  %v583_v9 = vmul.f32 %v770_v57, %v475_v52  ;;  %v774_v29 = vld [vmem:[%s948_s10] ss:$0 sm:$0xff] }
  0xa2   : > { %v487_v37 = vmul.f32 %v763_v25, %v474_v31  ;;  %v502_v38 = vmul.f32 %v764_v26, %v474_v31  ;;  %v517_v39 = vmul.f32 %v765_v30, %v474_v31  ;;  %v532_v47 = vmul.f32 %v766_v34, %v474_v31 }
  0xa3   : > { %v547_v55 = vmul.f32 %v767_v43, %v474_v31  ;;  %v568_v2 = vmul.f32 %v769_v51, %v474_v31  ;;  %v582_v8 = vmul.f32 %v770_v57, %v474_v31  ;;  %v573_v13 = vrot.slane %v569_v3, 1 }
  0xa4   : > { %v492_v45 = vrot.slane %v487_v37, 1  ;;  %v507_v46 = vrot.slane %v502_v38, 2  ;;  %v522_v54 = vrot.slane %v517_v39, 4  ;;  %v537_v60 = vrot.slane %v532_v47, 5 }
  0xa5   : > { %v552_v1 = vrot.slane %v547_v55, 6  ;;  %v572_v12 = vrot.slane %v568_v2, 1  ;;  %v561_v15 = vmul.f32 %v768_v4, %v474_v31  ;;  %v586_v16 = vrot.slane %v582_v8, 2 }
  0xa6   : > { %v493_v53 = vsel %vm490_vm1, %v491_v44, %v492_v45  ;;  %v508_v58 = vsel %vm505_vm2, %v506_v49, %v507_v46  ;;  %v523_v0 = vsel %vm520_vm3, %v521_v59, %v522_v54  ;;  %v538_v6 = vsel %vm535_vm4, %v536_v63, %v537_v60 }
  0xa7   : > { %v495_v56 = vadd.f32 %v493_v53, %v480_v48  ;;  %v553_v11 = vsel %vm550_vm5, %v551_v7, %v552_v1  ;;  %v587_v17 = vrot.slane %v583_v9, 2  ;;  %v574_v19 = vsel %vm490_vm1, %v572_v12, %v573_v13 }
  0xa9   : > { %v510_v62 = vadd.f32 %v508_v58, %v495_v56  ;;  %v588_v22 = vsel %vm505_vm2, %v586_v16, %v587_v17 }
  0xab   : > { %v525_v5 = vadd.f32 %v523_v0, %v510_v62 }
  0xad   : > { %v540_v10 = vadd.f32 %v538_v6, %v525_v5 }
  0xaf   : > { %v555_v14 = vadd.f32 %v553_v11, %v540_v10 }
  0xb1   : > { %v562_v18 = vadd.f32 %v561_v15, %v555_v14 }
  0xb3   : > { %v576_v20 = vadd.f32 %v574_v19, %v562_v18 }
  0xb5   : > { %v590_v23 = vadd.f32 %v588_v22, %v576_v20 }
  0xb7   : > { %v595_v25 = vmul.f32 %v771_v21, %v590_v23 }
  0xb9   : > { %v600_v26 = vadd.f32 %v772_v24, %v595_v25 }
  0xbb   : > { %v601_v27 = vpack.c.bf16 %v600_v26, %v600_v26 }
  0xbd   : > { %738 = vmatmul.msk.bf16.vlgmr.msra.gmra.mxu1 %vm413_vm0, %v601_v27 }
 0x13a   : > { %v630_v30 = vpop.f32.mrf.mxu1 }
 0x13b   : > { %v638_v31 = vmul.f32 %v773_v28, %v630_v30 }
 0x13d   : > { %v643_v32 = vadd.f32 %v774_v29, %v638_v31 }
 0x13f   : > { %v644_v33 = vmax.f32 %v643_v32, 0.0 }
 0x141   : > { %v645_v34 = vpack.c.bf16 %v644_v33, %v644_v33 }
 0x142   : > { %v632_v35 = vpop.f32.mrf.mxu1 }
 0x143   : > { %647 = vst.msk [vmem:[%s384_s19] sm:$0xf] %vm646_vm6, %v645_v34 }
 0x144 PF: > { %s21_s17 = sadd.s32 1, %s781_s17  }
 0x145   : > { %p18_p4 = scmp.ge.s32.totalorder %s21_s17, 4  }
 0x147   :  { %20 = sbr.rel (!%p18_p4) target bundleno = 1 (0x1), region = 102 }

// kernel: _lambda_.26
= control target key start
LH: loop header
LB: loop body
LE: loop exit
PB: predicated region body
PF: predicated region fallthrough
CT: control target
= control target key end

     0   :  { %vm51_vm0 = vcmask 523264   ;;  %vm80_vm1 = vcmask 519168   ;;  %s158_s1 = inlined_call_operand.vmem [shape: bf16[64,64], index: 1, kind: input, shape index: {}]   ;;  %s159_s2 = inlined_call_operand.vmem [shape: f32[1,64], index: 2, kind: input, shape index: {}]   ;;  %s160_s3 = inlined_call_operand.vmem [shape: f32[1,64], index: 3, kind: input, shape index: {}]   ;;  %s161_s0 = inlined_call_operand.vmem [shape: bf16[8,64], index: 0, kind: input, shape index: {}]   ;;  %s162_s4 = inlined_call_operand.vmem [shape: bf16[8,64], index: 4, kind: output, shape index: {}]  }
   0x1   :  { %v106_v0 = vld [vmem:[%s158_s1 + $0x18] sm:$0xff]  ;;  %v105_v1 = vld [vmem:[%s158_s1 + $0x10] sm:$0xff]  ;;  %v104_v2 = vld [vmem:[%s158_s1 + $0x8] sm:$0xff] }
   0x2   :  { %59 = vmatpush.bf16.msra.mxu0 %v106_v0  ;;  %v103_v3 = vld [vmem:[%s158_s1] sm:$0xff] }
   0x3   :  { %v18_v4 = vld [vmem:[%s161_s0] sm:$0xf] }
   0x4   :  { %v107_v5 = vld [vmem:[%s159_s2] ss:$0 sm:$0xff] }
   0x5   :  { %v108_v6 = vld [vmem:[%s160_s3] ss:$0 sm:$0xff] }
   0x6   :  { %60 = vmatpush.bf16.msra.mxu0 %v105_v1 }
   0xa   :  { %61 = vmatpush.bf16.msra.mxu0 %v104_v2 }
   0xe   :  { %62 = vmatpush.bf16.msra.mxu0 %v103_v3 }
  0x11   :  { %102 = vmatmul.msk.bf16.vlgmr.msra.gmra.mxu0 %vm51_vm0, %v18_v4 }
  0x8e   :  { %v64_v7 = vpop.f32.mrf.mxu0 }
  0x8f   :  { %v72_v8 = vmul.f32 %v107_v5, %v64_v7 }
  0x91   :  { %v77_v9 = vadd.f32 %v108_v6, %v72_v8 }
  0x93   :  { %v78_v10 = vmax.f32 %v77_v9, 0.0 }
  0x95   :  { %v79_v11 = vpack.c.bf16 %v78_v10, %v78_v10 }
  0x96   :  { %v66_v12 = vpop.f32.mrf.mxu0 }
  0x97   :  { %81 = vst.msk [vmem:[%s162_s4] sm:$0xf] %vm80_vm1, %v79_v11 }

// kernel: _lambda_.25
= control target key start
LH: loop header
LB: loop body
LE: loop exit
PB: predicated region body
PF: predicated region fallthrough
CT: control target
= control target key end

     0   :  { %vm157_vm0 = vcmask 523264   ;;  %vm186_vm1 = vcmask 519168   ;;  %s351_s4 = inlined_call_operand.vmem [shape: bf16[64,64], index: 4, kind: input, shape index: {}]   ;;  %s352_s0 = inlined_call_operand.vmem [shape: bf16[9,8,64], index: 0, kind: input, shape index: {}]   ;;  %s353_s1 = inlined_call_operand.vmem [shape: f32[9,1,64], index: 1, kind: input, shape index: {}]   ;;  %s354_s2 = inlined_call_operand.vmem [shape: f32[1,64], index: 2, kind: input, shape index: {}]   ;;  %s355_s3 = inlined_call_operand.vmem [shape: f32[1,64], index: 3, kind: input, shape index: {}]   ;;  %s356_s5 = inlined_call_operand.vmem [shape: f32[1,64], index: 5, kind: input, shape index: {}]   ;;  %s357_s6 = inlined_call_operand.vmem [shape: f32[1,64], index: 6, kind: input, shape index: {}]   ;;  %s358_s7 = inlined_call_operand.vmem [shape: bf16[8,64], index: 7, kind: output, shape index: {}]  }
   0x1   :  { %v228_v0 = vld [vmem:[%s351_s4 + $0x18] sm:$0xff]  ;;  %v227_v1 = vld [vmem:[%s351_s4 + $0x10] sm:$0xff]  ;;  %v27_v2 = vld [vmem:[%s352_s0] sm:$0xff]  }
   0x2   :  { %165 = vmatpush.bf16.msra.mxu0 %v228_v0  ;;  %v28_v3 = vunpack.c.l.bf16 %v27_v2  ;;  %v229_v4 = vld [vmem:[%s353_s1] ss:$0 sm:$0xff]  ;;  %v36_v5 = vunpack.c.h.bf16 %v27_v2  ;;  %v230_v6 = vld [vmem:[%s353_s1 + $0x1] ss:$0 sm:$0xff]  ;;  %v194_v7 = vld [vmem:[%s352_s0 + $0x8] sm:$0xff]  }
   0x3   :  { %v231_v8 = vld [vmem:[%s353_s1 + $0x2] ss:$0 sm:$0xff]  ;;  %v226_v9 = vld [vmem:[%s351_s4 + $0x8] sm:$0xff]  ;;  %v46_v12 = vunpack.c.l.bf16 %v194_v7  ;;  %v56_v13 = vunpack.c.h.bf16 %v194_v7  ;;  %v232_v14 = vld [vmem:[%s353_s1 + $0x3] ss:$0 sm:$0xff] }
   0x4   :  { %v33_v10 = vmul.f32 %v229_v4, %v28_v3  ;;  %v42_v11 = vmul.f32 %v230_v6, %v36_v5  ;;  %v198_v15 = vld [vmem:[%s352_s0 + $0x10] sm:$0xff]   ;;  %v233_v17 = vld [vmem:[%s353_s1 + $0x4] ss:$0 sm:$0xff]  ;;  %v234_v22 = vld [vmem:[%s353_s1 + $0x5] ss:$0 sm:$0xff] }
   0x5   :  { %v66_v16 = vunpack.c.l.bf16 %v198_v15  ;;  %v52_v19 = vmul.f32 %v231_v8, %v46_v12  ;;  %v62_v20 = vmul.f32 %v232_v14, %v56_v13  ;;  %v76_v21 = vunpack.c.h.bf16 %v198_v15  ;;  %v202_v23 = vld [vmem:[%s352_s0 + $0x18] sm:$0xff]   ;;  %v225_v24 = vld [vmem:[%s351_s4] sm:$0xff]  ;;  %v237_v37 = vld [vmem:[%s353_s1 + $0x8] ss:$0 sm:$0xff] }
   0x6   :  { %166 = vmatpush.bf16.msra.mxu0 %v227_v1  ;;  %v43_v18 = vadd.f32 %v42_v11, %v33_v10  ;;  %v86_v27 = vunpack.c.l.bf16 %v202_v23  ;;  %v235_v28 = vld [vmem:[%s353_s1 + $0x6] ss:$0 sm:$0xff]  ;;  %v206_v29 = vld [vmem:[%s352_s0 + $0x20] sm:$0xf]  ;;  %v96_v32 = vunpack.c.h.bf16 %v202_v23  ;;  %v236_v33 = vld [vmem:[%s353_s1 + $0x7] ss:$0 sm:$0xff] }
   0x7   :  { %v72_v26 = vmul.f32 %v233_v17, %v66_v16  ;;  %v82_v31 = vmul.f32 %v234_v22, %v76_v21  ;;  %v106_v36 = vunpack.c.l.bf16 %v206_v29  ;;  %v238_v43 = vld [vmem:[%s354_s2] ss:$0 sm:$0xff] }
   0x8   :  { %v53_v25 = vadd.f32 %v52_v19, %v43_v18  ;;  %v92_v35 = vmul.f32 %v235_v28, %v86_v27  ;;  %v102_v39 = vmul.f32 %v236_v33, %v96_v32  ;;  %v239_v45 = vld [vmem:[%s355_s3] ss:$0 sm:$0xff] }
   0x9   :  { %v112_v41 = vmul.f32 %v237_v37, %v106_v36  ;;  %v240_v49 = vld [vmem:[%s356_s5] ss:$0 sm:$0xff] }
   0xa   :  { %167 = vmatpush.bf16.msra.mxu0 %v226_v9  ;;  %v63_v30 = vadd.f32 %v62_v20, %v53_v25  ;;  %v241_v50 = vld [vmem:[%s357_s6] ss:$0 sm:$0xff] }
   0xc   :  { %v73_v34 = vadd.f32 %v72_v26, %v63_v30 }
   0xe   :  { %168 = vmatpush.bf16.msra.mxu0 %v225_v24  ;;  %v83_v38 = vadd.f32 %v82_v31, %v73_v34 }
  0x10   :  { %v93_v40 = vadd.f32 %v92_v35, %v83_v38 }
  0x12   :  { %v103_v42 = vadd.f32 %v102_v39, %v93_v40 }
  0x14   :  { %v113_v44 = vadd.f32 %v112_v41, %v103_v42 }
  0x16   :  { %v118_v46 = vmul.f32 %v238_v43, %v113_v44 }
  0x18   :  { %v123_v47 = vadd.f32 %v239_v45, %v118_v46 }
  0x1a   :  { %v124_v48 = vpack.c.bf16 %v123_v47, %v123_v47 }
  0x1c   :  { %224 = vmatmul.msk.bf16.vlgmr.msra.gmra.mxu0 %vm157_vm0, %v124_v48 }
  0x99   :  { %v170_v51 = vpop.f32.mrf.mxu0 }
  0x9a   :  { %v178_v52 = vmul.f32 %v240_v49, %v170_v51 }
  0x9c   :  { %v183_v53 = vadd.f32 %v241_v50, %v178_v52 }
  0x9e   :  { %v184_v54 = vmax.f32 %v183_v53, 0.0 }
  0xa0   :  { %v185_v55 = vpack.c.bf16 %v184_v54, %v184_v54 }
  0xa1   :  { %v172_v56 = vpop.f32.mrf.mxu0 }
  0xa2   :  { %187 = vst.msk [vmem:[%s358_s7] sm:$0xf] %vm186_vm1, %v185_v55 }

// kernel: _lambda_.29
= control target key start
LH: loop header
LB: loop body
LE: loop exit
PB: predicated region body
PF: predicated region fallthrough
CT: control target
= control target key end

     0   :  { %s377_s1 = inlined_call_operand.vmem [shape: bf16[128,256], index: 1, kind: input, shape index: {}]   ;;  %s378_s0 = inlined_call_operand.vmem [shape: bf16[8,128], index: 0, kind: input, shape index: {}]   ;;  %s379_s2 = inlined_call_operand.vmem [shape: f32[1,256], index: 2, kind: input, shape index: {}]   ;;  %s380_s3 = inlined_call_operand.vmem [shape: f32[1,256], index: 3, kind: input, shape index: {}]   ;;  %s381_s4 = inlined_call_operand.vmem [shape: bf16[8,256], index: 4, kind: output, shape index: {}]  }
   0x1   :  { %v222_v0 = vld [vmem:[%s377_s1 + $0x70] sm:$0xf]  ;;  %v243_v1 = vld [vmem:[%s377_s1 + $0x74] sm:$0xf0]  ;;  %v242_v2 = vld [vmem:[%s377_s1 + $0x74] sm:$0xf] }
   0x2   :  { %v223_v3 = vor.u32 %v243_v1, %v222_v0  ;;  %v224_v4 = vld [vmem:[%s377_s1 + $0x78] sm:$0xf0]  ;;  %v214_v5 = vld [vmem:[%s377_s1 + $0x60] sm:$0xf]  ;;  %v241_v6 = vld [vmem:[%s377_s1 + $0x64] sm:$0xf0] }
   0x3   :  { %v227_v7 = vor.u32 %v242_v2, %v224_v4  ;;  %v240_v8 = vld [vmem:[%s377_s1 + $0x64] sm:$0xf]  ;;  %v216_v9 = vld [vmem:[%s377_s1 + $0x68] sm:$0xf0]  ;;  %v215_v10 = vor.u32 %v241_v6, %v214_v5  ;;  %v206_v12 = vld [vmem:[%s377_s1 + $0x50] sm:$0xf] }
   0x4   :  { %114 = vmatpush.bf16.msra.mxu0 %v223_v3  ;;  %v219_v11 = vor.u32 %v240_v8, %v216_v9  ;;  %v239_v13 = vld [vmem:[%s377_s1 + $0x54] sm:$0xf0]  ;;  %v238_v14 = vld [vmem:[%s377_s1 + $0x54] sm:$0xf]  ;;  %v208_v15 = vld [vmem:[%s377_s1 + $0x58] sm:$0xf0] }
   0x5   :  { %127 = vmatpush.bf16.msra.mxu1 %v227_v7  ;;  %v207_v16 = vor.u32 %v239_v13, %v206_v12  ;;  %v211_v17 = vor.u32 %v238_v14, %v208_v15  ;;  %v198_v18 = vld [vmem:[%s377_s1 + $0x40] sm:$0xf]  ;;  %v237_v19 = vld [vmem:[%s377_s1 + $0x44] sm:$0xf0]  ;;  %v236_v20 = vld [vmem:[%s377_s1 + $0x44] sm:$0xf] }
   0x6   :  { %v200_v21 = vld [vmem:[%s377_s1 + $0x48] sm:$0xf0]  ;;  %v199_v22 = vor.u32 %v237_v19, %v198_v18  ;;  %v190_v24 = vld [vmem:[%s377_s1 + $0x30] sm:$0xf]  ;;  %v235_v25 = vld [vmem:[%s377_s1 + $0x34] sm:$0xf0] }
   0x7   :  { %v203_v23 = vor.u32 %v236_v20, %v200_v21  ;;  %v234_v26 = vld [vmem:[%s377_s1 + $0x34] sm:$0xf]  ;;  %v192_v27 = vld [vmem:[%s377_s1 + $0x38] sm:$0xf0]  ;;  %v191_v28 = vor.u32 %v235_v25, %v190_v24  ;;  %v182_v30 = vld [vmem:[%s377_s1 + $0x20] sm:$0xf] }
   0x8   :  { %115 = vmatpush.bf16.msra.mxu0 %v215_v10  ;;  %v195_v29 = vor.u32 %v234_v26, %v192_v27  ;;  %v233_v31 = vld [vmem:[%s377_s1 + $0x24] sm:$0xf0]  ;;  %v232_v32 = vld [vmem:[%s377_s1 + $0x24] sm:$0xf]  ;;  %v184_v33 = vld [vmem:[%s377_s1 + $0x28] sm:$0xf0] }
   0x9   :  { %128 = vmatpush.bf16.msra.mxu1 %v219_v11  ;;  %v183_v34 = vor.u32 %v233_v31, %v182_v30  ;;  %v187_v35 = vor.u32 %v232_v32, %v184_v33  ;;  %v174_v36 = vld [vmem:[%s377_s1 + $0x10] sm:$0xf]  ;;  %v231_v37 = vld [vmem:[%s377_s1 + $0x14] sm:$0xf0]  ;;  %v230_v38 = vld [vmem:[%s377_s1 + $0x14] sm:$0xf] }
   0xa   :  { %v176_v39 = vld [vmem:[%s377_s1 + $0x18] sm:$0xf0]  ;;  %v175_v40 = vor.u32 %v231_v37, %v174_v36  ;;  %v166_v42 = vld [vmem:[%s377_s1] sm:$0xf]  ;;  %v229_v43 = vld [vmem:[%s377_s1 + $0x4] sm:$0xf0] }
   0xb   :  { %v179_v41 = vor.u32 %v230_v38, %v176_v39  ;;  %v228_v44 = vld [vmem:[%s377_s1 + $0x4] sm:$0xf]  ;;  %v168_v45 = vld [vmem:[%s377_s1 + $0x8] sm:$0xf0]  ;;  %v167_v46 = vor.u32 %v229_v43, %v166_v42  ;;  %v17_v48 = vld [vmem:[%s378_s0] sm:$0xf] }
   0xc   :  { %116 = vmatpush.bf16.msra.mxu0 %v207_v16  ;;  %v171_v47 = vor.u32 %v228_v44, %v168_v45  ;;  %v140_v49 = vld [vmem:[%s379_s2] sm:$0x3] }
   0xd   :  { %129 = vmatpush.bf16.msra.mxu1 %v211_v17  ;;  %v148_v50 = vld [vmem:[%s380_s3] sm:$0x3]  ;;  %v142_v51 = vperm.slane %v140_v49, 0  ;;  %v143_v52 = vperm.slane %v140_v49, 1 }
   0xe   :  { %v150_v53 = vperm.slane %v148_v50, 0  ;;  %v151_v55 = vperm.slane %v148_v50, 1 }
  0x10   :  { %117 = vmatpush.bf16.msra.mxu0 %v199_v22 }
  0x11   :  { %130 = vmatpush.bf16.msra.mxu1 %v203_v23 }
  0x14   :  { %118 = vmatpush.bf16.msra.mxu0 %v191_v28 }
  0x15   :  { %131 = vmatpush.bf16.msra.mxu1 %v195_v29 }
  0x18   :  { %119 = vmatpush.bf16.msra.mxu0 %v183_v34 }
  0x19   :  { %132 = vmatpush.bf16.msra.mxu1 %v187_v35 }
  0x1c   :  { %120 = vmatpush.bf16.msra.mxu0 %v175_v40 }
  0x1d   :  { %133 = vmatpush.bf16.msra.mxu1 %v179_v41 }
  0x20   :  { %121 = vmatpush.bf16.msra.mxu0 %v167_v46 }
  0x21   :  { %134 = vmatpush.bf16.msra.mxu1 %v171_v47 }
  0x23   :  { %122 = vmatmul.bf16.vlgmr.msra.gmra.mxu0 %v17_v48 }
  0x24   :  { %135 = vmatmul.bf16.vlgmr.msra.gmra.mxu1 %v17_v48 }
  0xa0   :  { %v123_v54 = vpop.f32.mrf.mxu0 }
  0xa1   :  { %v146_v56 = vmul.f32 %v142_v51, %v123_v54  ;;  %v136_v57 = vpop.f32.mrf.mxu1 }
  0xa2   :  { %v147_v58 = vmul.f32 %v143_v52, %v136_v57 }
  0xa3   :  { %v154_v59 = vadd.f32 %v150_v53, %v146_v56 }
  0xa4   :  { %v155_v60 = vadd.f32 %v151_v55, %v147_v58 }
  0xa5   :  { %v156_v61 = vmax.f32 %v154_v59, 0.0 }
  0xa6   :  { %v157_v62 = vmax.f32 %v155_v60, 0.0 }
  0xa8   :  { %v158_v63 = vpack.c.bf16 %v157_v62, %v156_v61  ;;  %v125_v0 = vpop.f32.mrf.mxu0 }
  0xa9   :  { %v138_v1 = vpop.f32.mrf.mxu1 }
  0xaa   :  { %159 = vst [vmem:[%s381_s4] sm:$0xff] %v158_v63 }

// kernel: _lambda_.28
= control target key start
LH: loop header
LB: loop body
LE: loop exit
PB: predicated region body
PF: predicated region fallthrough
CT: control target
= control target key end

     0   :  { %s853_s17 = smov 0   ;;  %s951_s0 = inlined_call_operand.vmem [shape: bf16[2,12,64], index: 0, kind: input, shape index: {}]   ;;  %s952_s1 = inlined_call_operand.vmem [shape: f32[12,1], index: 1, kind: input, shape index: {}]   ;;  %s953_s2 = inlined_call_operand.vmem [shape: bf16[64,64], index: 2, kind: input, shape index: {}]   ;;  %s954_s3 = inlined_call_operand.vmem [shape: f32[1,64], index: 3, kind: input, shape index: {}]   ;;  %s955_s4 = inlined_call_operand.vmem [shape: f32[1,64], index: 4, kind: input, shape index: {}]   ;;  %s956_s5 = inlined_call_operand.vmem [shape: f32[9,1,64], index: 5, kind: input, shape index: {}]   ;;  %s957_s6 = inlined_call_operand.vmem [shape: f32[1,64], index: 6, kind: input, shape index: {}]   ;;  %s958_s7 = inlined_call_operand.vmem [shape: f32[1,64], index: 7, kind: input, shape index: {}]   ;;  %s959_s8 = inlined_call_operand.vmem [shape: bf16[64,64], index: 8, kind: input, shape index: {}]   ;;  %s960_s9 = inlined_call_operand.vmem [shape: f32[1,64], index: 9, kind: input, shape index: {}]   ;;  %s961_s10 = inlined_call_operand.vmem [shape: f32[1,64], index: 10, kind: input, shape index: {}]   ;;  %s962_s11 = inlined_call_operand.vmem [shape: bf16[2,3,64], index: 11, kind: output, shape index: {}]  }
   0x1 LB: > { %s693_s18 = sadd.s32 4294967295, %s790_s17   ;;  %p697_p0 = scmp.ge.s32.totalorder %s790_s17, 1  ;;  %s790_s17 = sphi %s853_s17, %s21_s17  }
   0x2   : > { %p337_p1 = scmp.lt.s32.totalorder %s790_s17, 3 }
   0x4   : > { %p338_p2 = pnand %p697_p0, %p337_p1 }
   0x5   : > { %p376_p3 = scmp.lt.s32.totalorder (!%p338_p2), %s693_s18, 1 }
   0x6   : > { %341 = sbr.rel (%p338_p2) target bundleno = 323 (0x143), region = 64 }
   0xb   : > { %v754_v0 = vld [vmem:[%s953_s2 + $0x18] sm:$0xff]  ;;  %v792_v1 = vmov 0   ;;  %v457_v2 = vld [vmem:[%s952_s1] sm:$0xff]  ;;  %v753_v3 = vld [vmem:[%s953_s2 + $0x10] sm:$0xff]  ;;  %s964_s18 = smov (!%p376_p3, %s693_s18), 1  ;;  %vm425_vm0 = vcmask 523264  }
   0xc   : > { %768 = vset.pattern.permute.xlu0 %v792_v1  ;;  %433 = vmatpush.bf16.msra.mxu0 %v754_v0  ;;  %s749_s25 = sshll.u32 %s964_s18, 3  ;;  %v752_v4 = vld [vmem:[%s953_s2 + $0x8] sm:$0xff]  ;;  %v751_v6 = vld [vmem:[%s953_s2] sm:$0xff]  ;;  %v758_v10 = vld [vmem:[%s959_s8 + $0x18] sm:$0xff]  ;;  %vm535_vm1 = vcmask 1041408   ;;  %vm550_vm2 = vcmask 1040384  }
   0xd   : > { %461 = vperm.xlu0 %768, %v457_v2   ;;  %v458_v5 = vld [vmem:[%s952_s1 + $0x8] sm:$0xf]  ;;  %s380_s13 = scalar_lea.vmem %s951_s0, %s749_s25  ;;  %613 = vmatpush.bf16.msra.mxu1 %v758_v10  ;;  %v757_v11 = vld [vmem:[%s959_s8 + $0x10] sm:$0xff]  ;;  %v755_v13 = vld [vmem:[%s959_s8] sm:$0xff]  ;;  %s700_s22 = sshll.u32 %s964_s18, 1  ;;  %vm634_vm3 = vcmask 517120  }
   0xe   : > { %v703_v7 = vld [vmem:[%s380_s13] sm:$0xf]  ;;  %v750_v8 = vld [vmem:[%s380_s13] sm:$0x30]  ;;  %v756_v12 = vld [vmem:[%s959_s8 + $0x8] sm:$0xff]  ;;  %s384_s25 = scalar_lea.vmem %s962_s11, %s700_s22 }
   0xf   : > { %v704_v9 = vor.u32 %v750_v8, %v703_v7  ;;  %v769_v14 = vld [vmem:[%s954_s3] ss:$0 sm:$0xff]  ;;  %v775_v21 = vld [vmem:[%s956_s5 + $0x1] ss:$0 sm:$0xff]  ;;  %v776_v22 = vld [vmem:[%s956_s5 + $0x2] ss:$0 sm:$0xff] }
  0x10   : > { %434 = vmatpush.bf16.msra.mxu0 %v753_v3  ;;  %v770_v15 = vld [vmem:[%s955_s4] ss:$0 sm:$0xff]  ;;  %v777_v26 = vld [vmem:[%s956_s5 + $0x3] ss:$0 sm:$0xff]  ;;  %v778_v30 = vld [vmem:[%s956_s5 + $0x4] ss:$0 sm:$0xff] }
  0x11   : > { %614 = vmatpush.bf16.msra.mxu1 %v757_v11  ;;  %v774_v25 = vld [vmem:[%s956_s5] ss:$0 sm:$0xff]  ;;  %v771_v32 = vld [vmem:[%s956_s5 + $0x6] ss:$0 sm:$0xff]  ;;  %v779_v36 = vld [vmem:[%s956_s5 + $0x5] ss:$0 sm:$0xff] }
  0x12   : > { %v772_v44 = vld [vmem:[%s956_s5 + $0x7] ss:$0 sm:$0xff]  ;;  %v773_v59 = vld [vmem:[%s956_s5 + $0x8] ss:$0 sm:$0xff]  ;;  %v780_v2 = vld [vmem:[%s957_s6] ss:$0 sm:$0xff] }
  0x13   : > { %v782_v8 = vld [vmem:[%s960_s9] ss:$0 sm:$0xff]  ;;  %vm635_vm4 = vsmask.f32 1280 }
  0x14   : > { %435 = vmatpush.bf16.msra.mxu0 %v752_v4  ;;  %v781_v4 = vld [vmem:[%s958_s7] ss:$0 sm:$0xff]  ;;  %vm636_vm5 = vmand %vm634_vm3, %vm635_vm4 }
  0x15   : > { %466 = vperm.xlu0 %768, %v458_v5   ;;  %615 = vmatpush.bf16.msra.mxu1 %v756_v12 }
  0x18   : > { %436 = vmatpush.bf16.msra.mxu0 %v751_v6 }
  0x19   : > { %616 = vmatpush.bf16.msra.mxu1 %v755_v13 }
  0x1b   : > { %721 = vmatmul.msk.bf16.vlgmr.msra.gmra.mxu0 %vm425_vm0, %v704_v9  ;;  %v783_v9 = vld [vmem:[%s961_s10] ss:$0 sm:$0xff] }
  0x7f   : > { %v462_v19 = vpop.permute.xlu0 %461 }
  0x87   : > { %v467_v38 = vpop.permute.xlu0 %466 }
  0x98   : > { %v438_v16 = vpop.f32.mrf.mxu0 }
  0x99   : > { %v447_v17 = vmul.f32 %v769_v14, %v438_v16 }
  0x9b   : > { %v453_v18 = vadd.f32 %v770_v15, %v447_v17 }
  0x9d   : > { %v455_v20 = vmax.f32 %v453_v18, 0.0 }
  0x9f   : > { %v469_v23 = vmul.f32 %v462_v19, %v455_v20 }
  0xa0   : > { %v440_v24 = vpop.f32.mrf.mxu0 }
  0xa1   : > { %v448_v27 = vmul.f32 %v769_v14, %v440_v24  ;;  %v481_v28 = vmul.f32 %v775_v21, %v469_v23  ;;  %v491_v29 = vmul.f32 %v776_v22, %v469_v23  ;;  %v475_v33 = vmul.f32 %v774_v25, %v469_v23  ;;  %v637_v14 = vld [vmem:[%s384_s25] sm:$0x3] }
  0xa2   : > { %v501_v35 = vmul.f32 %v777_v26, %v469_v23  ;;  %v511_v41 = vmul.f32 %v778_v30, %v469_v23  ;;  %v531_v43 = vmul.f32 %v771_v32, %v469_v23  ;;  %v521_v47 = vmul.f32 %v779_v36, %v469_v23 }
  0xa3   : > { %v454_v31 = vadd.f32 %v770_v15, %v448_v27  ;;  %v483_v34 = vrot.slane %v481_v28, 1  ;;  %v493_v40 = vrot.slane %v491_v29, 2  ;;  %v546_v54 = vmul.f32 %v772_v44, %v469_v23 }
  0xa4   : > { %v503_v46 = vrot.slane %v501_v35, 3  ;;  %v513_v51 = vrot.slane %v511_v41, 4  ;;  %v536_v52 = vrot.slane %v531_v43, 6  ;;  %v523_v56 = vrot.slane %v521_v47, 5 }
  0xa5   : > { %v456_v37 = vmax.f32 %v454_v31, 0.0  ;;  %v485_v39 = vadd.f32 %v483_v34, %v475_v33  ;;  %v551_v61 = vrot.slane %v546_v54, 7 }
  0xa7   : > { %v470_v42 = vmul.f32 %v467_v38, %v456_v37  ;;  %v495_v45 = vadd.f32 %v493_v40, %v485_v39 }
  0xa9   : > { %v532_v48 = vmul.f32 %v771_v32, %v470_v42  ;;  %v547_v49 = vmul.f32 %v772_v44, %v470_v42  ;;  %v505_v50 = vadd.f32 %v503_v46, %v495_v45  ;;  %v561_v0 = vmul.f32 %v773_v59, %v470_v42 }
  0xab   : > { %v537_v53 = vrot.slane %v532_v48, 6  ;;  %v515_v55 = vadd.f32 %v513_v51, %v505_v50  ;;  %v552_v57 = vrot.slane %v547_v49, 7 }
  0xad   : > { %v538_v58 = vsel %vm535_vm1, %v536_v52, %v537_v53  ;;  %v525_v60 = vadd.f32 %v523_v56, %v515_v55  ;;  %v553_v63 = vsel %vm550_vm2, %v551_v61, %v552_v57 }
  0xaf   : > { %v540_v62 = vadd.f32 %v538_v58, %v525_v60 }
  0xb1   : > { %v555_v1 = vadd.f32 %v553_v63, %v540_v62 }
  0xb3   : > { %v562_v3 = vadd.f32 %v561_v0, %v555_v1 }
  0xb5   : > { %v567_v5 = vmul.f32 %v780_v2, %v562_v3 }
  0xb7   : > { %v572_v6 = vadd.f32 %v781_v4, %v567_v5 }
  0xb9   : > { %v573_v7 = vpack.c.bf16 %v572_v6, %v572_v6 }
  0xbb   : > { %746 = vmatmul.msk.bf16.vlgmr.msra.gmra.mxu1 %vm425_vm0, %v573_v7 }
 0x138   : > { %v618_v10 = vpop.f32.mrf.mxu1 }
 0x139   : > { %v626_v11 = vmul.f32 %v782_v8, %v618_v10 }
 0x13b   : > { %v631_v12 = vadd.f32 %v783_v9, %v626_v11 }
 0x13d   : > { %v632_v13 = vmax.f32 %v631_v12, 0.0 }
 0x13f   : > { %v633_v15 = vpack.c.bf16 %v632_v13, %v632_v13 }
 0x140   : > { %v620_v16 = vpop.f32.mrf.mxu1 }
 0x141   : > { %v638_v17 = vsel %vm636_vm5, %v633_v15, %v637_v14 }
 0x142   : > { %639 = vst [vmem:[%s384_s25] sm:$0x3] %v638_v17 }
 0x143 PF: > { %s21_s17 = sadd.s32 1, %s790_s17  }
 0x144   : > { %p18_p4 = scmp.ge.s32.totalorder %s21_s17, 4  }
 0x146   :  { %20 = sbr.rel (!%p18_p4) target bundleno = 1 (0x1), region = 102 }

</bundles_post_ra>
